<compile_context>
chip_gen: v5e
topology: v5e:2x2
jax: 0.10.0
libtpu: 0.0.40
codegen_flags: <defaults>
</compile_context>

<pallas_src>
import functools

import jax
import jax.numpy as jnp
from jax.experimental import pallas as pl
from jax.experimental.pallas import tpu as pltpu


# ----------------------------- kernel -------------------------------------- #

def imgnn_kernel(x_ref, w1_ref, b1_ref, w2_ref, b2_ref, w3_ref, b3_ref, o_ref,
                 *, compute_dtype):
    """Fused 3x (Linear + tanh) over one batch tile.

    Weights are stored (D_in, D_out), i.e. pre-transposed from PyTorch's
    nn.Linear (out_features, in_features), so each layer is y = tanh(x@W + b).
    Matmuls run with bf16 inputs on the MXU and f32 accumulation; bias-add and
    tanh stay in f32 on the VPU/EUP; the result is cast back to bf16 right
    after the tanh so inter-layer activations occupy half the vregs/VMEM.
    """

    def layer(h, w_ref, b_ref):
        y = jnp.dot(h, w_ref[...], preferred_element_type=jnp.float32)
        return jnp.tanh(y + b_ref[...]).astype(compute_dtype)

    h = x_ref[...].astype(compute_dtype)   # in-register cast (no extra HBM pass)
    h = layer(h, w1_ref, b1_ref)
    h = layer(h, w2_ref, b2_ref)
    o_ref[...] = layer(h, w3_ref, b3_ref).astype(o_ref.dtype)


# ----------------------------- wrapper -------------------------------------- #

def _pick_tile_b(B, bytes_per_row, act_budget_bytes, max_tile_b=1024):
    """Largest multiple-of-8 divisor of B (<= max_tile_b) whose double-buffered
    activation tiles fit the VMEM budget.  No artificial ">=2 grid steps" rule:
    a single full-batch block is preferred when it fits (fewer grid steps ->
    less per-step overhead; strictly better on single-TC v5e/v6e)."""
    if B % 8 != 0:
        return B                       # tiny/odd batch: single full block
    best = None
    t = 8
    limit = min(B, max_tile_b)
    while t <= limit:
        if B % t == 0 and t * bytes_per_row <= act_budget_bytes:
            best = t
        t += 8
    return best if best is not None else 8


def vgg_imgnn_head_forward(x, params, *, compute_dtype=jnp.bfloat16,
                           vmem_limit_bytes=48 * 1024 * 1024):
    """x: (B, D_in) VGG feature matrix (f32 or bf16).  params: w1,b1,w2,b2,w3,b3.

    Returns (B, D_out) activations in `compute_dtype` (bf16) to halve output
    HBM bytes; cast outside if f32 is required downstream.
    """
    B, D_in = x.shape
    D_out = params["w1"].shape[1]

    # Cast weights once outside the kernel: halves weight DMA bytes and feeds
    # the MXU's native bf16 path.  Biases stay f32 for the f32 bias-add.
    w1 = params["w1"].astype(compute_dtype)
    w2 = params["w2"].astype(compute_dtype)
    w3 = params["w3"].astype(compute_dtype)
    b1, b2, b3 = params["b1"], params["b2"], params["b3"]

    # --- VMEM budgeting ------------------------------------------------------
    resident_bytes = (w1.nbytes + w2.nbytes + w3.nbytes
                      + b1.nbytes + b2.nbytes + b3.nbytes)
    budget = vmem_limit_bytes - (4 * 1024 * 1024)          # headroom
    assert resident_bytes < budget, (
        "resident weights exceed VMEM budget; K-tile the first layer instead")
    out_itemsize = jnp.dtype(compute_dtype).itemsize
    # double-buffered x tile + double-buffered out tile + f32 intermediates
    bytes_per_row = (2 * D_in * x.dtype.itemsize
                     + 2 * D_out * out_itemsize
                     + (D_in + 3 * D_out) * 4)
    tile_b = _pick_tile_b(B, bytes_per_row, budget - resident_bytes)
    assert B % tile_b == 0
    grid = (B // tile_b,)

    # Activations tiled over batch (lane-dense: full feature dim on lanes).
    x_spec = pl.BlockSpec((tile_b, D_in), lambda i: (i, 0))
    o_spec = pl.BlockSpec((tile_b, D_out), lambda i: (i, 0))
    # Weights / biases: whole-array VMEM residents -> single buffer, loaded
    # once for the entire kernel (no double-buffering, no per-step re-DMA).
    resident_spec = pl.BlockSpec(memory_space=pltpu.MemorySpace.VMEM)

    kernel = functools.partial(imgnn_kernel, compute_dtype=compute_dtype)

    cost = pl.CostEstimate(
        flops=2 * B * (D_in * D_out + 2 * D_out * D_out),
        transcendentals=3 * B * D_out,
        bytes_accessed=(x.nbytes + resident_bytes + B * D_out * out_itemsize),
    )

    return pl.pallas_call(
        kernel,
        out_shape=jax.ShapeDtypeStruct((B, D_out), compute_dtype),
        grid=grid,
        in_specs=[
            x_spec,
            resident_spec, resident_spec,   # w1, b1
            resident_spec, resident_spec,   # w2, b2
            resident_spec, resident_spec,   # w3, b3
        ],
        out_specs=o_spec,
        compiler_params=pltpu.CompilerParams(
            dimension_semantics=("parallel",),
            vmem_limit_bytes=vmem_limit_bytes,
        ),
        cost_estimate=cost,
    )(x, w1, b1, w2, b2, w3, b3)


# ----------------------------- params & reference --------------------------- #

def init_params(key, input_dim, output_dim):
    """Deterministic synthetic parameters (PyTorch nn.Linear-style uniform)."""
    ks = jax.random.split(key, 6)

    def linear(kw, kb, fan_in, fan_out):
        bound = 1.0 / jnp.sqrt(fan_in)
        # Stored pre-transposed: (fan_in, fan_out).
        w = jax.random.uniform(kw, (fan_in, fan_out), jnp.float32, -bound, bound)
        b = jax.random.uniform(kb, (1, fan_out), jnp.float32, -bound, bound)
        return w, b

    w1, b1 = linear(ks[0], ks[1], input_dim, output_dim)
    w2, b2 = linear(ks[2], ks[3], output_dim, output_dim)
    w3, b3 = linear(ks[4], ks[5], output_dim, output_dim)
    return {"w1": w1, "b1": b1, "w2": w2, "b2": b2, "w3": w3, "b3": b3}


def imgnn_ref(x, p, compute_dtype):
    """Pure-JAX reference with matching matmul / inter-layer precision."""
    def layer(h, w, b):
        y = jnp.dot(h.astype(compute_dtype), w.astype(compute_dtype),
                    preferred_element_type=jnp.float32)
        return jnp.tanh(y + b).astype(compute_dtype)
    h = layer(x, p["w1"], p["b1"])
    h = layer(h, p["w2"], p["b2"])
    return layer(h, p["w3"], p["b3"])


# ----------------------------- demo ----------------------------------------- #

if __name__ == "__main__":
    # Small shapes consistent with the module's head: VGGNet emits a
    # (B, input_dim) feature matrix; ImgNN maps it to (B, output_dim).
    B, D_IN, D_OUT = 256, 512, 256

    key = jax.random.PRNGKey(0)
    kx, kp = jax.random.split(key)
    # Stand-in for VGG features (the pretrained extractor is untranslatable).
    feats = jax.random.normal(kx, (B, D_IN), dtype=jnp.float32)
    params = init_params(kp, D_IN, D_OUT)

    out = vgg_imgnn_head_forward(feats, params)   # bf16 MXU inputs, f32 accum
    out = jax.block_until_ready(out)
    assert out.shape == (B, D_OUT)
    assert out.dtype == jnp.bfloat16

    # 1) Matched-precision reference (bf16 matmul inputs / inter-layer bf16).
    ref_bf16 = imgnn_ref(feats, params, jnp.bfloat16)
    assert jnp.allclose(out.astype(jnp.float32), ref_bf16.astype(jnp.float32),
                        atol=2e-2, rtol=2e-2), \
        "mismatch vs matched-precision JAX reference"

    # 2) Full-f32 module semantics, loose tolerance for the bf16 path.
    ref_f32 = imgnn_ref(feats, params, jnp.float32)
    assert jnp.allclose(out.astype(jnp.float32), ref_f32,
                        atol=1e-1, rtol=1e-1), \
        "mismatch vs f32 module reference"

    print("KERNEL_OK")
</pallas_src>

<mosaic_0001>
module attributes {stable_mosaic.version = 11 : i64} {
  func.func @imgnn_kernel(%arg0: i32, %arg1: memref<256x512xf32, #tpu.memory_space<vmem>>, %arg2: memref<512x256xbf16, #tpu.memory_space<vmem>>, %arg3: memref<1x256xf32, #tpu.memory_space<vmem>>, %arg4: memref<256x256xbf16, #tpu.memory_space<vmem>>, %arg5: memref<1x256xf32, #tpu.memory_space<vmem>>, %arg6: memref<256x256xbf16, #tpu.memory_space<vmem>>, %arg7: memref<1x256xf32, #tpu.memory_space<vmem>>, %arg8: memref<256x256xbf16, #tpu.memory_space<vmem>>) attributes {dimension_semantics = [#tpu.dimension_semantics<parallel>], iteration_bounds = array<i64: 1>, scalar_prefetch = 0 : i64, scratch_operands = 0 : i64, tpu.core_type = #tpu.core_type<tc>, window_params = [{transform_indices = @transform_0, window_bounds = array<i64: 256, 512>}, {pipeline_mode = #tpu.pipeline_mode<synchronous>, transform_indices = @transform_1, window_bounds = array<i64: 512, 256>}, {pipeline_mode = #tpu.pipeline_mode<synchronous>, transform_indices = @transform_2, window_bounds = array<i64: 1, 256>}, {pipeline_mode = #tpu.pipeline_mode<synchronous>, transform_indices = @transform_3, window_bounds = array<i64: 256, 256>}, {pipeline_mode = #tpu.pipeline_mode<synchronous>, transform_indices = @transform_4, window_bounds = array<i64: 1, 256>}, {pipeline_mode = #tpu.pipeline_mode<synchronous>, transform_indices = @transform_5, window_bounds = array<i64: 256, 256>}, {pipeline_mode = #tpu.pipeline_mode<synchronous>, transform_indices = @transform_6, window_bounds = array<i64: 1, 256>}, {transform_indices = @transform_7, window_bounds = array<i64: 256, 256>}]} {
    %c0 = arith.constant 0 : index
    %c0_0 = arith.constant 0 : index
    %0 = vector.load %arg1[%c0, %c0_0] : memref<256x512xf32, #tpu.memory_space<vmem>>, vector<256x512xf32>
    %1 = arith.truncf %0 : vector<256x512xf32> to vector<256x512xbf16>
    %c0_1 = arith.constant 0 : index
    %c0_2 = arith.constant 0 : index
    %2 = vector.load %arg2[%c0_1, %c0_2] : memref<512x256xbf16, #tpu.memory_space<vmem>>, vector<512x256xbf16>
    %cst = arith.constant dense<0.000000e+00> : vector<256x256xf32>
    %3 = tpu.matmul %1, %2, %cst {dimension_numbers = #tpu.dot_dimension_numbers<[1], [0], [0], [1], [0, 0, 1, 1], [], []>} : vector<256x512xbf16>, vector<512x256xbf16>, vector<256x256xf32> -> vector<256x256xf32>
    %c0_3 = arith.constant 0 : index
    %c0_4 = arith.constant 0 : index
    %4 = vector.load %arg3[%c0_3, %c0_4] : memref<1x256xf32, #tpu.memory_space<vmem>>, vector<1x256xf32>
    %5 = vector.broadcast %4 : vector<1x256xf32> to vector<256x256xf32>
    %6 = arith.addf %3, %5 : vector<256x256xf32>
    %7 = math.tanh %6 : vector<256x256xf32>
    %8 = arith.truncf %7 : vector<256x256xf32> to vector<256x256xbf16>
    %c0_5 = arith.constant 0 : index
    %c0_6 = arith.constant 0 : index
    %9 = vector.load %arg4[%c0_5, %c0_6] : memref<256x256xbf16, #tpu.memory_space<vmem>>, vector<256x256xbf16>
    %cst_7 = arith.constant dense<0.000000e+00> : vector<256x256xf32>
    %10 = tpu.matmul %8, %9, %cst_7 {dimension_numbers = #tpu.dot_dimension_numbers<[1], [0], [0], [1], [0, 0, 1, 1], [], []>} : vector<256x256xbf16>, vector<256x256xbf16>, vector<256x256xf32> -> vector<256x256xf32>
    %c0_8 = arith.constant 0 : index
    %c0_9 = arith.constant 0 : index
    %11 = vector.load %arg5[%c0_8, %c0_9] : memref<1x256xf32, #tpu.memory_space<vmem>>, vector<1x256xf32>
    %12 = vector.broadcast %11 : vector<1x256xf32> to vector<256x256xf32>
    %13 = arith.addf %10, %12 : vector<256x256xf32>
    %14 = math.tanh %13 : vector<256x256xf32>
    %15 = arith.truncf %14 : vector<256x256xf32> to vector<256x256xbf16>
    %c0_10 = arith.constant 0 : index
    %c0_11 = arith.constant 0 : index
    %16 = vector.load %arg6[%c0_10, %c0_11] : memref<256x256xbf16, #tpu.memory_space<vmem>>, vector<256x256xbf16>
    %cst_12 = arith.constant dense<0.000000e+00> : vector<256x256xf32>
    %17 = tpu.matmul %15, %16, %cst_12 {dimension_numbers = #tpu.dot_dimension_numbers<[1], [0], [0], [1], [0, 0, 1, 1], [], []>} : vector<256x256xbf16>, vector<256x256xbf16>, vector<256x256xf32> -> vector<256x256xf32>
    %c0_13 = arith.constant 0 : index
    %c0_14 = arith.constant 0 : index
    %18 = vector.load %arg7[%c0_13, %c0_14] : memref<1x256xf32, #tpu.memory_space<vmem>>, vector<1x256xf32>
    %19 = vector.broadcast %18 : vector<1x256xf32> to vector<256x256xf32>
    %20 = arith.addf %17, %19 : vector<256x256xf32>
    %21 = math.tanh %20 : vector<256x256xf32>
    %22 = arith.truncf %21 : vector<256x256xf32> to vector<256x256xbf16>
    %c0_15 = arith.constant 0 : index
    %c0_16 = arith.constant 0 : index
    %23 = vector.load %arg8[%c0_15, %c0_16] : memref<256x256xbf16, #tpu.memory_space<vmem>>, vector<256x256xbf16>
    tpu.vector_store %arg8[%c0_15, %c0_16], %22 {strides = array<i32>} : memref<256x256xbf16, #tpu.memory_space<vmem>>, vector<256x256xbf16>,
    return
  }
  func.func @transform_0(%arg0: i32) -> (i32, i32) {
    %c0_i32 = arith.constant 0 : i32
    %c0_i32_0 = arith.constant 0 : i32
    return %arg0, %c0_i32 : i32, i32
  }
  func.func @transform_1(%arg0: i32) -> (i32, i32) {
    %c0_i32 = arith.constant 0 : i32
    %c0_i32_0 = arith.constant 0 : i32
    %c0_i32_1 = arith.constant 0 : i32
    return %c0_i32, %c0_i32_0 : i32, i32
  }
  func.func @transform_2(%arg0: i32) -> (i32, i32) {
    %c0_i32 = arith.constant 0 : i32
    %c0_i32_0 = arith.constant 0 : i32
    %c0_i32_1 = arith.constant 0 : i32
    return %c0_i32, %c0_i32_0 : i32, i32
  }
  func.func @transform_3(%arg0: i32) -> (i32, i32) {
    %c0_i32 = arith.constant 0 : i32
    %c0_i32_0 = arith.constant 0 : i32
    %c0_i32_1 = arith.constant 0 : i32
    return %c0_i32, %c0_i32_0 : i32, i32
  }
  func.func @transform_4(%arg0: i32) -> (i32, i32) {
    %c0_i32 = arith.constant 0 : i32
    %c0_i32_0 = arith.constant 0 : i32
    %c0_i32_1 = arith.constant 0 : i32
    return %c0_i32, %c0_i32_0 : i32, i32
  }
  func.func @transform_5(%arg0: i32) -> (i32, i32) {
    %c0_i32 = arith.constant 0 : i32
    %c0_i32_0 = arith.constant 0 : i32
    %c0_i32_1 = arith.constant 0 : i32
    return %c0_i32, %c0_i32_0 : i32, i32
  }
  func.func @transform_6(%arg0: i32) -> (i32, i32) {
    %c0_i32 = arith.constant 0 : i32
    %c0_i32_0 = arith.constant 0 : i32
    %c0_i32_1 = arith.constant 0 : i32
    return %c0_i32, %c0_i32_0 : i32, i32
  }
  func.func @transform_7(%arg0: i32) -> (i32, i32) {
    %c0_i32 = arith.constant 0 : i32
    %c0_i32_0 = arith.constant 0 : i32
    return %arg0, %c0_i32 : i32, i32
  }
}

</mosaic_0001>

<bundles_post_ra>
// kernel: tpu_custom_call.1
= control target key start
LH: loop header
LB: loop body
LE: loop exit
PB: predicated region body
PF: predicated region fallthrough
CT: control target
= control target key end

     0   :  { %12 = vsyncpa [#allocation3], 0  ;;  %s4835_s0 = inlined_call_operand.hbm [shape: f32[256,512], index: 0, kind: input, shape index: {}]   ;;  %s4836_s1 = inlined_call_operand.hbm [shape: bf16[512,256], index: 1, kind: input, shape index: {}]   ;;  %s4837_s2 = inlined_call_operand.hbm [shape: f32[1,256], index: 2, kind: input, shape index: {}]   ;;  %s4838_s3 = inlined_call_operand.hbm [shape: bf16[256,256], index: 3, kind: input, shape index: {}]   ;;  %s4839_s4 = inlined_call_operand.vmem [shape: f32[1,256], index: 4, kind: input, shape index: {}]   ;;  %s4840_s5 = inlined_call_operand.hbm [shape: bf16[256,256], index: 5, kind: input, shape index: {}]   ;;  %s4841_s6 = inlined_call_operand.vmem [shape: f32[1,256], index: 6, kind: input, shape index: {}]   ;;  %s4842_s7 = inlined_call_operand.hbm [shape: bf16[256,256], index: 7, kind: output, shape index: {}]  }
   0x1   :  { %13 = vsyncpa [#allocation6], 0 }
   0x2   :  { %14 = vsyncpa [#allocation9], 0  ;;  %s33_s26 = sshll.u32 %s4836_s1, 4  ;;  %s34_s26 = int_to_ptr.hbm [resolvable:$true] %s33_s26 }
   0x3   :  { %15 = vsyncpa [#allocation4], 0  ;;  %s4033_s27 = smov [#allocation5]   ;;  %s57_s8 = sshll.u32 %s4838_s3, 4  ;;  %s58_s8 = int_to_ptr.hbm [resolvable:$true] %s57_s8 }
   0x4   :  { %s35_s28 = sshll.u32 %s4033_s27, 4  ;;  %s4034_s9 = smov 128   ;;  %s36_s28 = int_to_ptr.vmem [resolvable:$true] %s35_s28 }
   0x5   :  { %s4035_s10 = smov 8   ;;  %s4036_s11 = smov [#allocation8]  }
   0x6   :  { %41 = dma.hbm_to_vmem [thread:$0]  %s34_s26, 8192, %s36_s28, [#allocation6], %s4034_s9, %s4034_s9, %s4035_s10  }
   0x7   :  { %s59_s12 = sshll.u32 %s4036_s11, 4  ;;  %s20_s14 = sshll.u32 %s4835_s0, 4  ;;  %s60_s12 = int_to_ptr.vmem [resolvable:$true] %s59_s12  ;;  %s21_s14 = int_to_ptr.hbm [resolvable:$true] %s20_s14 }
   0x8   :  { %65 = dma.hbm_to_vmem [thread:$0]  %s58_s8, 4096, %s60_s12, [#allocation9], %s4034_s9, %s4034_s9, %s4035_s10  }
   0x9   :  { %s4037_s3 = smov [#allocation2]   ;;  %s47_s18 = sshll.u32 %s4837_s2, 4  ;;  %s48_s18 = int_to_ptr.hbm [resolvable:$true] %s47_s18 }
   0xa   :  { %s22_s15 = sshll.u32 %s4037_s3, 4  ;;  %s4038_s19 = smov 512   ;;  %s23_s15 = int_to_ptr.vmem [resolvable:$true] %s22_s15 }
   0xb   :  { %s4039_s20 = smov 32   ;;  %s4040_s21 = smov [#allocation7]  }
   0xc   :  { %28 = dma.hbm_to_vmem [thread:$0]  %s21_s14, 16384, %s23_s15, [#allocation3], %s4038_s19, %s4038_s19, %s4039_s20  }
   0xd   :  { %s49_s22 = sshll.u32 %s4040_s21, 4  ;;  %s72_s24 = sshll.u32 %s4840_s5, 4  ;;  %s50_s22 = int_to_ptr.vmem [resolvable:$true] %s49_s22  ;;  %s73_s24 = int_to_ptr.hbm [resolvable:$true] %s72_s24 }
   0xe   :  { %52 = dma.hbm_to_vmem [thread:$0]  %s48_s18, 32, %s50_s22, [#allocation6]  }
   0xf   :  { %s4041_s25 = smov [#allocation10]  }
  0x10   :  { %s74_s26 = sshll.u32 %s4041_s25, 4  ;;  %s75_s26 = int_to_ptr.vmem [resolvable:$true] %s74_s26 }
  0x11   :  { %80 = dma.hbm_to_vmem [thread:$0]  %s73_s24, 4096, %s75_s26, [#allocation9], %s4034_s9, %s4034_s9, %s4035_s10  }
  0x12   :  { %4025 = dma.done.wait [#allocation3], 16384  }
  0x13   :  { %4026 = vsyncadd [#allocation3], 4294950912 }
  0x14   :  { %4027 = dma.done.wait [#allocation6], 8224  }
  0x15   :  { %4028 = vsyncadd [#allocation6], 4294959072 }
  0x16   :  { %4029 = dma.done.wait [#allocation9], 8192  }
  0x17   :  { %4030 = vsyncadd [#allocation9], 4294959104  ;;  %v2904_v0 = vld [vmem:[#allocation5 + $0x70] sm:$0xf]  ;;  %v3373_v1 = vld [vmem:[#allocation5 + $0x74] sm:$0xf0] }
  0x18   :  { %v2968_v2 = vld [vmem:[#allocation5 + $0xf0] sm:$0xf]  ;;  %v2905_v3 = vor.u32 %v3373_v1, %v2904_v0  ;;  %v3389_v4 = vld [vmem:[#allocation5 + $0xf4] sm:$0xf0]  ;;  %v2896_v11 = vld [vmem:[#allocation5 + $0x60] sm:$0xf] }
  0x19   :  { %v3032_v5 = vld [vmem:[#allocation5 + $0x170] sm:$0xf]  ;;  %v3405_v6 = vld [vmem:[#allocation5 + $0x174] sm:$0xf0]  ;;  %v2969_v7 = vor.u32 %v3389_v4, %v2968_v2  ;;  %v3371_v13 = vld [vmem:[#allocation5 + $0x64] sm:$0xf0] }
  0x1a   :  { %v3033_v8 = vor.u32 %v3405_v6, %v3032_v5  ;;  %v3096_v9 = vld [vmem:[#allocation5 + $0x1f0] sm:$0xf]  ;;  %v3421_v10 = vld [vmem:[#allocation5 + $0x1f4] sm:$0xf0]  ;;  %685 = vmatpush.bf16.msra.mxu0 %v2905_v3  ;;  %v2960_v14 = vld [vmem:[#allocation5 + $0xe0] sm:$0xf]  ;;  %v2897_v16 = vor.u32 %v3371_v13, %v2896_v11 }
  0x1b   :  { %v3097_v12 = vor.u32 %v3421_v10, %v3096_v9  ;;  %v3387_v15 = vld [vmem:[#allocation5 + $0xe4] sm:$0xf0]  ;;  %774 = vmatpush.bf16.msra.mxu1 %v2969_v7  ;;  %v3024_v18 = vld [vmem:[#allocation5 + $0x160] sm:$0xf]  ;;  %v2888_v23 = vld [vmem:[#allocation5 + $0x50] sm:$0xf] }
  0x1c   :  { %863 = vmatpush.bf16.msra.mxu2 %v3033_v8  ;;  %v2961_v17 = vor.u32 %v3387_v15, %v2960_v14  ;;  %v3403_v19 = vld [vmem:[#allocation5 + $0x164] sm:$0xf0]  ;;  %v3088_v20 = vld [vmem:[#allocation5 + $0x1e0] sm:$0xf]  ;;  %v3369_v24 = vld [vmem:[#allocation5 + $0x54] sm:$0xf0] }
  0x1d   :  { %952 = vmatpush.bf16.msra.mxu3 %v3097_v12  ;;  %v3025_v21 = vor.u32 %v3403_v19, %v3024_v18  ;;  %v3419_v22 = vld [vmem:[#allocation5 + $0x1e4] sm:$0xf0]  ;;  %v2952_v26 = vld [vmem:[#allocation5 + $0xd0] sm:$0xf]  ;;  %v3385_v27 = vld [vmem:[#allocation5 + $0xd4] sm:$0xf0]  ;;  %v2889_v29 = vor.u32 %v3369_v24, %v2888_v23 }
  0x1e   :  { %v3089_v25 = vor.u32 %v3419_v22, %v3088_v20  ;;  %v3016_v28 = vld [vmem:[#allocation5 + $0x150] sm:$0xf]  ;;  %686 = vmatpush.bf16.msra.mxu0 %v2897_v16  ;;  %v3401_v30 = vld [vmem:[#allocation5 + $0x154] sm:$0xf0]  ;;  %v2953_v33 = vor.u32 %v3385_v27, %v2952_v26  ;;  %v2880_v35 = vld [vmem:[#allocation5 + $0x40] sm:$0xf] }
  0x1f   :  { %v3080_v31 = vld [vmem:[#allocation5 + $0x1d0] sm:$0xf]  ;;  %v3417_v32 = vld [vmem:[#allocation5 + $0x1d4] sm:$0xf0]  ;;  %775 = vmatpush.bf16.msra.mxu1 %v2961_v17  ;;  %v3017_v34 = vor.u32 %v3401_v30, %v3016_v28  ;;  %v3367_v36 = vld [vmem:[#allocation5 + $0x44] sm:$0xf0] }
  0x20   :  { %864 = vmatpush.bf16.msra.mxu2 %v3025_v21  ;;  %v2944_v37 = vld [vmem:[#allocation5 + $0xc0] sm:$0xf]  ;;  %v3081_v38 = vor.u32 %v3417_v32, %v3080_v31  ;;  %v3383_v39 = vld [vmem:[#allocation5 + $0xc4] sm:$0xf0]  ;;  %v2881_v44 = vor.u32 %v3367_v36, %v2880_v35  ;;  %v2872_v47 = vld [vmem:[#allocation5 + $0x30] sm:$0xf] }
  0x21   :  { %953 = vmatpush.bf16.msra.mxu3 %v3089_v25  ;;  %v3008_v40 = vld [vmem:[#allocation5 + $0x140] sm:$0xf]  ;;  %v3399_v41 = vld [vmem:[#allocation5 + $0x144] sm:$0xf0]  ;;  %v2945_v45 = vor.u32 %v3383_v39, %v2944_v37  ;;  %v3365_v48 = vld [vmem:[#allocation5 + $0x34] sm:$0xf0] }
  0x22   :  { %v3072_v42 = vld [vmem:[#allocation5 + $0x1c0] sm:$0xf]  ;;  %v3415_v43 = vld [vmem:[#allocation5 + $0x1c4] sm:$0xf0]  ;;  %687 = vmatpush.bf16.msra.mxu0 %v2889_v29  ;;  %v3009_v46 = vor.u32 %v3399_v41, %v3008_v40  ;;  %v2936_v49 = vld [vmem:[#allocation5 + $0xb0] sm:$0xf]  ;;  %v2873_v56 = vor.u32 %v3365_v48, %v2872_v47 }
  0x23   :  { %776 = vmatpush.bf16.msra.mxu1 %v2953_v33  ;;  %v3073_v50 = vor.u32 %v3415_v43, %v3072_v42  ;;  %v3381_v51 = vld [vmem:[#allocation5 + $0xb4] sm:$0xf0]  ;;  %v3000_v52 = vld [vmem:[#allocation5 + $0x130] sm:$0xf]  ;;  %v2864_v59 = vld [vmem:[#allocation5 + $0x20] sm:$0xf] }
  0x24   :  { %865 = vmatpush.bf16.msra.mxu2 %v3017_v34  ;;  %v3397_v53 = vld [vmem:[#allocation5 + $0x134] sm:$0xf0]  ;;  %v3064_v54 = vld [vmem:[#allocation5 + $0x1b0] sm:$0xf]  ;;  %v2937_v57 = vor.u32 %v3381_v51, %v2936_v49  ;;  %v3363_v60 = vld [vmem:[#allocation5 + $0x24] sm:$0xf0] }
  0x25   :  { %954 = vmatpush.bf16.msra.mxu3 %v3081_v38  ;;  %v3413_v55 = vld [vmem:[#allocation5 + $0x1b4] sm:$0xf0]  ;;  %v3001_v58 = vor.u32 %v3397_v53, %v3000_v52  ;;  %v2928_v61 = vld [vmem:[#allocation5 + $0xa0] sm:$0xf]  ;;  %v3379_v63 = vld [vmem:[#allocation5 + $0xa4] sm:$0xf0]  ;;  %v2865_v4 = vor.u32 %v3363_v60, %v2864_v59 }
  0x26   :  { %688 = vmatpush.bf16.msra.mxu0 %v2881_v44  ;;  %v3065_v62 = vor.u32 %v3413_v55, %v3064_v54  ;;  %v2992_v0 = vld [vmem:[#allocation5 + $0x120] sm:$0xf]  ;;  %v3395_v1 = vld [vmem:[#allocation5 + $0x124] sm:$0xf0]  ;;  %v2929_v5 = vor.u32 %v3379_v63, %v2928_v61  ;;  %v2856_v7 = vld [vmem:[#allocation5 + $0x10] sm:$0xf] }
  0x27   :  { %777 = vmatpush.bf16.msra.mxu1 %v2945_v45  ;;  %v3056_v2 = vld [vmem:[#allocation5 + $0x1a0] sm:$0xf]  ;;  %v3411_v3 = vld [vmem:[#allocation5 + $0x1a4] sm:$0xf0]  ;;  %v2993_v6 = vor.u32 %v3395_v1, %v2992_v0  ;;  %v3361_v8 = vld [vmem:[#allocation5 + $0x14] sm:$0xf0] }
  0x28   :  { %866 = vmatpush.bf16.msra.mxu2 %v3009_v46  ;;  %v2920_v9 = vld [vmem:[#allocation5 + $0x90] sm:$0xf]  ;;  %v3057_v10 = vor.u32 %v3411_v3, %v3056_v2  ;;  %v3377_v11 = vld [vmem:[#allocation5 + $0x94] sm:$0xf0]  ;;  %v2848_v16 = vld [vmem:[#allocation5] sm:$0xf]  ;;  %v2857_v17 = vor.u32 %v3361_v8, %v2856_v7 }
  0x29   :  { %955 = vmatpush.bf16.msra.mxu3 %v3073_v50  ;;  %v2984_v12 = vld [vmem:[#allocation5 + $0x110] sm:$0xf]  ;;  %v3393_v13 = vld [vmem:[#allocation5 + $0x114] sm:$0xf0]  ;;  %v3359_v18 = vld [vmem:[#allocation5 + $0x4] sm:$0xf0]  ;;  %v2921_v21 = vor.u32 %v3377_v11, %v2920_v9 }
  0x2a   :  { %689 = vmatpush.bf16.msra.mxu0 %v2873_v56  ;;  %v3048_v14 = vld [vmem:[#allocation5 + $0x190] sm:$0xf]  ;;  %v3409_v15 = vld [vmem:[#allocation5 + $0x194] sm:$0xf0]  ;;  %v2912_v19 = vld [vmem:[#allocation5 + $0x80] sm:$0xf]  ;;  %v2985_v22 = vor.u32 %v3393_v13, %v2984_v12  ;;  %v2849_v33 = vor.u32 %v3359_v18, %v2848_v16 }
  0x2b   :  { %778 = vmatpush.bf16.msra.mxu1 %v2937_v57  ;;  %v3375_v20 = vld [vmem:[#allocation5 + $0x84] sm:$0xf0]  ;;  %v2976_v23 = vld [vmem:[#allocation5 + $0x100] sm:$0xf]  ;;  %v3049_v26 = vor.u32 %v3409_v15, %v3048_v14  ;;  %v3404_v31 = vld [vmem:[#allocation5 + $0x174] sm:$0xf] }
  0x2c   :  { %867 = vmatpush.bf16.msra.mxu2 %v3001_v58  ;;  %v3391_v24 = vld [vmem:[#allocation5 + $0x104] sm:$0xf0]  ;;  %v3040_v25 = vld [vmem:[#allocation5 + $0x180] sm:$0xf]  ;;  %v3034_v32 = vld [vmem:[#allocation5 + $0x178] sm:$0xf0]  ;;  %v2913_v37 = vor.u32 %v3375_v20, %v2912_v19 }
  0x2d   :  { %956 = vmatpush.bf16.msra.mxu3 %v3065_v62  ;;  %v3407_v27 = vld [vmem:[#allocation5 + $0x184] sm:$0xf0]  ;;  %v103_v28 = vld [vmem:[#allocation2] sm:$0xff]  ;;  %v3420_v35 = vld [vmem:[#allocation5 + $0x1f4] sm:$0xf]  ;;  %v2977_v38 = vor.u32 %v3391_v24, %v2976_v23  ;;  %v3037_v44 = vor.u32 %v3404_v31, %v3034_v32  ;;  %s2831_s8 = sshll.u32 %s4842_s7, 4  ;;  %s2832_s8 = int_to_ptr.hbm [resolvable:$true] %s2831_s8 }
  0x2e   :  { %690 = vmatpush.bf16.msra.mxu0 %v2865_v4  ;;  %v107_v29 = vld [vmem:[#allocation2 + $0x20] sm:$0xff]  ;;  %v104_v30 = vld [vmem:[#allocation2 + $0x8] sm:$0xff]  ;;  %v3098_v36 = vld [vmem:[#allocation5 + $0x1f8] sm:$0xf0]  ;;  %v3041_v42 = vor.u32 %v3407_v27, %v3040_v25 }
  0x2f   :  { %779 = vmatpush.bf16.msra.mxu1 %v2929_v5  ;;  %v108_v34 = vld [vmem:[#allocation2 + $0x28] sm:$0xff]  ;;  %v105_v39 = vld [vmem:[#allocation2 + $0x10] sm:$0xff]  ;;  %v106_v41 = vld [vmem:[#allocation2 + $0x18] sm:$0xff]  ;;  %v4107_v47 = vpack.c.bf16 %v107_v29, %v103_v28  ;;  %v3101_v48 = vor.u32 %v3420_v35, %v3098_v36 }
  0x30   :  { %868 = vmatpush.bf16.msra.mxu2 %v2993_v6  ;;  %v109_v40 = vld [vmem:[#allocation2 + $0x30] sm:$0xff]  ;;  %v110_v43 = vld [vmem:[#allocation2 + $0x38] sm:$0xff]  ;;  %v4109_v51 = vpack.c.bf16 %v108_v34, %v104_v30  ;;  %v3402_v56 = vld [vmem:[#allocation5 + $0x164] sm:$0xf] }
  0x31   :  { %957 = vmatpush.bf16.msra.mxu3 %v3057_v10  ;;  %v3372_v45 = vld [vmem:[#allocation5 + $0x74] sm:$0xf]  ;;  %v2906_v46 = vld [vmem:[#allocation5 + $0x78] sm:$0xf0]  ;;  %v4111_v52 = vpack.c.bf16 %v109_v40, %v105_v39  ;;  %v4113_v53 = vpack.c.bf16 %v110_v43, %v106_v41  ;;  %v3026_v57 = vld [vmem:[#allocation5 + $0x168] sm:$0xf0] }
  0x32   :  { %691 = vmatpush.bf16.msra.mxu0 %v2857_v17  ;;  %v3388_v49 = vld [vmem:[#allocation5 + $0xf4] sm:$0xf]  ;;  %v2970_v50 = vld [vmem:[#allocation5 + $0xf8] sm:$0xf0]  ;;  %v2909_v54 = vor.u32 %v3372_v45, %v2906_v46  ;;  %v3418_v58 = vld [vmem:[#allocation5 + $0x1e4] sm:$0xf]  ;;  %v3029_v59 = vor.u32 %v3402_v56, %v3026_v57 }
  0x33   :  { %780 = vmatpush.bf16.msra.mxu1 %v2921_v21  ;;  %v2973_v55 = vor.u32 %v3388_v49, %v2970_v50  ;;  %v3090_v60 = vld [vmem:[#allocation5 + $0x1e8] sm:$0xf0]  ;;  %v3370_v61 = vld [vmem:[#allocation5 + $0x64] sm:$0xf]  ;;  %v113_v8 = vld [vmem:[#allocation2 + $0x50] sm:$0xff] }
  0x34   :  { %869 = vmatpush.bf16.msra.mxu2 %v2985_v22  ;;  %v2898_v62 = vld [vmem:[#allocation5 + $0x68] sm:$0xf0]  ;;  %v3093_v63 = vor.u32 %v3418_v58, %v3090_v60  ;;  %v3386_v1 = vld [vmem:[#allocation5 + $0xe4] sm:$0xf]  ;;  %v117_v9 = vld [vmem:[#allocation2 + $0x70] sm:$0xff] }
  0x35   :  { %958 = vmatpush.bf16.msra.mxu3 %v3049_v26  ;;  %v2901_v0 = vor.u32 %v3370_v61, %v2898_v62  ;;  %v2962_v2 = vld [vmem:[#allocation5 + $0xe8] sm:$0xf0]  ;;  %v111_v4 = vld [vmem:[#allocation2 + $0x40] sm:$0xff]  ;;  %v114_v10 = vld [vmem:[#allocation2 + $0x58] sm:$0xff]  ;;  %v4123_v14 = vpack.c.bf16 %v117_v9, %v113_v8 }
  0x36   :  { %692 = vmatpush.bf16.msra.mxu0 %v2849_v33  ;;  %v2965_v3 = vor.u32 %v3386_v1, %v2962_v2  ;;  %v115_v5 = vld [vmem:[#allocation2 + $0x60] sm:$0xff]  ;;  %v112_v6 = vld [vmem:[#allocation2 + $0x48] sm:$0xff]  ;;  %v118_v11 = vld [vmem:[#allocation2 + $0x78] sm:$0xff] }
  0x37   :  { %781 = vmatpush.bf16.msra.mxu1 %v2913_v37  ;;  %v116_v7 = vld [vmem:[#allocation2 + $0x68] sm:$0xff]  ;;  %v4119_v12 = vpack.c.bf16 %v115_v5, %v111_v4  ;;  %v4125_v15 = vpack.c.bf16 %v118_v11, %v114_v10  ;;  %v119_v16 = vld [vmem:[#allocation2 + $0x80] sm:$0xff]  ;;  %v121_v20 = vld [vmem:[#allocation2 + $0x90] sm:$0xff] }
  0x38   :  { %870 = vmatpush.bf16.msra.mxu2 %v2977_v38  ;;  %v4121_v13 = vpack.c.bf16 %v116_v7, %v112_v6  ;;  %v123_v17 = vld [vmem:[#allocation2 + $0xa0] sm:$0xff]  ;;  %v120_v18 = vld [vmem:[#allocation2 + $0x88] sm:$0xff]  ;;  %v125_v21 = vld [vmem:[#allocation2 + $0xb0] sm:$0xff] }
  0x39   :  { %959 = vmatpush.bf16.msra.mxu3 %v3041_v42  ;;  %693 = vmatmul.bf16.vlgmr.msra.gmra.mxu0 %v4107_v47  ;;  %v124_v19 = vld [vmem:[#allocation2 + $0xa8] sm:$0xff]  ;;  %v122_v22 = vld [vmem:[#allocation2 + $0x98] sm:$0xff]  ;;  %v4131_v24 = vpack.c.bf16 %v123_v17, %v119_v16  ;;  %v4135_v26 = vpack.c.bf16 %v125_v21, %v121_v20  ;;  %v3400_v28 = vld [vmem:[#allocation5 + $0x154] sm:$0xf] }
  0x3a   :  { %782 = vmatmul.bf16.vlgmr.msra.gmra.mxu1 %v4109_v51  ;;  %1041 = vmatpush.bf16.msrb.mxu0 %v2909_v54  ;;  %v126_v23 = vld [vmem:[#allocation2 + $0xb8] sm:$0xff]  ;;  %v4133_v25 = vpack.c.bf16 %v124_v19, %v120_v18  ;;  %v3416_v30 = vld [vmem:[#allocation5 + $0x1d4] sm:$0xf]  ;;  %v127_v40 = vld [vmem:[#allocation2 + $0xc0] sm:$0xff] }
  0x3b   :  { %871 = vmatmul.bf16.vlgmr.msra.gmra.mxu2 %v4111_v52  ;;  %1130 = vmatpush.bf16.msrb.mxu1 %v2973_v55  ;;  %v4137_v27 = vpack.c.bf16 %v126_v23, %v122_v22  ;;  %v3018_v29 = vld [vmem:[#allocation5 + $0x158] sm:$0xf0]  ;;  %v3368_v33 = vld [vmem:[#allocation5 + $0x54] sm:$0xf]  ;;  %v131_v41 = vld [vmem:[#allocation2 + $0xe0] sm:$0xff] }
  0x3c   :  { %1219 = vmatpush.bf16.msrb.mxu2 %v3037_v44  ;;  %960 = vmatmul.bf16.vlgmr.msra.gmra.mxu3 %v4113_v53  ;;  %v3021_v31 = vor.u32 %v3400_v28, %v3018_v29  ;;  %v3082_v32 = vld [vmem:[#allocation5 + $0x1d8] sm:$0xf0]  ;;  %v3384_v37 = vld [vmem:[#allocation5 + $0xd4] sm:$0xf]  ;;  %v128_v42 = vld [vmem:[#allocation2 + $0xc8] sm:$0xff]  ;;  %v4143_v49 = vpack.c.bf16 %v131_v41, %v127_v40 }
  0x3d   :  { %1308 = vmatpush.bf16.msrb.mxu3 %v3101_v48  ;;  %v2890_v34 = vld [vmem:[#allocation5 + $0x58] sm:$0xf0]  ;;  %v3085_v35 = vor.u32 %v3416_v30, %v3082_v32  ;;  %v132_v43 = vld [vmem:[#allocation2 + $0xe8] sm:$0xff]  ;;  %v129_v44 = vld [vmem:[#allocation2 + $0xd0] sm:$0xff] }
  0x3e   :  { %1042 = vmatpush.bf16.msrb.mxu0 %v2901_v0  ;;  %v2893_v36 = vor.u32 %v3368_v33, %v2890_v34  ;;  %v2954_v38 = vld [vmem:[#allocation5 + $0xd8] sm:$0xf0]  ;;  %v133_v45 = vld [vmem:[#allocation2 + $0xf0] sm:$0xff]  ;;  %v4145_v50 = vpack.c.bf16 %v132_v43, %v128_v42  ;;  %v135_v56 = vld [vmem:[#allocation2 + $0x100] sm:$0xff] }
  0x3f   :  { %1131 = vmatpush.bf16.msrb.mxu1 %v2965_v3  ;;  %v2957_v39 = vor.u32 %v3384_v37, %v2954_v38  ;;  %v130_v46 = vld [vmem:[#allocation2 + $0xd8] sm:$0xff]  ;;  %v4147_v54 = vpack.c.bf16 %v133_v45, %v129_v44  ;;  %v139_v57 = vld [vmem:[#allocation2 + $0x120] sm:$0xff]  ;;  %v136_v58 = vld [vmem:[#allocation2 + $0x108] sm:$0xff] }
  0x40   :  { %1220 = vmatpush.bf16.msrb.mxu2 %v3029_v59  ;;  %v134_v48 = vld [vmem:[#allocation2 + $0xf8] sm:$0xff]  ;;  %v140_v59 = vld [vmem:[#allocation2 + $0x128] sm:$0xff]  ;;  %v137_v60 = vld [vmem:[#allocation2 + $0x110] sm:$0xff]  ;;  %v4155_v0 = vpack.c.bf16 %v139_v57, %v135_v56 }
  0x41   :  { %1309 = vmatpush.bf16.msrb.mxu3 %v3093_v63  ;;  %v4149_v55 = vpack.c.bf16 %v134_v48, %v130_v46  ;;  %v141_v61 = vld [vmem:[#allocation2 + $0x130] sm:$0xff]  ;;  %v138_v62 = vld [vmem:[#allocation2 + $0x118] sm:$0xff]  ;;  %v4157_v1 = vpack.c.bf16 %v140_v59, %v136_v58  ;;  %v3398_v4 = vld [vmem:[#allocation5 + $0x144] sm:$0xf] }
  0x42   :  { %1043 = vmatpush.bf16.msrb.mxu0 %v2893_v36  ;;  %v142_v63 = vld [vmem:[#allocation2 + $0x138] sm:$0xff]  ;;  %v4159_v2 = vpack.c.bf16 %v141_v61, %v137_v60  ;;  %v3010_v5 = vld [vmem:[#allocation5 + $0x148] sm:$0xf0]  ;;  %v3414_v6 = vld [vmem:[#allocation5 + $0x1c4] sm:$0xf] }
  0x43   :  { %1132 = vmatpush.bf16.msrb.mxu1 %v2957_v39  ;;  %v4161_v3 = vpack.c.bf16 %v142_v63, %v138_v62  ;;  %v3013_v7 = vor.u32 %v3398_v4, %v3010_v5  ;;  %v3074_v8 = vld [vmem:[#allocation5 + $0x1c8] sm:$0xf0]  ;;  %v3366_v9 = vld [vmem:[#allocation5 + $0x44] sm:$0xf]  ;;  %v145_v28 = vld [vmem:[#allocation2 + $0x150] sm:$0xff] }
  0x44   :  { %1221 = vmatpush.bf16.msrb.mxu2 %v3021_v31  ;;  %v2882_v10 = vld [vmem:[#allocation5 + $0x48] sm:$0xf0]  ;;  %v3077_v11 = vor.u32 %v3414_v6, %v3074_v8  ;;  %v3382_v17 = vld [vmem:[#allocation5 + $0xc4] sm:$0xf]  ;;  %v149_v29 = vld [vmem:[#allocation2 + $0x170] sm:$0xff] }
  0x45   :  { %1310 = vmatpush.bf16.msrb.mxu3 %v3085_v35  ;;  %v2885_v16 = vor.u32 %v3366_v9, %v2882_v10  ;;  %v2946_v18 = vld [vmem:[#allocation5 + $0xc8] sm:$0xf0]  ;;  %v143_v20 = vld [vmem:[#allocation2 + $0x140] sm:$0xff]  ;;  %v146_v30 = vld [vmem:[#allocation2 + $0x158] sm:$0xff]  ;;  %v4171_v34 = vpack.c.bf16 %v149_v29, %v145_v28 }
  0x46   :  { %v2949_v19 = vor.u32 %v3382_v17, %v2946_v18  ;;  %v147_v21 = vld [vmem:[#allocation2 + $0x160] sm:$0xff]  ;;  %v144_v22 = vld [vmem:[#allocation2 + $0x148] sm:$0xff]  ;;  %v150_v31 = vld [vmem:[#allocation2 + $0x178] sm:$0xff] }
  0x47   :  { %1044 = vmatpush.bf16.msrb.mxu0 %v2885_v16  ;;  %v148_v23 = vld [vmem:[#allocation2 + $0x168] sm:$0xff]  ;;  %v4167_v32 = vpack.c.bf16 %v147_v21, %v143_v20  ;;  %v4173_v35 = vpack.c.bf16 %v150_v31, %v146_v30  ;;  %v151_v36 = vld [vmem:[#allocation2 + $0x180] sm:$0xff]  ;;  %v153_v40 = vld [vmem:[#allocation2 + $0x190] sm:$0xff] }
  0x48   :  { %1222 = vmatpush.bf16.msrb.mxu2 %v3013_v7  ;;  %1133 = vmatpush.bf16.msrb.mxu1 %v2949_v19  ;;  %v4169_v33 = vpack.c.bf16 %v148_v23, %v144_v22  ;;  %v155_v37 = vld [vmem:[#allocation2 + $0x1a0] sm:$0xff]  ;;  %v152_v38 = vld [vmem:[#allocation2 + $0x188] sm:$0xff]  ;;  %v157_v41 = vld [vmem:[#allocation2 + $0x1b0] sm:$0xff] }
  0x49   :  { %698 = vmatmul.bf16.gmra.mxu0 %v4119_v12  ;;  %1311 = vmatpush.bf16.msrb.mxu3 %v3077_v11  ;;  %v156_v39 = vld [vmem:[#allocation2 + $0x1a8] sm:$0xff]  ;;  %v154_v42 = vld [vmem:[#allocation2 + $0x198] sm:$0xff]  ;;  %v4179_v44 = vpack.c.bf16 %v155_v37, %v151_v36  ;;  %v4183_v46 = vpack.c.bf16 %v157_v41, %v153_v40  ;;  %v3396_v56 = vld [vmem:[#allocation5 + $0x134] sm:$0xf] }
  0x4a   :  { %787 = vmatmul.bf16.gmra.mxu1 %v4121_v13  ;;  %v158_v43 = vld [vmem:[#allocation2 + $0x1b8] sm:$0xff]  ;;  %v4181_v45 = vpack.c.bf16 %v156_v39, %v152_v38  ;;  %v3412_v58 = vld [vmem:[#allocation5 + $0x1b4] sm:$0xf]  ;;  %v159_v62 = vld [vmem:[#allocation2 + $0x1c0] sm:$0xff] }
  0x4b   :  { %876 = vmatmul.bf16.gmra.mxu2 %v4123_v14  ;;  %v4185_v48 = vpack.c.bf16 %v158_v43, %v154_v42  ;;  %v3002_v57 = vld [vmem:[#allocation5 + $0x138] sm:$0xf0]  ;;  %v163_v63 = vld [vmem:[#allocation2 + $0x1e0] sm:$0xff]  ;;  %v160_v4 = vld [vmem:[#allocation2 + $0x1c8] sm:$0xff] }
  0x4c   :  { %965 = vmatmul.bf16.gmra.mxu3 %v4125_v15  ;;  %v3005_v59 = vor.u32 %v3396_v56, %v3002_v57  ;;  %v3066_v60 = vld [vmem:[#allocation5 + $0x1b8] sm:$0xf0]  ;;  %v164_v5 = vld [vmem:[#allocation2 + $0x1e8] sm:$0xff]  ;;  %v3364_v6 = vld [vmem:[#allocation5 + $0x34] sm:$0xf]  ;;  %v4191_v20 = vpack.c.bf16 %v163_v63, %v159_v62 }
  0x4d   :  { %v3069_v61 = vor.u32 %v3412_v58, %v3066_v60  ;;  %v2874_v7 = vld [vmem:[#allocation5 + $0x38] sm:$0xf0]  ;;  %v3380_v8 = vld [vmem:[#allocation5 + $0xb4] sm:$0xf]  ;;  %v4193_v21 = vpack.c.bf16 %v164_v5, %v160_v4  ;;  %v359_v28 = vld [vmem:[#allocation7] sm:$0x3] }
  0x4e   :  { %1223 = vmatpush.bf16.msrb.mxu2 %v3005_v59  ;;  %v161_v9 = vld [vmem:[#allocation2 + $0x1d0] sm:$0xff]  ;;  %v2877_v11 = vor.u32 %v3364_v6, %v2874_v7  ;;  %v2938_v16 = vld [vmem:[#allocation5 + $0xb8] sm:$0xf0]  ;;  %v167_v29 = vld [vmem:[#allocation2 + $0x200] sm:$0xff]  ;;  %v4203_v36 = vperm.slane %v359_v28, 0 }
  0x4f   :  { %1312 = vmatpush.bf16.msrb.mxu3 %v3069_v61  ;;  %v165_v10 = vld [vmem:[#allocation2 + $0x1f0] sm:$0xff]  ;;  %v162_v17 = vld [vmem:[#allocation2 + $0x1d8] sm:$0xff]  ;;  %v2941_v19 = vor.u32 %v3380_v8, %v2938_v16  ;;  %v171_v30 = vld [vmem:[#allocation2 + $0x220] sm:$0xff] }
  0x50   :  { %v166_v18 = vld [vmem:[#allocation2 + $0x1f8] sm:$0xff]  ;;  %1045 = vmatpush.bf16.msrb.mxu0 %v2877_v11  ;;  %v4195_v22 = vpack.c.bf16 %v165_v10, %v161_v9  ;;  %v168_v31 = vld [vmem:[#allocation2 + $0x208] sm:$0xff]  ;;  %v169_v38 = vld [vmem:[#allocation2 + $0x210] sm:$0xff]  ;;  %v4205_v42 = vpack.c.bf16 %v171_v30, %v167_v29 }
  0x51   :  { %1134 = vmatpush.bf16.msrb.mxu1 %v2941_v19  ;;  %v4197_v23 = vpack.c.bf16 %v166_v18, %v162_v17  ;;  %v172_v37 = vld [vmem:[#allocation2 + $0x228] sm:$0xff]  ;;  %v173_v39 = vld [vmem:[#allocation2 + $0x230] sm:$0xff]  ;;  %v170_v40 = vld [vmem:[#allocation2 + $0x218] sm:$0xff] }
  0x52   :  { %v174_v41 = vld [vmem:[#allocation2 + $0x238] sm:$0xff]  ;;  %v4207_v56 = vpack.c.bf16 %v172_v37, %v168_v31  ;;  %v4209_v57 = vpack.c.bf16 %v173_v39, %v169_v38  ;;  %v3394_v62 = vld [vmem:[#allocation5 + $0x124] sm:$0xf]  ;;  %v2994_v63 = vld [vmem:[#allocation5 + $0x128] sm:$0xf0] }
  0x53   :  { %v4212_v60 = vpack.c.bf16 %v174_v41, %v170_v40  ;;  %v3410_v4 = vld [vmem:[#allocation5 + $0x1a4] sm:$0xf]  ;;  %v2997_v5 = vor.u32 %v3394_v62, %v2994_v63  ;;  %v3058_v6 = vld [vmem:[#allocation5 + $0x1a8] sm:$0xf0]  ;;  %v177_v40 = vld [vmem:[#allocation2 + $0x250] sm:$0xff] }
  0x54   :  { %v3061_v8 = vor.u32 %v3410_v4, %v3058_v6  ;;  %v175_v19 = vld [vmem:[#allocation2 + $0x240] sm:$0xff]  ;;  %v176_v30 = vld [vmem:[#allocation2 + $0x248] sm:$0xff]  ;;  %v181_v41 = vld [vmem:[#allocation2 + $0x270] sm:$0xff] }
  0x55   :  { %1224 = vmatpush.bf16.msrb.mxu2 %v2997_v5  ;;  %v179_v29 = vld [vmem:[#allocation2 + $0x260] sm:$0xff]  ;;  %v180_v31 = vld [vmem:[#allocation2 + $0x268] sm:$0xff] }
  0x56   :  { %1313 = vmatpush.bf16.msrb.mxu3 %v3061_v8  ;;  %v3362_v37 = vld [vmem:[#allocation5 + $0x24] sm:$0xf]  ;;  %v2866_v38 = vld [vmem:[#allocation5 + $0x28] sm:$0xf0]  ;;  %v4219_v4 = vpack.c.bf16 %v179_v29, %v175_v19  ;;  %v4221_v8 = vpack.c.bf16 %v180_v31, %v176_v30 }
  0x57   :  { %v3378_v39 = vld [vmem:[#allocation5 + $0xa4] sm:$0xf] }
  0x59   :  { %703 = vmatmul.bf16.gmra.mxu0 %v4131_v24 }
  0x5a   :  { %792 = vmatmul.bf16.gmra.mxu1 %v4133_v25 }
  0x5b   :  { %881 = vmatmul.bf16.gmra.mxu2 %v4135_v26 }
  0x5c   :  { %970 = vmatmul.bf16.gmra.mxu3 %v4137_v27 }
  0x69   :  { %708 = vmatmul.bf16.gmra.mxu0 %v4143_v49 }
  0x6a   :  { %797 = vmatmul.bf16.gmra.mxu1 %v4145_v50 }
  0x6b   :  { %886 = vmatmul.bf16.gmra.mxu2 %v4147_v54 }
  0x6c   :  { %975 = vmatmul.bf16.gmra.mxu3 %v4149_v55 }
  0x79   :  { %713 = vmatmul.bf16.gmra.mxu0 %v4155_v0 }
  0x7a   :  { %802 = vmatmul.bf16.gmra.mxu1 %v4157_v1 }
  0x7b   :  { %891 = vmatmul.bf16.gmra.mxu2 %v4159_v2 }
  0x7c   :  { %980 = vmatmul.bf16.gmra.mxu3 %v4161_v3 }
  0x89   :  { %718 = vmatmul.bf16.gmra.mxu0 %v4167_v32 }
  0x8a   :  { %807 = vmatmul.bf16.gmra.mxu1 %v4169_v33 }
  0x8b   :  { %896 = vmatmul.bf16.gmra.mxu2 %v4171_v34 }
  0x8c   :  { %985 = vmatmul.bf16.gmra.mxu3 %v4173_v35 }
  0x99   :  { %723 = vmatmul.bf16.gmra.mxu0 %v4179_v44 }
  0x9a   :  { %812 = vmatmul.bf16.gmra.mxu1 %v4181_v45 }
  0x9b   :  { %901 = vmatmul.bf16.gmra.mxu2 %v4183_v46 }
  0x9c   :  { %990 = vmatmul.bf16.gmra.mxu3 %v4185_v48 }
  0xa9   :  { %728 = vmatmul.bf16.gmra.mxu0 %v4191_v20 }
  0xaa   :  { %817 = vmatmul.bf16.gmra.mxu1 %v4193_v21 }
  0xab   :  { %906 = vmatmul.bf16.gmra.mxu2 %v4195_v22 }
  0xac   :  { %995 = vmatmul.bf16.gmra.mxu3 %v4197_v23 }
  0xb6   :  { %v694_v43 = vpop.f32.mrf.mxu0 }
  0xb7   :  { %v695_v58 = vadd.f32 %v694_v43, %v4203_v36  ;;  %v783_v59 = vpop.f32.mrf.mxu1  ;;  %v2869_v43 = vor.u32 %v3362_v37, %v2866_v38 }
  0xb9   :  { %v784_v61 = vadd.f32 %v783_v59, %v695_v58  ;;  %733 = vmatmul.bf16.gmra.mxu0 %v4205_v42  ;;  %v2930_v58 = vld [vmem:[#allocation5 + $0xa8] sm:$0xf0]  ;;  %v178_v59 = vld [vmem:[#allocation2 + $0x258] sm:$0xff] }
  0xba   :  { %822 = vmatmul.bf16.gmra.mxu1 %v4207_v56  ;;  %v2933_v62 = vor.u32 %v3378_v39, %v2930_v58  ;;  %1046 = vmatpush.bf16.msrb.mxu0 %v2869_v43  ;;  %v183_v58 = vld [vmem:[#allocation2 + $0x280] sm:$0xff] }
  0xbb   :  { %911 = vmatmul.bf16.gmra.mxu2 %v4209_v57 }
  0xbc   :  { %1000 = vmatmul.bf16.gmra.mxu3 %v4212_v60  ;;  %1135 = vmatpush.bf16.msrb.mxu1 %v2933_v62  ;;  %v188_v62 = vld [vmem:[#allocation2 + $0x2a8] sm:$0xff] }
  0xbe   :  { %v872_v7 = vpop.f32.mrf.mxu2  ;;  %v696_v11 = vpop.f32.mrf.mxu0 }
  0xbf   :  { %v873_v9 = vadd.f32 %v872_v7, %v784_v61  ;;  %v961_v10 = vpop.f32.mrf.mxu3  ;;  %v697_v16 = vadd.f32 %v696_v11, %v4203_v36  ;;  %v785_v17 = vpop.f32.mrf.mxu1  ;;  %v182_v61 = vld [vmem:[#allocation2 + $0x278] sm:$0xff] }
  0xc1   :  { %v962_v18 = vadd.f32 %v961_v10, %v873_v9  ;;  %v786_v28 = vadd.f32 %v785_v17, %v697_v16  ;;  %v4223_v9 = vpack.c.bf16 %v181_v41, %v177_v40  ;;  %v4226_v16 = vpack.c.bf16 %v182_v61, %v178_v59  ;;  %v187_v59 = vld [vmem:[#allocation2 + $0x2a0] sm:$0xff]  ;;  %v184_v61 = vld [vmem:[#allocation2 + $0x288] sm:$0xff] }
  0xc3   :  { %4871 = vst [vmem:[#allocation16_spill] sm:$0xff] %v4223_v9  ;;  %3496 = vtanh.f32 %v962_v18 }
  0xc4   :  { %4872 = vst [vmem:[#allocation17_spill] sm:$0xff] %v4226_v16 }
  0xc6   :  { %v874_v63 = vpop.f32.mrf.mxu2  ;;  %v699_v7 = vpop.f32.mrf.mxu0 }
  0xc7   :  { %v875_v5 = vadd.f32 %v874_v63, %v786_v28  ;;  %v963_v6 = vpop.f32.mrf.mxu3  ;;  %v700_v10 = vadd.f32 %v699_v7, %v4203_v36  ;;  %v788_v11 = vpop.f32.mrf.mxu1  ;;  %v185_v63 = vld [vmem:[#allocation2 + $0x290] sm:$0xff]  ;;  %v190_v7 = vld [vmem:[#allocation2 + $0x2b8] sm:$0xff] }
  0xc9   :  { %v964_v17 = vadd.f32 %v963_v6, %v875_v5  ;;  %v789_v37 = vadd.f32 %v788_v11, %v700_v10  ;;  %738 = vmatmul.bf16.gmra.mxu0 %v4219_v4  ;;  %v3497_v31 = vpop.eup %3496  ;;  %v189_v5 = vld [vmem:[#allocation2 + $0x2b0] sm:$0xff]  ;;  %v186_v6 = vld [vmem:[#allocation2 + $0x298] sm:$0xff]  ;;  %v4235_v11 = vpack.c.bf16 %v187_v59, %v183_v58 }
  0xca   :  { %827 = vmatmul.bf16.gmra.mxu1 %v4221_v8  ;;  %v2986_v58 = vld [vmem:[#allocation5 + $0x118] sm:$0xf0]  ;;  %v3408_v59 = vld [vmem:[#allocation5 + $0x194] sm:$0xf] }
  0xcb   :  { %3498 = vtanh.f32 %v964_v17  ;;  %916 = vmatmul.bf16.gmra.mxu2 %v4223_v9  ;;  %4874 = vst [vmem:[#allocation19_spill] sm:$0xff] %v4235_v11 }
  0xcc   :  { %1005 = vmatmul.bf16.gmra.mxu3 %v4226_v16 }
  0xce   :  { %v877_v19 = vpop.f32.mrf.mxu2  ;;  %v701_v30 = vpop.f32.mrf.mxu0 }
  0xcf   :  { %v878_v28 = vadd.f32 %v877_v19, %v789_v37  ;;  %v966_v29 = vpop.f32.mrf.mxu3  ;;  %v702_v38 = vadd.f32 %v701_v30, %v4203_v36  ;;  %v790_v39 = vpop.f32.mrf.mxu1  ;;  %v4237_v30 = vpack.c.bf16 %v188_v62, %v184_v61  ;;  %v3050_v62 = vld [vmem:[#allocation5 + $0x198] sm:$0xf0] }
  0xd1   :  { %v3499_v40 = vpop.eup %3498  ;;  %v967_v18 = vadd.f32 %v966_v29, %v878_v28  ;;  %v791_v43 = vadd.f32 %v790_v39, %v702_v38  ;;  %4875 = vst [vmem:[#allocation20_spill] sm:$0xff] %v4237_v30  ;;  %v4239_v28 = vpack.c.bf16 %v189_v5, %v185_v63  ;;  %v4242_v38 = vpack.c.bf16 %v190_v7, %v186_v6 }
  0xd2   :  { %v4233_v41 = vpack.c.bf16 %v3499_v40, %v3497_v31  ;;  %v3053_v5 = vor.u32 %v3408_v59, %v3050_v62  ;;  %v2858_v59 = vld [vmem:[#allocation5 + $0x18] sm:$0xf0]  ;;  %v193_v62 = vld [vmem:[#allocation2 + $0x2d0] sm:$0xff] }
  0xd3   :  { %4876 = vst [vmem:[#allocation21_spill] sm:$0xff] %v4239_v28  ;;  %3500 = vtanh.f32 %v967_v18 }
  0xd4   :  { %4873 = vst [vmem:[#allocation18_spill] sm:$0xff] %v4233_v41  ;;  %1314 = vmatpush.bf16.msrb.mxu3 %v3053_v5  ;;  %v195_v41 = vld [vmem:[#allocation2 + $0x2e0] sm:$0xff] }
  0xd5   :  { %4877 = vst [vmem:[#allocation22_spill] sm:$0xff] %v4242_v38 }
  0xd6   :  { %v879_v10 = vpop.f32.mrf.mxu2  ;;  %v704_v19 = vpop.f32.mrf.mxu0 }
  0xd7   :  { %v880_v17 = vadd.f32 %v879_v10, %v791_v43  ;;  %v968_v37 = vpop.f32.mrf.mxu3  ;;  %v705_v29 = vadd.f32 %v704_v19, %v4203_v36  ;;  %v793_v31 = vpop.f32.mrf.mxu1  ;;  %v3392_v43 = vld [vmem:[#allocation5 + $0x114] sm:$0xf] }
  0xd8   :  { %v2989_v61 = vor.u32 %v3392_v43, %v2986_v58  ;;  %v3360_v58 = vld [vmem:[#allocation5 + $0x14] sm:$0xf] }
  0xd9   :  { %v969_v39 = vadd.f32 %v968_v37, %v880_v17  ;;  %v794_v40 = vadd.f32 %v793_v31, %v705_v29  ;;  %743 = vmatmul.bf16.gmra.mxu0 %v4235_v11  ;;  %v3501_v10 = vpop.eup %3500  ;;  %v191_v31 = vld [vmem:[#allocation2 + $0x2c0] sm:$0xff]  ;;  %v194_v11 = vld [vmem:[#allocation2 + $0x2d8] sm:$0xff] }
  0xda   :  { %832 = vmatmul.bf16.gmra.mxu1 %v4237_v30  ;;  %1225 = vmatpush.bf16.msrb.mxu2 %v2989_v61  ;;  %v2861_v61 = vor.u32 %v3360_v58, %v2858_v59  ;;  %v2922_v30 = vld [vmem:[#allocation5 + $0x98] sm:$0xf0]  ;;  %v4251_v9 = vpack.c.bf16 %v195_v41, %v191_v31 }
  0xdb   :  { %3502 = vtanh.f32 %v969_v39  ;;  %921 = vmatmul.bf16.gmra.mxu2 %v4239_v28  ;;  %v196_v28 = vld [vmem:[#allocation2 + $0x2e8] sm:$0xff] }
  0xdc   :  { %1010 = vmatmul.bf16.gmra.mxu3 %v4242_v38  ;;  %v192_v38 = vld [vmem:[#allocation2 + $0x2c8] sm:$0xff]  ;;  %4879 = vst [vmem:[#allocation24_spill] sm:$0xff] %v4251_v9  ;;  %1047 = vmatpush.bf16.msrb.mxu0 %v2861_v61  ;;  %v203_v61 = vld [vmem:[#allocation2 + $0x320] sm:$0xff] }
  0xde   :  { %v882_v63 = vpop.f32.mrf.mxu2  ;;  %v706_v18 = vpop.f32.mrf.mxu0 }
  0xdf   :  { %v883_v6 = vadd.f32 %v882_v63, %v794_v40  ;;  %v971_v7 = vpop.f32.mrf.mxu3  ;;  %v707_v17 = vadd.f32 %v706_v18, %v4203_v36  ;;  %v795_v37 = vpop.f32.mrf.mxu1  ;;  %v3376_v40 = vld [vmem:[#allocation5 + $0x94] sm:$0xf]  ;;  %v198_v18 = vld [vmem:[#allocation2 + $0x2f8] sm:$0xff] }
  0xe0   :  { %v197_v63 = vld [vmem:[#allocation2 + $0x2f0] sm:$0xff]  ;;  %v2925_v16 = vor.u32 %v3376_v40, %v2922_v30  ;;  %v4258_v58 = vpack.c.bf16 %v198_v18, %v194_v11  ;;  %v200_v18 = vld [vmem:[#allocation2 + $0x308] sm:$0xff] }
  0xe1   :  { %v3503_v19 = vpop.eup %3502  ;;  %v972_v29 = vadd.f32 %v971_v7, %v883_v6  ;;  %v796_v39 = vadd.f32 %v795_v37, %v707_v17  ;;  %v4253_v37 = vpack.c.bf16 %v196_v28, %v192_v38 }
  0xe2   :  { %v4249_v43 = vpack.c.bf16 %v3503_v19, %v3501_v10  ;;  %v4255_v10 = vpack.c.bf16 %v197_v63, %v193_v62  ;;  %1136 = vmatpush.bf16.msrb.mxu1 %v2925_v16  ;;  %4882 = vst [vmem:[#allocation27_spill] sm:$0xff] %v4258_v58  ;;  %v199_v63 = vld [vmem:[#allocation2 + $0x300] sm:$0xff] }
  0xe3   :  { %4880 = vst [vmem:[#allocation25_spill] sm:$0xff] %v4253_v37  ;;  %3504 = vtanh.f32 %v972_v29 }
  0xe4   :  { %4878 = vst [vmem:[#allocation23_spill] sm:$0xff] %v4249_v43 }
  0xe5   :  { %4881 = vst [vmem:[#allocation26_spill] sm:$0xff] %v4255_v10 }
  0xe6   :  { %v884_v5 = vpop.f32.mrf.mxu2  ;;  %v709_v17 = vpop.f32.mrf.mxu0 }
  0xe7   :  { %v885_v6 = vadd.f32 %v884_v5, %v796_v39  ;;  %v973_v7 = vpop.f32.mrf.mxu3  ;;  %v710_v19 = vadd.f32 %v709_v17, %v4203_v36  ;;  %v798_v43 = vpop.f32.mrf.mxu1  ;;  %v204_v5 = vld [vmem:[#allocation2 + $0x328] sm:$0xff]  ;;  %v202_v17 = vld [vmem:[#allocation2 + $0x318] sm:$0xff] }
  0xe9   :  { %v974_v59 = vadd.f32 %v973_v7, %v885_v6  ;;  %v799_v30 = vadd.f32 %v798_v43, %v710_v19  ;;  %748 = vmatmul.bf16.gmra.mxu0 %v4251_v9  ;;  %v3505_v31 = vpop.eup %3504  ;;  %v201_v6 = vld [vmem:[#allocation2 + $0x310] sm:$0xff]  ;;  %v206_v19 = vld [vmem:[#allocation2 + $0x338] sm:$0xff] }
  0xea   :  { %837 = vmatmul.bf16.gmra.mxu1 %v4253_v37  ;;  %v205_v7 = vld [vmem:[#allocation2 + $0x330] sm:$0xff] }
  0xeb   :  { %3506 = vtanh.f32 %v974_v59  ;;  %926 = vmatmul.bf16.gmra.mxu2 %v4255_v10  ;;  %v4269_v10 = vpack.c.bf16 %v204_v5, %v200_v18  ;;  %v3042_v5 = vld [vmem:[#allocation5 + $0x188] sm:$0xf0] }
  0xec   :  { %1015 = vmatmul.bf16.gmra.mxu3 %v4258_v58 }
  0xed   :  { %4885 = vst [vmem:[#allocation30_spill] sm:$0xff] %v4269_v10 }
  0xee   :  { %v887_v41 = vpop.f32.mrf.mxu2  ;;  %v711_v38 = vpop.f32.mrf.mxu0 }
  0xef   :  { %v888_v28 = vadd.f32 %v887_v41, %v799_v30  ;;  %v976_v16 = vpop.f32.mrf.mxu3  ;;  %v712_v11 = vadd.f32 %v711_v38, %v4203_v36  ;;  %v800_v39 = vpop.f32.mrf.mxu1  ;;  %v4267_v30 = vpack.c.bf16 %v203_v61, %v199_v63  ;;  %v2978_v63 = vld [vmem:[#allocation5 + $0x108] sm:$0xf0]  ;;  %v3406_v61 = vld [vmem:[#allocation5 + $0x184] sm:$0xf] }
  0xf1   :  { %v3507_v40 = vpop.eup %3506  ;;  %v977_v29 = vadd.f32 %v976_v16, %v888_v28  ;;  %v801_v43 = vadd.f32 %v800_v39, %v712_v11  ;;  %4884 = vst [vmem:[#allocation29_spill] sm:$0xff] %v4267_v30  ;;  %v4271_v28 = vpack.c.bf16 %v205_v7, %v201_v6  ;;  %v4274_v11 = vpack.c.bf16 %v206_v19, %v202_v17 }
  0xf2   :  { %v4265_v62 = vpack.c.bf16 %v3507_v40, %v3505_v31  ;;  %v3045_v7 = vor.u32 %v3406_v61, %v3042_v5  ;;  %v2850_v61 = vld [vmem:[#allocation5 + $0x8] sm:$0xf0]  ;;  %v209_v5 = vld [vmem:[#allocation2 + $0x350] sm:$0xff] }
  0xf3   :  { %4886 = vst [vmem:[#allocation31_spill] sm:$0xff] %v4271_v28  ;;  %3508 = vtanh.f32 %v977_v29 }
  0xf4   :  { %4883 = vst [vmem:[#allocation28_spill] sm:$0xff] %v4265_v62  ;;  %1315 = vmatpush.bf16.msrb.mxu3 %v3045_v7  ;;  %v211_v62 = vld [vmem:[#allocation2 + $0x360] sm:$0xff] }
  0xf5   :  { %4887 = vst [vmem:[#allocation32_spill] sm:$0xff] %v4274_v11 }
  0xf6   :  { %v889_v59 = vpop.f32.mrf.mxu2  ;;  %v714_v38 = vpop.f32.mrf.mxu0 }
  0xf7   :  { %v890_v41 = vadd.f32 %v889_v59, %v801_v43  ;;  %v978_v58 = vpop.f32.mrf.mxu3  ;;  %v715_v16 = vadd.f32 %v714_v38, %v4203_v36  ;;  %v803_v31 = vpop.f32.mrf.mxu1  ;;  %v3390_v43 = vld [vmem:[#allocation5 + $0x104] sm:$0xf] }
  0xf8   :  { %v2981_v18 = vor.u32 %v3390_v43, %v2978_v63  ;;  %v3358_v63 = vld [vmem:[#allocation5 + $0x4] sm:$0xf] }
  0xf9   :  { %v979_v39 = vadd.f32 %v978_v58, %v890_v41  ;;  %v804_v40 = vadd.f32 %v803_v31, %v715_v16  ;;  %753 = vmatmul.bf16.gmra.mxu0 %v4267_v30  ;;  %v3509_v19 = vpop.eup %3508  ;;  %v207_v31 = vld [vmem:[#allocation2 + $0x340] sm:$0xff]  ;;  %v210_v30 = vld [vmem:[#allocation2 + $0x358] sm:$0xff] }
  0xfa   :  { %842 = vmatmul.bf16.gmra.mxu1 %v4269_v10  ;;  %1226 = vmatpush.bf16.msrb.mxu2 %v2981_v18  ;;  %v2853_v18 = vor.u32 %v3358_v63, %v2850_v61  ;;  %v2914_v10 = vld [vmem:[#allocation5 + $0x88] sm:$0xf0]  ;;  %v4283_v9 = vpack.c.bf16 %v211_v62, %v207_v31 }
  0xfb   :  { %3510 = vtanh.f32 %v979_v39  ;;  %931 = vmatmul.bf16.gmra.mxu2 %v4271_v28  ;;  %v212_v28 = vld [vmem:[#allocation2 + $0x368] sm:$0xff] }
  0xfc   :  { %1020 = vmatmul.bf16.gmra.mxu3 %v4274_v11  ;;  %v208_v11 = vld [vmem:[#allocation2 + $0x348] sm:$0xff]  ;;  %4889 = vst [vmem:[#allocation34_spill] sm:$0xff] %v4283_v9  ;;  %1048 = vmatpush.bf16.msrb.mxu0 %v2853_v18  ;;  %v219_v18 = vld [vmem:[#allocation2 + $0x3a0] sm:$0xff] }
  0xfe   :  { %v892_v6 = vpop.f32.mrf.mxu2  ;;  %v716_v29 = vpop.f32.mrf.mxu0 }
  0xff   :  { %v893_v17 = vadd.f32 %v892_v6, %v804_v40  ;;  %v981_v58 = vpop.f32.mrf.mxu3  ;;  %v717_v59 = vadd.f32 %v716_v29, %v4203_v36  ;;  %v805_v41 = vpop.f32.mrf.mxu1  ;;  %v3374_v40 = vld [vmem:[#allocation5 + $0x84] sm:$0xf]  ;;  %v213_v6 = vld [vmem:[#allocation2 + $0x370] sm:$0xff]  ;;  %v214_v29 = vld [vmem:[#allocation2 + $0x378] sm:$0xff] }
 0x100   :  { %v2917_v37 = vor.u32 %v3374_v40, %v2914_v10  ;;  %v4290_v63 = vpack.c.bf16 %v214_v29, %v210_v30  ;;  %v216_v29 = vld [vmem:[#allocation2 + $0x388] sm:$0xff] }
 0x101   :  { %v3511_v38 = vpop.eup %3510  ;;  %v982_v16 = vadd.f32 %v981_v58, %v893_v17  ;;  %v806_v39 = vadd.f32 %v805_v41, %v717_v59  ;;  %v4285_v41 = vpack.c.bf16 %v212_v28, %v208_v11 }
 0x102   :  { %v4281_v43 = vpack.c.bf16 %v3511_v38, %v3509_v19  ;;  %v4287_v19 = vpack.c.bf16 %v213_v6, %v209_v5  ;;  %1137 = vmatpush.bf16.msrb.mxu1 %v2917_v37  ;;  %4892 = vst [vmem:[#allocation37_spill] sm:$0xff] %v4290_v63  ;;  %v215_v6 = vld [vmem:[#allocation2 + $0x380] sm:$0xff] }
 0x103   :  { %4890 = vst [vmem:[#allocation35_spill] sm:$0xff] %v4285_v41  ;;  %3512 = vtanh.f32 %v982_v16 }
 0x104   :  { %4888 = vst [vmem:[#allocation33_spill] sm:$0xff] %v4281_v43 }
 0x105   :  { %4891 = vst [vmem:[#allocation36_spill] sm:$0xff] %v4287_v19 }
 0x106   :  { %v894_v7 = vpop.f32.mrf.mxu2  ;;  %v719_v59 = vpop.f32.mrf.mxu0 }
 0x107   :  { %v895_v17 = vadd.f32 %v894_v7, %v806_v39  ;;  %v983_v58 = vpop.f32.mrf.mxu3  ;;  %v720_v38 = vadd.f32 %v719_v59, %v4203_v36  ;;  %v808_v43 = vpop.f32.mrf.mxu1  ;;  %v220_v7 = vld [vmem:[#allocation2 + $0x3a8] sm:$0xff]  ;;  %v218_v59 = vld [vmem:[#allocation2 + $0x398] sm:$0xff] }
 0x109   :  { %v984_v61 = vadd.f32 %v983_v58, %v895_v17  ;;  %v809_v10 = vadd.f32 %v808_v43, %v720_v38  ;;  %758 = vmatmul.bf16.gmra.mxu0 %v4283_v9  ;;  %v3513_v31 = vpop.eup %3512  ;;  %v217_v17 = vld [vmem:[#allocation2 + $0x390] sm:$0xff]  ;;  %v222_v38 = vld [vmem:[#allocation2 + $0x3b8] sm:$0xff] }
 0x10a   :  { %847 = vmatmul.bf16.gmra.mxu1 %v4285_v41  ;;  %v221_v58 = vld [vmem:[#allocation2 + $0x3b0] sm:$0xff] }
 0x10b   :  { %3514 = vtanh.f32 %v984_v61  ;;  %936 = vmatmul.bf16.gmra.mxu2 %v4287_v19  ;;  %v4301_v19 = vpack.c.bf16 %v220_v7, %v216_v29  ;;  %v3226_v7 = vld [vmem:[#allocation8 + $0xf8] sm:$0xf0] }
 0x10c   :  { %1025 = vmatmul.bf16.gmra.mxu3 %v4290_v63 }
 0x10d   :  { %4895 = vst [vmem:[#allocation40_spill] sm:$0xff] %v4301_v19 }
 0x10e   :  { %v897_v62 = vpop.f32.mrf.mxu2  ;;  %v721_v11 = vpop.f32.mrf.mxu0 }
 0x10f   :  { %v898_v28 = vadd.f32 %v897_v62, %v809_v10  ;;  %v986_v37 = vpop.f32.mrf.mxu3  ;;  %v722_v30 = vadd.f32 %v721_v11, %v4203_v36  ;;  %v810_v39 = vpop.f32.mrf.mxu1  ;;  %v4299_v10 = vpack.c.bf16 %v219_v18, %v215_v6  ;;  %v3162_v6 = vld [vmem:[#allocation8 + $0x78] sm:$0xf0]  ;;  %v3452_v18 = vld [vmem:[#allocation8 + $0xf4] sm:$0xf] }
 0x111   :  { %v3515_v40 = vpop.eup %3514  ;;  %v987_v16 = vadd.f32 %v986_v37, %v898_v28  ;;  %v811_v43 = vadd.f32 %v810_v39, %v722_v30  ;;  %4894 = vst [vmem:[#allocation39_spill] sm:$0xff] %v4299_v10  ;;  %v4303_v28 = vpack.c.bf16 %v221_v58, %v217_v17  ;;  %v4306_v30 = vpack.c.bf16 %v222_v38, %v218_v59 }
 0x112   :  { %v4297_v5 = vpack.c.bf16 %v3515_v40, %v3513_v31  ;;  %v3229_v58 = vor.u32 %v3452_v18, %v3226_v7  ;;  %v3437_v18 = vld [vmem:[#allocation8 + $0x74] sm:$0xf0]  ;;  %v225_v7 = vld [vmem:[#allocation2 + $0x3d0] sm:$0xff] }
 0x113   :  { %4896 = vst [vmem:[#allocation41_spill] sm:$0xff] %v4303_v28  ;;  %3516 = vtanh.f32 %v987_v16 }
 0x114   :  { %4893 = vst [vmem:[#allocation38_spill] sm:$0xff] %v4297_v5  ;;  %1958 = vmatpush.bf16.msra.mxu3 %v3229_v58  ;;  %v227_v5 = vld [vmem:[#allocation2 + $0x3e0] sm:$0xff] }
 0x115   :  { %4897 = vst [vmem:[#allocation42_spill] sm:$0xff] %v4306_v30 }
 0x116   :  { %v899_v61 = vpop.f32.mrf.mxu2  ;;  %v724_v11 = vpop.f32.mrf.mxu0 }
 0x117   :  { %v900_v62 = vadd.f32 %v899_v61, %v811_v43  ;;  %v988_v63 = vpop.f32.mrf.mxu3  ;;  %v725_v37 = vadd.f32 %v724_v11, %v4203_v36  ;;  %v813_v31 = vpop.f32.mrf.mxu1  ;;  %v3436_v43 = vld [vmem:[#allocation8 + $0x74] sm:$0xf] }
 0x118   :  { %v3165_v29 = vor.u32 %v3436_v43, %v3162_v6  ;;  %v3160_v6 = vld [vmem:[#allocation8 + $0x70] sm:$0xf] }
 0x119   :  { %v989_v39 = vadd.f32 %v988_v63, %v900_v62  ;;  %v814_v40 = vadd.f32 %v813_v31, %v725_v37  ;;  %763 = vmatmul.bf16.gmra.mxu0 %v4299_v10  ;;  %v3517_v38 = vpop.eup %3516  ;;  %v223_v31 = vld [vmem:[#allocation2 + $0x3c0] sm:$0xff]  ;;  %v226_v10 = vld [vmem:[#allocation2 + $0x3d8] sm:$0xff] }
 0x11a   :  { %852 = vmatmul.bf16.gmra.mxu1 %v4301_v19  ;;  %1869 = vmatpush.bf16.msra.mxu2 %v3165_v29  ;;  %v3161_v29 = vor.u32 %v3437_v18, %v3160_v6  ;;  %v3453_v19 = vld [vmem:[#allocation8 + $0xf4] sm:$0xf0]  ;;  %v4315_v9 = vpack.c.bf16 %v227_v5, %v223_v31 }
 0x11b   :  { %3518 = vtanh.f32 %v989_v39  ;;  %941 = vmatmul.bf16.gmra.mxu2 %v4303_v28  ;;  %v228_v28 = vld [vmem:[#allocation2 + $0x3e8] sm:$0xff] }
 0x11c   :  { %1030 = vmatmul.bf16.gmra.mxu3 %v4306_v30  ;;  %v224_v30 = vld [vmem:[#allocation2 + $0x3c8] sm:$0xff]  ;;  %1691 = vmatpush.bf16.msra.mxu0 %v3161_v29 }
 0x11e   :  { %v902_v17 = vpop.f32.mrf.mxu2  ;;  %v726_v16 = vpop.f32.mrf.mxu0 }
 0x11f   :  { %v903_v59 = vadd.f32 %v902_v17, %v814_v40  ;;  %v991_v63 = vpop.f32.mrf.mxu3  ;;  %v727_v61 = vadd.f32 %v726_v16, %v4203_v36  ;;  %v815_v62 = vpop.f32.mrf.mxu1  ;;  %v3224_v40 = vld [vmem:[#allocation8 + $0xf0] sm:$0xf]  ;;  %v230_v16 = vld [vmem:[#allocation2 + $0x3f8] sm:$0xff] }
 0x120   :  { %v229_v17 = vld [vmem:[#allocation2 + $0x3f0] sm:$0xff]  ;;  %v3225_v41 = vor.u32 %v3453_v19, %v3224_v40  ;;  %v4322_v6 = vpack.c.bf16 %v230_v16, %v226_v10 }
 0x121   :  { %v3519_v11 = vpop.eup %3518  ;;  %v992_v37 = vadd.f32 %v991_v63, %v903_v59  ;;  %v816_v39 = vadd.f32 %v815_v62, %v727_v61  ;;  %v4317_v62 = vpack.c.bf16 %v228_v28, %v224_v30 }
 0x122   :  { %v4313_v43 = vpack.c.bf16 %v3519_v11, %v3517_v38  ;;  %v4319_v38 = vpack.c.bf16 %v229_v17, %v225_v7  ;;  %1780 = vmatpush.bf16.msra.mxu1 %v3225_v41 }
 0x123   :  { %3520 = vtanh.f32 %v992_v37 }
 0x124   :  { %4898 = vst [vmem:[#allocation43_spill] sm:$0xff] %v4313_v43 }
 0x126   :  { %v904_v58 = vpop.f32.mrf.mxu2  ;;  %v729_v61 = vpop.f32.mrf.mxu0 }
 0x127   :  { %v905_v59 = vadd.f32 %v904_v58, %v816_v39  ;;  %v993_v63 = vpop.f32.mrf.mxu3  ;;  %v730_v11 = vadd.f32 %v729_v61, %v4203_v36  ;;  %v818_v43 = vpop.f32.mrf.mxu1 }
 0x129   :  { %v994_v18 = vadd.f32 %v993_v63, %v905_v59  ;;  %v819_v19 = vadd.f32 %v818_v43, %v730_v11  ;;  %768 = vmatmul.bf16.gmra.mxu0 %v4315_v9  ;;  %v3521_v31 = vpop.eup %3520 }
 0x12a   :  { %857 = vmatmul.bf16.gmra.mxu1 %v4317_v62 }
 0x12b   :  { %3522 = vtanh.f32 %v994_v18  ;;  %946 = vmatmul.bf16.gmra.mxu2 %v4319_v38  ;;  %v3434_v18 = vld [vmem:[#allocation8 + $0x64] sm:$0xf] }
 0x12c   :  { %1035 = vmatmul.bf16.gmra.mxu3 %v4322_v6 }
 0x12e   :  { %v907_v5 = vpop.f32.mrf.mxu2  ;;  %v731_v30 = vpop.f32.mrf.mxu0 }
 0x12f   :  { %v908_v28 = vadd.f32 %v907_v5, %v819_v19  ;;  %v996_v41 = vpop.f32.mrf.mxu3  ;;  %v732_v10 = vadd.f32 %v731_v30, %v4203_v36  ;;  %v820_v39 = vpop.f32.mrf.mxu1  ;;  %v3154_v19 = vld [vmem:[#allocation8 + $0x68] sm:$0xf0]  ;;  %v3450_v5 = vld [vmem:[#allocation8 + $0xe4] sm:$0xf] }
 0x131   :  { %v3523_v40 = vpop.eup %3522  ;;  %v997_v37 = vadd.f32 %v996_v41, %v908_v28  ;;  %v821_v43 = vadd.f32 %v820_v39, %v732_v10  ;;  %v3157_v28 = vor.u32 %v3434_v18, %v3154_v19  ;;  %v3218_v41 = vld [vmem:[#allocation8 + $0xe8] sm:$0xf0] }
 0x132   :  { %v4329_v7 = vpack.c.bf16 %v3523_v40, %v3521_v31  ;;  %v3221_v31 = vor.u32 %v3450_v5, %v3218_v41 }
 0x133   :  { %3524 = vtanh.f32 %v997_v37  ;;  %1870 = vmatpush.bf16.msra.mxu2 %v3157_v28 }
 0x134   :  { %1959 = vmatpush.bf16.msra.mxu3 %v3221_v31 }
 0x136   :  { %v909_v17 = vpop.f32.mrf.mxu2  ;;  %v734_v58 = vpop.f32.mrf.mxu0 }
 0x137   :  { %v910_v29 = vadd.f32 %v909_v17, %v821_v43  ;;  %v998_v16 = vpop.f32.mrf.mxu3  ;;  %v735_v59 = vadd.f32 %v734_v58, %v4203_v36  ;;  %v823_v63 = vpop.f32.mrf.mxu1  ;;  %v3216_v58 = vld [vmem:[#allocation8 + $0xe0] sm:$0xf] }
 0x139   :  { %v999_v61 = vadd.f32 %v998_v16, %v910_v29  ;;  %v824_v11 = vadd.f32 %v823_v63, %v735_v59  ;;  %1049 = vmatmul.bf16.vlgmr.msrb.gmra.mxu0 %v4107_v47  ;;  %v3525_v37 = vpop.eup %3524  ;;  %v3152_v29 = vld [vmem:[#allocation8 + $0x60] sm:$0xf]  ;;  %v3435_v16 = vld [vmem:[#allocation8 + $0x64] sm:$0xf0] }
 0x13a   :  { %1138 = vmatmul.bf16.vlgmr.msrb.gmra.mxu1 %v4109_v51  ;;  %v3153_v59 = vor.u32 %v3435_v16, %v3152_v29  ;;  %v3451_v63 = vld [vmem:[#allocation8 + $0xe4] sm:$0xf0] }
 0x13b   :  { %3526 = vtanh.f32 %v999_v61  ;;  %1227 = vmatmul.bf16.vlgmr.msrb.gmra.mxu2 %v4111_v52  ;;  %v3217_v61 = vor.u32 %v3451_v63, %v3216_v58 }
 0x13c   :  { %1316 = vmatmul.bf16.vlgmr.msrb.gmra.mxu3 %v4113_v53  ;;  %1692 = vmatpush.bf16.msra.mxu0 %v3153_v59 }
 0x13d   :  { %1781 = vmatpush.bf16.msra.mxu1 %v3217_v61 }
 0x13e   :  { %v912_v30 = vpop.f32.mrf.mxu2  ;;  %v736_v40 = vpop.f32.mrf.mxu0 }
 0x13f   :  { %v913_v10 = vadd.f32 %v912_v30, %v824_v11  ;;  %v1001_v39 = vpop.f32.mrf.mxu3  ;;  %v737_v47 = vadd.f32 %v736_v40, %v4203_v36  ;;  %v825_v43 = vpop.f32.mrf.mxu1 }
 0x141   :  { %v3527_v51 = vpop.eup %3526  ;;  %v1002_v52 = vadd.f32 %v1001_v39, %v913_v10  ;;  %v826_v17 = vadd.f32 %v825_v43, %v737_v47 }
 0x142   :  { %v4337_v53 = vpack.c.bf16 %v3527_v51, %v3525_v37 }
 0x143   :  { %3528 = vtanh.f32 %v1002_v52 }
 0x146   :  { %v914_v11 = vpop.f32.mrf.mxu2  ;;  %v739_v5 = vpop.f32.mrf.mxu0 }
 0x147   :  { %v915_v18 = vadd.f32 %v914_v11, %v826_v17  ;;  %v1003_v19 = vpop.f32.mrf.mxu3  ;;  %v740_v28 = vadd.f32 %v739_v5, %v4203_v36  ;;  %v828_v41 = vpop.f32.mrf.mxu1  ;;  %v3432_v11 = vld [vmem:[#allocation8 + $0x54] sm:$0xf] }
 0x149   :  { %v1004_v30 = vadd.f32 %v1003_v19, %v915_v18  ;;  %v829_v31 = vadd.f32 %v828_v41, %v740_v28  ;;  %1054 = vmatmul.bf16.gmra.mxu0 %v4119_v12  ;;  %v3529_v47 = vpop.eup %3528  ;;  %v3146_v18 = vld [vmem:[#allocation8 + $0x58] sm:$0xf0]  ;;  %v3448_v19 = vld [vmem:[#allocation8 + $0xd4] sm:$0xf] }
 0x14a   :  { %1143 = vmatmul.bf16.gmra.mxu1 %v4121_v13  ;;  %v3149_v5 = vor.u32 %v3432_v11, %v3146_v18  ;;  %v3210_v28 = vld [vmem:[#allocation8 + $0xd8] sm:$0xf0] }
 0x14b   :  { %3530 = vtanh.f32 %v1004_v30  ;;  %1232 = vmatmul.bf16.gmra.mxu2 %v4123_v14  ;;  %v3213_v30 = vor.u32 %v3448_v19, %v3210_v28 }
 0x14c   :  { %1321 = vmatmul.bf16.gmra.mxu3 %v4125_v15  ;;  %1871 = vmatpush.bf16.msra.mxu2 %v3149_v5 }
 0x14d   :  { %1960 = vmatpush.bf16.msra.mxu3 %v3213_v30 }
 0x14e   :  { %v917_v10 = vpop.f32.mrf.mxu2  ;;  %v741_v37 = vpop.f32.mrf.mxu0 }
 0x14f   :  { %v918_v39 = vadd.f32 %v917_v10, %v829_v31  ;;  %v1006_v40 = vpop.f32.mrf.mxu3  ;;  %v742_v43 = vadd.f32 %v741_v37, %v4203_v36  ;;  %v830_v51 = vpop.f32.mrf.mxu1 }
 0x151   :  { %v3531_v17 = vpop.eup %3530  ;;  %v1007_v52 = vadd.f32 %v1006_v40, %v918_v39  ;;  %v831_v29 = vadd.f32 %v830_v51, %v742_v43  ;;  %v3144_v43 = vld [vmem:[#allocation8 + $0x50] sm:$0xf]  ;;  %v3433_v51 = vld [vmem:[#allocation8 + $0x54] sm:$0xf0] }
 0x152   :  { %v4345_v16 = vpack.c.bf16 %v3531_v17, %v3529_v47  ;;  %v3208_v17 = vld [vmem:[#allocation8 + $0xd0] sm:$0xf] }
 0x153   :  { %3532 = vtanh.f32 %v1007_v52  ;;  %v3145_v52 = vor.u32 %v3433_v51, %v3144_v43  ;;  %v3430_v43 = vld [vmem:[#allocation8 + $0x44] sm:$0xf]  ;;  %v3138_v51 = vld [vmem:[#allocation8 + $0x48] sm:$0xf0] }
 0x155   :  { %1693 = vmatpush.bf16.msra.mxu0 %v3145_v52  ;;  %v3141_v52 = vor.u32 %v3430_v43, %v3138_v51 }
 0x156   :  { %v919_v12 = vpop.f32.mrf.mxu2  ;;  %v744_v59 = vpop.f32.mrf.mxu0 }
 0x157   :  { %v920_v58 = vadd.f32 %v919_v12, %v831_v29  ;;  %v1008_v13 = vpop.f32.mrf.mxu3  ;;  %v745_v14 = vadd.f32 %v744_v59, %v4203_v36  ;;  %v833_v15 = vpop.f32.mrf.mxu1  ;;  %v3449_v29 = vld [vmem:[#allocation8 + $0xd4] sm:$0xf0]  ;;  %1872 = vmatpush.bf16.msra.mxu2 %v3141_v52 }
 0x158   :  { %v3209_v12 = vor.u32 %v3449_v29, %v3208_v17  ;;  %v3446_v17 = vld [vmem:[#allocation8 + $0xc4] sm:$0xf]  ;;  %v3202_v29 = vld [vmem:[#allocation8 + $0xc8] sm:$0xf0] }
 0x159   :  { %v1009_v63 = vadd.f32 %v1008_v13, %v920_v58  ;;  %v834_v61 = vadd.f32 %v833_v15, %v745_v14  ;;  %1059 = vmatmul.bf16.gmra.mxu0 %v4131_v24  ;;  %v3533_v40 = vpop.eup %3532 }
 0x15a   :  { %1148 = vmatmul.bf16.gmra.mxu1 %v4133_v25 }
 0x15b   :  { %3534 = vtanh.f32 %v1009_v63  ;;  %1237 = vmatmul.bf16.gmra.mxu2 %v4135_v26  ;;  %1782 = vmatpush.bf16.msra.mxu1 %v3209_v12 }
 0x15c   :  { %1326 = vmatmul.bf16.gmra.mxu3 %v4137_v27 }
 0x15e   :  { %v922_v41 = vpop.f32.mrf.mxu2  ;;  %v746_v39 = vpop.f32.mrf.mxu0 }
 0x15f   :  { %v923_v31 = vadd.f32 %v922_v41, %v834_v61  ;;  %v1011_v10 = vpop.f32.mrf.mxu3  ;;  %v747_v24 = vadd.f32 %v746_v39, %v4203_v36  ;;  %v835_v37 = vpop.f32.mrf.mxu1 }
 0x161   :  { %v3535_v25 = vpop.eup %3534  ;;  %v1012_v26 = vadd.f32 %v1011_v10, %v923_v31  ;;  %v836_v47 = vadd.f32 %v835_v37, %v747_v24 }
 0x162   :  { %v4353_v27 = vpack.c.bf16 %v3535_v25, %v3533_v40 }
 0x163   :  { %3536 = vtanh.f32 %v1012_v26 }
 0x166   :  { %v924_v58 = vpop.f32.mrf.mxu2  ;;  %v749_v14 = vpop.f32.mrf.mxu0 }
 0x167   :  { %v925_v13 = vadd.f32 %v924_v58, %v836_v47  ;;  %v1013_v59 = vpop.f32.mrf.mxu3  ;;  %v750_v15 = vadd.f32 %v749_v14, %v4203_v36  ;;  %v838_v63 = vpop.f32.mrf.mxu1  ;;  %v3205_v58 = vor.u32 %v3446_v17, %v3202_v29 }
 0x169   :  { %v1014_v61 = vadd.f32 %v1013_v59, %v925_v13  ;;  %v839_v11 = vadd.f32 %v838_v63, %v750_v15  ;;  %1064 = vmatmul.bf16.gmra.mxu0 %v4143_v49  ;;  %v3537_v41 = vpop.eup %3536  ;;  %1961 = vmatpush.bf16.msra.mxu3 %v3205_v58 }
 0x16a   :  { %1153 = vmatmul.bf16.gmra.mxu1 %v4145_v50 }
 0x16b   :  { %3538 = vtanh.f32 %v1014_v61  ;;  %1242 = vmatmul.bf16.gmra.mxu2 %v4147_v54 }
 0x16c   :  { %1331 = vmatmul.bf16.gmra.mxu3 %v4149_v55 }
 0x16e   :  { %v927_v18 = vpop.f32.mrf.mxu2  ;;  %v751_v28 = vpop.f32.mrf.mxu0 }
 0x16f   :  { %v928_v19 = vadd.f32 %v927_v18, %v839_v11  ;;  %v1016_v5 = vpop.f32.mrf.mxu3  ;;  %v752_v30 = vadd.f32 %v751_v28, %v4203_v36  ;;  %v840_v31 = vpop.f32.mrf.mxu1  ;;  %v3136_v11 = vld [vmem:[#allocation8 + $0x40] sm:$0xf]  ;;  %v3431_v18 = vld [vmem:[#allocation8 + $0x44] sm:$0xf0] }
 0x170   :  { %v3447_v28 = vld [vmem:[#allocation8 + $0xc4] sm:$0xf0] }
 0x171   :  { %v3539_v10 = vpop.eup %3538  ;;  %v1017_v39 = vadd.f32 %v1016_v5, %v928_v19  ;;  %v841_v40 = vadd.f32 %v840_v31, %v752_v30  ;;  %v3200_v19 = vld [vmem:[#allocation8 + $0xc0] sm:$0xf]  ;;  %v3137_v5 = vor.u32 %v3431_v18, %v3136_v11 }
 0x172   :  { %v4361_v24 = vpack.c.bf16 %v3539_v10, %v3537_v41  ;;  %v3201_v41 = vor.u32 %v3447_v28, %v3200_v19 }
 0x173   :  { %3540 = vtanh.f32 %v1017_v39  ;;  %1694 = vmatpush.bf16.msra.mxu0 %v3137_v5 }
 0x174   :  { %1783 = vmatpush.bf16.msra.mxu1 %v3201_v41 }
 0x176   :  { %v929_v49 = vpop.f32.mrf.mxu2  ;;  %v754_v25 = vpop.f32.mrf.mxu0 }
 0x177   :  { %v930_v37 = vadd.f32 %v929_v49, %v841_v40  ;;  %v1018_v50 = vpop.f32.mrf.mxu3  ;;  %v755_v54 = vadd.f32 %v754_v25, %v4203_v36  ;;  %v843_v55 = vpop.f32.mrf.mxu1 }
 0x179   :  { %v1019_v26 = vadd.f32 %v1018_v50, %v930_v37  ;;  %v844_v47 = vadd.f32 %v843_v55, %v755_v54  ;;  %1069 = vmatmul.bf16.gmra.mxu0 %v4155_v0  ;;  %v3541_v15 = vpop.eup %3540 }
 0x17a   :  { %1158 = vmatmul.bf16.gmra.mxu1 %v4157_v1 }
 0x17b   :  { %3542 = vtanh.f32 %v1019_v26  ;;  %1247 = vmatmul.bf16.gmra.mxu2 %v4159_v2 }
 0x17c   :  { %1336 = vmatmul.bf16.gmra.mxu3 %v4161_v3 }
 0x17e   :  { %v932_v12 = vpop.f32.mrf.mxu2  ;;  %v756_v14 = vpop.f32.mrf.mxu0 }
 0x17f   :  { %v933_v13 = vadd.f32 %v932_v12, %v844_v47  ;;  %v1021_v59 = vpop.f32.mrf.mxu3  ;;  %v757_v0 = vadd.f32 %v756_v14, %v4203_v36  ;;  %v845_v63 = vpop.f32.mrf.mxu1 }
 0x181   :  { %v3543_v1 = vpop.eup %3542  ;;  %v1022_v2 = vadd.f32 %v1021_v59, %v933_v13  ;;  %v846_v61 = vadd.f32 %v845_v63, %v757_v0  ;;  %v3130_v0 = vld [vmem:[#allocation8 + $0x38] sm:$0xf0]  ;;  %v3444_v63 = vld [vmem:[#allocation8 + $0xb4] sm:$0xf] }
 0x182   :  { %v4369_v3 = vpack.c.bf16 %v3543_v1, %v3541_v15  ;;  %v3428_v15 = vld [vmem:[#allocation8 + $0x34] sm:$0xf] }
 0x183   :  { %3544 = vtanh.f32 %v1022_v2  ;;  %v3133_v1 = vor.u32 %v3428_v15, %v3130_v0  ;;  %v3194_v2 = vld [vmem:[#allocation8 + $0xb8] sm:$0xf0] }
 0x184   :  { %v3197_v11 = vor.u32 %v3444_v63, %v3194_v2 }
 0x185   :  { %1873 = vmatpush.bf16.msra.mxu2 %v3133_v1 }
 0x186   :  { %v934_v30 = vpop.f32.mrf.mxu2  ;;  %v759_v39 = vpop.f32.mrf.mxu0  ;;  %1962 = vmatpush.bf16.msra.mxu3 %v3197_v11  ;;  %v3122_v11 = vld [vmem:[#allocation8 + $0x28] sm:$0xf0] }
 0x187   :  { %v935_v31 = vadd.f32 %v934_v30, %v846_v61  ;;  %v1023_v10 = vpop.f32.mrf.mxu3  ;;  %v760_v40 = vadd.f32 %v759_v39, %v4203_v36  ;;  %v848_v49 = vpop.f32.mrf.mxu1  ;;  %v3192_v39 = vld [vmem:[#allocation8 + $0xb0] sm:$0xf] }
 0x189   :  { %v1024_v37 = vadd.f32 %v1023_v10, %v935_v31  ;;  %v849_v50 = vadd.f32 %v848_v49, %v760_v40  ;;  %1074 = vmatmul.bf16.gmra.mxu0 %v4167_v32  ;;  %v3545_v47 = vpop.eup %3544  ;;  %v3128_v31 = vld [vmem:[#allocation8 + $0x30] sm:$0xf]  ;;  %v3429_v10 = vld [vmem:[#allocation8 + $0x34] sm:$0xf0] }
 0x18a   :  { %1163 = vmatmul.bf16.gmra.mxu1 %v4169_v33  ;;  %v3129_v40 = vor.u32 %v3429_v10, %v3128_v31  ;;  %v3445_v49 = vld [vmem:[#allocation8 + $0xb4] sm:$0xf0] }
 0x18b   :  { %3546 = vtanh.f32 %v1024_v37  ;;  %1252 = vmatmul.bf16.gmra.mxu2 %v4171_v34  ;;  %v3193_v37 = vor.u32 %v3445_v49, %v3192_v39  ;;  %v3120_v39 = vld [vmem:[#allocation8 + $0x20] sm:$0xf] }
 0x18c   :  { %1341 = vmatmul.bf16.gmra.mxu3 %v4173_v35  ;;  %1695 = vmatpush.bf16.msra.mxu0 %v3129_v40  ;;  %v3427_v40 = vld [vmem:[#allocation8 + $0x24] sm:$0xf0]  ;;  %v3184_v49 = vld [vmem:[#allocation8 + $0xa0] sm:$0xf] }
 0x18d   :  { %1784 = vmatpush.bf16.msra.mxu1 %v3193_v37  ;;  %v3121_v37 = vor.u32 %v3427_v40, %v3120_v39 }
 0x18e   :  { %v937_v25 = vpop.f32.mrf.mxu2  ;;  %v761_v26 = vpop.f32.mrf.mxu0 }
 0x18f   :  { %v938_v54 = vadd.f32 %v937_v25, %v849_v50  ;;  %v1026_v55 = vpop.f32.mrf.mxu3  ;;  %v762_v43 = vadd.f32 %v761_v26, %v4203_v36  ;;  %v850_v51 = vpop.f32.mrf.mxu1 }
 0x190   :  { %1696 = vmatpush.bf16.msra.mxu0 %v3121_v37 }
 0x191   :  { %v3547_v17 = vpop.eup %3546  ;;  %v1027_v52 = vadd.f32 %v1026_v55, %v938_v54  ;;  %v851_v29 = vadd.f32 %v850_v51, %v762_v43 }
 0x192   :  { %v4377_v12 = vpack.c.bf16 %v3547_v17, %v3545_v47 }
 0x193   :  { %3548 = vtanh.f32 %v1027_v52 }
 0x196   :  { %v939_v32 = vpop.f32.mrf.mxu2  ;;  %v764_v13 = vpop.f32.mrf.mxu0 }
 0x197   :  { %v940_v58 = vadd.f32 %v939_v32, %v851_v29  ;;  %v1028_v33 = vpop.f32.mrf.mxu3  ;;  %v765_v34 = vadd.f32 %v764_v13, %v4203_v36  ;;  %v853_v35 = vpop.f32.mrf.mxu1 }
 0x199   :  { %v1029_v59 = vadd.f32 %v1028_v33, %v940_v58  ;;  %v854_v14 = vadd.f32 %v853_v35, %v765_v34  ;;  %1079 = vmatmul.bf16.gmra.mxu0 %v4179_v44  ;;  %v3549_v28 = vpop.eup %3548 }
 0x19a   :  { %1168 = vmatmul.bf16.gmra.mxu1 %v4181_v45 }
 0x19b   :  { %3550 = vtanh.f32 %v1029_v59  ;;  %1257 = vmatmul.bf16.gmra.mxu2 %v4183_v46 }
 0x19c   :  { %1346 = vmatmul.bf16.gmra.mxu3 %v4185_v48 }
 0x19e   :  { %v942_v61 = vpop.f32.mrf.mxu2  ;;  %v766_v5 = vpop.f32.mrf.mxu0 }
 0x19f   :  { %v943_v18 = vadd.f32 %v942_v61, %v854_v14  ;;  %v1031_v19 = vpop.f32.mrf.mxu3  ;;  %v767_v44 = vadd.f32 %v766_v5, %v4203_v36  ;;  %v855_v41 = vpop.f32.mrf.mxu1  ;;  %v3186_v5 = vld [vmem:[#allocation8 + $0xa8] sm:$0xf0] }
 0x1a1   :  { %v3551_v45 = vpop.eup %3550  ;;  %v1032_v46 = vadd.f32 %v1031_v19, %v943_v18  ;;  %v856_v30 = vadd.f32 %v855_v41, %v767_v44  ;;  %v3442_v18 = vld [vmem:[#allocation8 + $0xa4] sm:$0xf] }
 0x1a2   :  { %v4385_v48 = vpack.c.bf16 %v3551_v45, %v3549_v28  ;;  %v3189_v44 = vor.u32 %v3442_v18, %v3186_v5  ;;  %v4901_v18 = vld [vmem:[#allocation19_spill] sm:$0xff]  ;;  %v4903_v5 = vld [vmem:[#allocation21_spill] sm:$0xff] }
 0x1a3   :  { %3552 = vtanh.f32 %v1032_v46 }
 0x1a4   :  { %1963 = vmatpush.bf16.msra.mxu3 %v3189_v44  ;;  %v3424_v44 = vld [vmem:[#allocation8 + $0x14] sm:$0xf] }
 0x1a6   :  { %v944_v50 = vpop.f32.mrf.mxu2  ;;  %v769_v55 = vpop.f32.mrf.mxu0 }
 0x1a7   :  { %v945_v25 = vadd.f32 %v944_v50, %v856_v30  ;;  %v1033_v54 = vpop.f32.mrf.mxu3  ;;  %v770_v26 = vadd.f32 %v769_v55, %v4203_v36  ;;  %v858_v47 = vpop.f32.mrf.mxu1  ;;  %v3443_v50 = vld [vmem:[#allocation8 + $0xa4] sm:$0xf0] }
 0x1a9   :  { %v1034_v43 = vadd.f32 %v1033_v54, %v945_v25  ;;  %v859_v51 = vadd.f32 %v858_v47, %v770_v26  ;;  %1084 = vmatmul.bf16.gmra.mxu0 %v4191_v20  ;;  %v3553_v58 = vpop.eup %3552  ;;  %v3880_v20 = vld [vmem:[#allocation7] sm:$0x3]  ;;  %v3185_v25 = vor.u32 %v3443_v50, %v3184_v49 }
 0x1aa   :  { %1173 = vmatmul.bf16.gmra.mxu1 %v4193_v21  ;;  %v4395_v15 = vperm.slane %v3880_v20, 1 }
 0x1ab   :  { %3554 = vtanh.f32 %v1034_v43  ;;  %1262 = vmatmul.bf16.gmra.mxu2 %v4195_v22  ;;  %1785 = vmatpush.bf16.msra.mxu1 %v3185_v25 }
 0x1ac   :  { %1351 = vmatmul.bf16.gmra.mxu3 %v4197_v23 }
 0x1ae   :  { %v947_v17 = vpop.f32.mrf.mxu2  ;;  %v771_v32 = vpop.f32.mrf.mxu0 }
 0x1af   :  { %v948_v52 = vadd.f32 %v947_v17, %v859_v51  ;;  %v1036_v29 = vpop.f32.mrf.mxu3  ;;  %v772_v33 = vadd.f32 %v771_v32, %v4203_v36  ;;  %v860_v13 = vpop.f32.mrf.mxu1  ;;  %v3426_v36 = vld [vmem:[#allocation8 + $0x24] sm:$0xf]  ;;  %v4900_v32 = vld [vmem:[#allocation17_spill] sm:$0xff] }
 0x1b0   :  { %v3125_v19 = vor.u32 %v3426_v36, %v3122_v11 }
 0x1b1   :  { %v3555_v34 = vpop.eup %3554  ;;  %v1037_v35 = vadd.f32 %v1036_v29, %v948_v52  ;;  %v861_v59 = vadd.f32 %v860_v13, %v772_v33  ;;  %v4899_v29 = vld [vmem:[#allocation16_spill] sm:$0xff] }
 0x1b2   :  { %v4393_v14 = vpack.c.bf16 %v3555_v34, %v3553_v58  ;;  %1874 = vmatpush.bf16.msra.mxu2 %v3125_v19  ;;  %v4902_v19 = vld [vmem:[#allocation20_spill] sm:$0xff] }
 0x1b3   :  { %3556 = vtanh.f32 %v1037_v35 }
 0x1b6   :  { %v949_v21 = vpop.f32.mrf.mxu2  ;;  %v1050_v23 = vpop.f32.mrf.mxu0 }
 0x1b7   :  { %v950_v22 = vadd.f32 %v949_v21, %v861_v59  ;;  %v1038_v0 = vpop.f32.mrf.mxu3  ;;  %v1051_v63 = vadd.f32 %v1050_v23, %v4395_v15  ;;  %v1139_v1 = vpop.f32.mrf.mxu1 }
 0x1b9   :  { %v1039_v2 = vadd.f32 %v1038_v0, %v950_v22  ;;  %v1140_v61 = vadd.f32 %v1139_v1, %v1051_v63  ;;  %1089 = vmatmul.bf16.gmra.mxu0 %v4205_v42  ;;  %v3557_v30 = vpop.eup %3556 }
 0x1ba   :  { %1178 = vmatmul.bf16.gmra.mxu1 %v4207_v56 }
 0x1bb   :  { %3558 = vtanh.f32 %v1039_v2  ;;  %1267 = vmatmul.bf16.gmra.mxu2 %v4209_v57 }
 0x1bc   :  { %1356 = vmatmul.bf16.gmra.mxu3 %v4212_v60 }
 0x1be   :  { %v1228_v28 = vpop.f32.mrf.mxu2  ;;  %v1052_v46 = vpop.f32.mrf.mxu0 }
 0x1bf   :  { %v1229_v41 = vadd.f32 %v1228_v28, %v1140_v61  ;;  %v1317_v45 = vpop.f32.mrf.mxu3  ;;  %v1053_v42 = vadd.f32 %v1052_v46, %v4395_v15  ;;  %v1141_v31 = vpop.f32.mrf.mxu1  ;;  %v4904_v28 = vld [vmem:[#allocation22_spill] sm:$0xff] }
 0x1c1   :  { %v3559_v56 = vpop.eup %3558  ;;  %v1318_v57 = vadd.f32 %v1317_v45, %v1229_v41  ;;  %v1142_v10 = vadd.f32 %v1141_v31, %v1053_v42  ;;  %v3114_v41 = vld [vmem:[#allocation8 + $0x18] sm:$0xf0]  ;;  %v3440_v45 = vld [vmem:[#allocation8 + $0x94] sm:$0xf] }
 0x1c2   :  { %v4403_v60 = vpack.c.bf16 %v3559_v56, %v3557_v30  ;;  %v3117_v46 = vor.u32 %v3424_v44, %v3114_v41  ;;  %v3178_v30 = vld [vmem:[#allocation8 + $0x98] sm:$0xf0] }
 0x1c3   :  { %3560 = vtanh.f32 %v1318_v57  ;;  %v3181_v31 = vor.u32 %v3440_v45, %v3178_v30 }
 0x1c4   :  { %1875 = vmatpush.bf16.msra.mxu2 %v3117_v46 }
 0x1c5   :  { %1964 = vmatpush.bf16.msra.mxu3 %v3181_v31  ;;  %v4909_v31 = vld [vmem:[#allocation29_spill] sm:$0xff] }
 0x1c6   :  { %v1230_v54 = vpop.f32.mrf.mxu2  ;;  %v1055_v47 = vpop.f32.mrf.mxu0 }
 0x1c7   :  { %v1231_v55 = vadd.f32 %v1230_v54, %v1142_v10  ;;  %v1319_v26 = vpop.f32.mrf.mxu3  ;;  %v1056_v43 = vadd.f32 %v1055_v47, %v4395_v15  ;;  %v1144_v51 = vpop.f32.mrf.mxu1  ;;  %v3176_v47 = vld [vmem:[#allocation8 + $0x90] sm:$0xf] }
 0x1c9   :  { %v1320_v17 = vadd.f32 %v1319_v26, %v1231_v55  ;;  %v1145_v52 = vadd.f32 %v1144_v51, %v1056_v43  ;;  %1094 = vmatmul.bf16.gmra.mxu0 %v4219_v4  ;;  %v3561_v35 = vpop.eup %3560  ;;  %v3112_v55 = vld [vmem:[#allocation8 + $0x10] sm:$0xf]  ;;  %v3425_v26 = vld [vmem:[#allocation8 + $0x14] sm:$0xf0] }
 0x1ca   :  { %1183 = vmatmul.bf16.gmra.mxu1 %v4221_v8  ;;  %v3113_v43 = vor.u32 %v3425_v26, %v3112_v55  ;;  %v3441_v51 = vld [vmem:[#allocation8 + $0x94] sm:$0xf0] }
 0x1cb   :  { %3562 = vtanh.f32 %v1320_v17  ;;  %1272 = vmatmul.bf16.gmra.mxu2 %v4899_v29  ;;  %v3177_v17 = vor.u32 %v3441_v51, %v3176_v47 }
 0x1cc   :  { %1361 = vmatmul.bf16.gmra.mxu3 %v4900_v32  ;;  %1697 = vmatpush.bf16.msra.mxu0 %v3113_v43 }
 0x1cd   :  { %1786 = vmatpush.bf16.msra.mxu1 %v3177_v17 }
 0x1ce   :  { %v1233_v58 = vpop.f32.mrf.mxu2  ;;  %v1057_v34 = vpop.f32.mrf.mxu0 }
 0x1cf   :  { %v1234_v33 = vadd.f32 %v1233_v58, %v1145_v52  ;;  %v1322_v13 = vpop.f32.mrf.mxu3  ;;  %v1058_v59 = vadd.f32 %v1057_v34, %v4395_v15  ;;  %v1146_v20 = vpop.f32.mrf.mxu1 }
 0x1d1   :  { %v3563_v21 = vpop.eup %3562  ;;  %v1323_v22 = vadd.f32 %v1322_v13, %v1234_v33  ;;  %v1147_v4 = vadd.f32 %v1146_v20, %v1058_v59  ;;  %v4905_v59 = vld [vmem:[#allocation24_spill] sm:$0xff]  ;;  %v4906_v20 = vld [vmem:[#allocation25_spill] sm:$0xff] }
 0x1d2   :  { %v4411_v0 = vpack.c.bf16 %v3563_v21, %v3561_v35  ;;  %v4907_v21 = vld [vmem:[#allocation26_spill] sm:$0xff] }
 0x1d3   :  { %3564 = vtanh.f32 %v1323_v22  ;;  %v4908_v22 = vld [vmem:[#allocation27_spill] sm:$0xff] }
 0x1d6   :  { %v1235_v23 = vpop.f32.mrf.mxu2  ;;  %v1060_v1 = vpop.f32.mrf.mxu0 }
 0x1d7   :  { %v1236_v63 = vadd.f32 %v1235_v23, %v1147_v4  ;;  %v1324_v8 = vpop.f32.mrf.mxu3  ;;  %v1061_v2 = vadd.f32 %v1060_v1, %v4395_v15  ;;  %v1149_v61 = vpop.f32.mrf.mxu1 }
 0x1d9   :  { %v1325_v36 = vadd.f32 %v1324_v8, %v1236_v63  ;;  %v1150_v11 = vadd.f32 %v1149_v61, %v1061_v2  ;;  %1099 = vmatmul.bf16.gmra.mxu0 %v4901_v18  ;;  %v3565_v39 = vpop.eup %3564 }
 0x1da   :  { %1188 = vmatmul.bf16.gmra.mxu1 %v4902_v19 }
 0x1db   :  { %3566 = vtanh.f32 %v1325_v36  ;;  %1277 = vmatmul.bf16.gmra.mxu2 %v4903_v5 }
 0x1dc   :  { %1366 = vmatmul.bf16.gmra.mxu3 %v4904_v28 }
 0x1de   :  { %v1238_v42 = vpop.f32.mrf.mxu2  ;;  %v1062_v10 = vpop.f32.mrf.mxu0 }
 0x1df   :  { %v1239_v56 = vadd.f32 %v1238_v42, %v1150_v11  ;;  %v1327_v57 = vpop.f32.mrf.mxu3  ;;  %v1063_v40 = vadd.f32 %v1062_v10, %v4395_v15  ;;  %v1151_v49 = vpop.f32.mrf.mxu1  ;;  %v4912_v10 = vld [vmem:[#allocation32_spill] sm:$0xff] }
 0x1e1   :  { %v3567_v37 = vpop.eup %3566  ;;  %v1328_v50 = vadd.f32 %v1327_v57, %v1239_v56  ;;  %v1152_v25 = vadd.f32 %v1151_v49, %v1063_v40  ;;  %v4910_v56 = vld [vmem:[#allocation30_spill] sm:$0xff]  ;;  %v4911_v57 = vld [vmem:[#allocation31_spill] sm:$0xff]  ;;  %v3106_v40 = vld [vmem:[#allocation8 + $0x8] sm:$0xf0] }
 0x1e2   :  { %v4419_v54 = vpack.c.bf16 %v3567_v37, %v3565_v39  ;;  %v3422_v39 = vld [vmem:[#allocation8 + $0x4] sm:$0xf] }
 0x1e3   :  { %3568 = vtanh.f32 %v1328_v50  ;;  %v3438_v49 = vld [vmem:[#allocation8 + $0x84] sm:$0xf]  ;;  %v3109_v37 = vor.u32 %v3422_v39, %v3106_v40  ;;  %v3170_v50 = vld [vmem:[#allocation8 + $0x88] sm:$0xf0] }
 0x1e4   :  { %v3173_v55 = vor.u32 %v3438_v49, %v3170_v50 }
 0x1e5   :  { %1876 = vmatpush.bf16.msra.mxu2 %v3109_v37 }
 0x1e6   :  { %v1240_v52 = vpop.f32.mrf.mxu2  ;;  %v1065_v58 = vpop.f32.mrf.mxu0  ;;  %1965 = vmatpush.bf16.msra.mxu3 %v3173_v55 }
 0x1e7   :  { %v1241_v29 = vadd.f32 %v1240_v52, %v1152_v25  ;;  %v1329_v32 = vpop.f32.mrf.mxu3  ;;  %v1066_v33 = vadd.f32 %v1065_v58, %v4395_v15  ;;  %v1154_v13 = vpop.f32.mrf.mxu1 }
 0x1e9   :  { %v1330_v34 = vadd.f32 %v1329_v32, %v1241_v29  ;;  %v1155_v35 = vadd.f32 %v1154_v13, %v1066_v33  ;;  %1104 = vmatmul.bf16.gmra.mxu0 %v4905_v59  ;;  %v3569_v1 = vpop.eup %3568  ;;  %v3104_v13 = vld [vmem:[#allocation8] sm:$0xf] }
 0x1ea   :  { %1193 = vmatmul.bf16.gmra.mxu1 %v4906_v20  ;;  %v3439_v20 = vld [vmem:[#allocation8 + $0x84] sm:$0xf0] }
 0x1eb   :  { %3570 = vtanh.f32 %v1330_v34  ;;  %1282 = vmatmul.bf16.gmra.mxu2 %v4907_v21  ;;  %v3423_v34 = vld [vmem:[#allocation8 + $0x4] sm:$0xf0] }
 0x1ec   :  { %1371 = vmatmul.bf16.gmra.mxu3 %v4908_v22  ;;  %v3105_v59 = vor.u32 %v3423_v34, %v3104_v13  ;;  %v3354_v13 = vld [vmem:[#allocation10 + $0xf8] sm:$0xf0] }
 0x1ee   :  { %v1243_v4 = vpop.f32.mrf.mxu2  ;;  %v1067_v8 = vpop.f32.mrf.mxu0  ;;  %1698 = vmatpush.bf16.msra.mxu0 %v3105_v59 }
 0x1ef   :  { %v1244_v23 = vadd.f32 %v1243_v4, %v1155_v35  ;;  %v1332_v63 = vpop.f32.mrf.mxu3  ;;  %v1068_v2 = vadd.f32 %v1067_v8, %v4395_v15  ;;  %v1156_v61 = vpop.f32.mrf.mxu1  ;;  %v3168_v35 = vld [vmem:[#allocation8 + $0x80] sm:$0xf] }
 0x1f0   :  { %v3169_v21 = vor.u32 %v3439_v20, %v3168_v35 }
 0x1f1   :  { %v3571_v36 = vpop.eup %3570  ;;  %v1333_v11 = vadd.f32 %v1332_v63, %v1244_v23  ;;  %v1157_v18 = vadd.f32 %v1156_v61, %v1068_v2 }
 0x1f2   :  { %v4427_v19 = vpack.c.bf16 %v3571_v36, %v3569_v1  ;;  %1787 = vmatpush.bf16.msra.mxu1 %v3169_v21  ;;  %v4913_v36 = vld [vmem:[#allocation34_spill] sm:$0xff] }
 0x1f3   :  { %3572 = vtanh.f32 %v1333_v11  ;;  %v4914_v11 = vld [vmem:[#allocation35_spill] sm:$0xff] }
 0x1f6   :  { %v1245_v5 = vpop.f32.mrf.mxu2  ;;  %v1070_v41 = vpop.f32.mrf.mxu0 }
 0x1f7   :  { %v1246_v28 = vadd.f32 %v1245_v5, %v1157_v18  ;;  %v1334_v44 = vpop.f32.mrf.mxu3  ;;  %v1071_v45 = vadd.f32 %v1070_v41, %v4395_v15  ;;  %v1159_v46 = vpop.f32.mrf.mxu1  ;;  %v4915_v18 = vld [vmem:[#allocation36_spill] sm:$0xff]  ;;  %v4916_v5 = vld [vmem:[#allocation37_spill] sm:$0xff] }
 0x1f9   :  { %v1335_v30 = vadd.f32 %v1334_v44, %v1246_v28  ;;  %v1160_v42 = vadd.f32 %v1159_v46, %v1071_v45  ;;  %1109 = vmatmul.bf16.gmra.mxu0 %v4909_v31  ;;  %v3573_v51 = vpop.eup %3572 }
 0x1fa   :  { %1198 = vmatmul.bf16.gmra.mxu1 %v4910_v56 }
 0x1fb   :  { %3574 = vtanh.f32 %v1335_v30  ;;  %1287 = vmatmul.bf16.gmra.mxu2 %v4911_v57 }
 0x1fc   :  { %1376 = vmatmul.bf16.gmra.mxu3 %v4912_v10 }
 0x1fe   :  { %v1248_v25 = vpop.f32.mrf.mxu2  ;;  %v1072_v43 = vpop.f32.mrf.mxu0 }
 0x1ff   :  { %v1249_v26 = vadd.f32 %v1248_v25, %v1160_v42  ;;  %v1337_v47 = vpop.f32.mrf.mxu3  ;;  %v1073_v17 = vadd.f32 %v1072_v43, %v4395_v15  ;;  %v1161_v52 = vpop.f32.mrf.mxu1  ;;  %v4918_v43 = vld [vmem:[#allocation40_spill] sm:$0xff] }
 0x201   :  { %v3575_v29 = vpop.eup %3574  ;;  %v1338_v32 = vadd.f32 %v1337_v47, %v1249_v26  ;;  %v1162_v58 = vadd.f32 %v1161_v52, %v1073_v17  ;;  %v4917_v47 = vld [vmem:[#allocation39_spill] sm:$0xff]  ;;  %v4920_v17 = vld [vmem:[#allocation42_spill] sm:$0xff] }
 0x202   :  { %v4435_v33 = vpack.c.bf16 %v3575_v29, %v3573_v51  ;;  %v4919_v51 = vld [vmem:[#allocation41_spill] sm:$0xff]  ;;  %v3468_v52 = vld [vmem:[#allocation10 + $0x74] sm:$0xf]  ;;  %v3290_v29 = vld [vmem:[#allocation10 + $0x78] sm:$0xf0] }
 0x203   :  { %3576 = vtanh.f32 %v1338_v32  ;;  %v3484_v32 = vld [vmem:[#allocation10 + $0xf4] sm:$0xf] }
 0x204   :  { %v3357_v35 = vor.u32 %v3484_v32, %v3354_v13  ;;  %v4921_v32 = vld [vmem:[#allocation18_spill] sm:$0xff]  ;;  %v3282_v13 = vld [vmem:[#allocation10 + $0x68] sm:$0xf0] }
 0x206   :  { %v1250_v22 = vpop.f32.mrf.mxu2  ;;  %v1075_v63 = vpop.f32.mrf.mxu0  ;;  %2608 = vmatpush.bf16.msrb.mxu3 %v3357_v35 }
 0x207   :  { %v1251_v4 = vadd.f32 %v1250_v22, %v1162_v58  ;;  %v1339_v23 = vpop.f32.mrf.mxu3  ;;  %v1076_v8 = vadd.f32 %v1075_v63, %v4395_v15  ;;  %v1164_v1 = vpop.f32.mrf.mxu1  ;;  %v3293_v58 = vor.u32 %v3468_v52, %v3290_v29 }
 0x209   :  { %v1340_v2 = vadd.f32 %v1339_v23, %v1251_v4  ;;  %v1165_v61 = vadd.f32 %v1164_v1, %v1076_v8  ;;  %1114 = vmatmul.bf16.gmra.mxu0 %v4913_v36  ;;  %v3577_v46 = vpop.eup %3576  ;;  %2519 = vmatpush.bf16.msrb.mxu2 %v3293_v58  ;;  %v3469_v36 = vld [vmem:[#allocation10 + $0x74] sm:$0xf0]  ;;  %v3466_v58 = vld [vmem:[#allocation10 + $0x64] sm:$0xf] }
 0x20a   :  { %1203 = vmatmul.bf16.gmra.mxu1 %v4914_v11  ;;  %v3352_v11 = vld [vmem:[#allocation10 + $0xf0] sm:$0xf]  ;;  %v3285_v35 = vor.u32 %v3466_v58, %v3282_v13 }
 0x20b   :  { %3578 = vtanh.f32 %v1340_v2  ;;  %1292 = vmatmul.bf16.gmra.mxu2 %v4915_v18 }
 0x20c   :  { %1381 = vmatmul.bf16.gmra.mxu3 %v4916_v5  ;;  %v3485_v5 = vld [vmem:[#allocation10 + $0xf4] sm:$0xf0] }
 0x20d   :  { %2520 = vmatpush.bf16.msrb.mxu2 %v3285_v35  ;;  %v4923_v35 = vld [vmem:[#allocation28_spill] sm:$0xff] }
 0x20e   :  { %v1253_v28 = vpop.f32.mrf.mxu2  ;;  %v1077_v45 = vpop.f32.mrf.mxu0 }
 0x20f   :  { %v1254_v44 = vadd.f32 %v1253_v28, %v1165_v61  ;;  %v1342_v41 = vpop.f32.mrf.mxu3  ;;  %v1078_v30 = vadd.f32 %v1077_v45, %v4395_v15  ;;  %v1166_v42 = vpop.f32.mrf.mxu1  ;;  %v3288_v61 = vld [vmem:[#allocation10 + $0x70] sm:$0xf]  ;;  %v3353_v28 = vor.u32 %v3485_v5, %v3352_v11  ;;  %v3467_v5 = vld [vmem:[#allocation10 + $0x64] sm:$0xf0] }
 0x210   :  { %v3289_v18 = vor.u32 %v3469_v36, %v3288_v61 }
 0x211   :  { %v3579_v31 = vpop.eup %3578  ;;  %v1343_v56 = vadd.f32 %v1342_v41, %v1254_v44  ;;  %v1167_v57 = vadd.f32 %v1166_v42, %v1078_v30  ;;  %2430 = vmatpush.bf16.msrb.mxu1 %v3353_v28  ;;  %v3344_v28 = vld [vmem:[#allocation10 + $0xe0] sm:$0xf] }
 0x212   :  { %v4443_v10 = vpack.c.bf16 %v3579_v31, %v3577_v46  ;;  %2341 = vmatpush.bf16.msrb.mxu0 %v3289_v18  ;;  %v3280_v18 = vld [vmem:[#allocation10 + $0x60] sm:$0xf] }
 0x213   :  { %3580 = vtanh.f32 %v1343_v56 }
 0x216   :  { %v1255_v39 = vpop.f32.mrf.mxu2  ;;  %v1080_v37 = vpop.f32.mrf.mxu0 }
 0x217   :  { %v1256_v40 = vadd.f32 %v1255_v39, %v1167_v57  ;;  %v1344_v49 = vpop.f32.mrf.mxu3  ;;  %v1081_v50 = vadd.f32 %v1080_v37, %v4395_v15  ;;  %v1169_v25 = vpop.f32.mrf.mxu1 }
 0x219   :  { %v1345_v55 = vadd.f32 %v1344_v49, %v1256_v40  ;;  %v1170_v26 = vadd.f32 %v1169_v25, %v1081_v50  ;;  %1119 = vmatmul.bf16.gmra.mxu0 %v4917_v47  ;;  %v3581_v22 = vpop.eup %3580 }
 0x21a   :  { %1208 = vmatmul.bf16.gmra.mxu1 %v4918_v43 }
 0x21b   :  { %3582 = vtanh.f32 %v1345_v55  ;;  %1297 = vmatmul.bf16.gmra.mxu2 %v4919_v51 }
 0x21c   :  { %1386 = vmatmul.bf16.gmra.mxu3 %v4920_v17 }
 0x21e   :  { %v1258_v34 = vpop.f32.mrf.mxu2  ;;  %v1082_v21 = vpop.f32.mrf.mxu0 }
 0x21f   :  { %v1259_v59 = vadd.f32 %v1258_v34, %v1170_v26  ;;  %v1347_v20 = vpop.f32.mrf.mxu3  ;;  %v1083_v4 = vadd.f32 %v1082_v21, %v4395_v15  ;;  %v1171_v23 = vpop.f32.mrf.mxu1  ;;  %v3482_v34 = vld [vmem:[#allocation10 + $0xe4] sm:$0xf] }
 0x221   :  { %v3583_v63 = vpop.eup %3582  ;;  %v1348_v8 = vadd.f32 %v1347_v20, %v1259_v59  ;;  %v1172_v1 = vadd.f32 %v1171_v23, %v1083_v4  ;;  %v3346_v59 = vld [vmem:[#allocation10 + $0xe8] sm:$0xf0] }
 0x222   :  { %v4451_v2 = vpack.c.bf16 %v3583_v63, %v3581_v22  ;;  %v3349_v21 = vor.u32 %v3482_v34, %v3346_v59  ;;  %v3464_v59 = vld [vmem:[#allocation10 + $0x54] sm:$0xf] }
 0x223   :  { %3584 = vtanh.f32 %v1348_v8 }
 0x224   :  { %2609 = vmatpush.bf16.msrb.mxu3 %v3349_v21  ;;  %v3480_v21 = vld [vmem:[#allocation10 + $0xd4] sm:$0xf] }
 0x226   :  { %v1260_v44 = vpop.f32.mrf.mxu2  ;;  %v1085_v46 = vpop.f32.mrf.mxu0 }
 0x227   :  { %v1261_v41 = vadd.f32 %v1260_v44, %v1172_v1  ;;  %v1349_v45 = vpop.f32.mrf.mxu3  ;;  %v1086_v30 = vadd.f32 %v1085_v46, %v4395_v15  ;;  %v1174_v42 = vpop.f32.mrf.mxu1  ;;  %v3281_v44 = vor.u32 %v3467_v5, %v3280_v18 }
 0x229   :  { %v1350_v31 = vadd.f32 %v1349_v45, %v1261_v41  ;;  %v1175_v56 = vadd.f32 %v1174_v42, %v1086_v30  ;;  %1124 = vmatmul.bf16.gmra.mxu0 %v4315_v9  ;;  %v3585_v37 = vpop.eup %3584  ;;  %v3483_v41 = vld [vmem:[#allocation10 + $0xe4] sm:$0xf0] }
 0x22a   :  { %1213 = vmatmul.bf16.gmra.mxu1 %v4317_v62  ;;  %v3345_v45 = vor.u32 %v3483_v41, %v3344_v28  ;;  %2342 = vmatpush.bf16.msrb.mxu0 %v3281_v44  ;;  %v3272_v41 = vld [vmem:[#allocation10 + $0x50] sm:$0xf] }
 0x22b   :  { %3586 = vtanh.f32 %v1350_v31  ;;  %1302 = vmatmul.bf16.gmra.mxu2 %v4319_v38 }
 0x22c   :  { %1391 = vmatmul.bf16.gmra.mxu3 %v4322_v6  ;;  %2431 = vmatpush.bf16.msrb.mxu1 %v3345_v45  ;;  %v3465_v45 = vld [vmem:[#allocation10 + $0x54] sm:$0xf0] }
 0x22e   :  { %v1263_v57 = vpop.f32.mrf.mxu2  ;;  %v1087_v49 = vpop.f32.mrf.mxu0 }
 0x22f   :  { %v1264_v39 = vadd.f32 %v1263_v57, %v1175_v56  ;;  %v1352_v40 = vpop.f32.mrf.mxu3  ;;  %v1088_v50 = vadd.f32 %v1087_v49, %v4395_v15  ;;  %v1176_v25 = vpop.f32.mrf.mxu1  ;;  %v4922_v49 = vld [vmem:[#allocation23_spill] sm:$0xff] }
 0x231   :  { %v3587_v55 = vpop.eup %3586  ;;  %v1353_v26 = vadd.f32 %v1352_v40, %v1264_v39  ;;  %v1177_v47 = vadd.f32 %v1176_v25, %v1088_v50 }
 0x232   :  { %v4459_v43 = vpack.c.bf16 %v3587_v55, %v3585_v37 }
 0x233   :  { %3588 = vtanh.f32 %v1353_v26 }
 0x236   :  { %v1265_v9 = vpop.f32.mrf.mxu2  ;;  %v1090_v17 = vpop.f32.mrf.mxu0 }
 0x237   :  { %v1266_v51 = vadd.f32 %v1265_v9, %v1177_v47  ;;  %v1354_v62 = vpop.f32.mrf.mxu3  ;;  %v1091_v38 = vadd.f32 %v1090_v17, %v4395_v15  ;;  %v1179_v6 = vpop.f32.mrf.mxu1 }
 0x239   :  { %v1355_v52 = vadd.f32 %v1354_v62, %v1266_v51  ;;  %v1180_v29 = vadd.f32 %v1179_v6, %v1091_v38  ;;  %1699 = vmatmul.bf16.vlgmr.msra.gmra.mxu0 %v4921_v32  ;;  %v3589_v63 = vpop.eup %3588 }
 0x23a   :  { %1788 = vmatmul.bf16.vlgmr.msra.gmra.mxu1 %v4411_v0 }
 0x23b   :  { %3590 = vtanh.f32 %v1355_v52  ;;  %1877 = vmatmul.bf16.vlgmr.msra.gmra.mxu2 %v4921_v32 }
 0x23c   :  { %1966 = vmatmul.bf16.vlgmr.msra.gmra.mxu3 %v4411_v0 }
 0x23e   :  { %v1268_v20 = vpop.f32.mrf.mxu2  ;;  %v1092_v23 = vpop.f32.mrf.mxu0 }
 0x23f   :  { %v1269_v22 = vadd.f32 %v1268_v20, %v1180_v29  ;;  %v1357_v4 = vpop.f32.mrf.mxu3  ;;  %v1093_v8 = vadd.f32 %v1092_v23, %v4395_v15  ;;  %v1181_v1 = vpop.f32.mrf.mxu1  ;;  %v3274_v20 = vld [vmem:[#allocation10 + $0x58] sm:$0xf0] }
 0x241   :  { %v3591_v61 = vpop.eup %3590  ;;  %v1358_v36 = vadd.f32 %v1357_v4, %v1269_v22  ;;  %v1182_v11 = vadd.f32 %v1181_v1, %v1093_v8  ;;  %v3277_v22 = vor.u32 %v3464_v59, %v3274_v20  ;;  %v3338_v4 = vld [vmem:[#allocation10 + $0xd8] sm:$0xf0] }
 0x242   :  { %v4467_v0 = vpack.c.bf16 %v3591_v61, %v3589_v63  ;;  %v3341_v63 = vor.u32 %v3480_v21, %v3338_v4  ;;  %v3462_v4 = vld [vmem:[#allocation10 + $0x44] sm:$0xf] }
 0x243   :  { %3592 = vtanh.f32 %v1358_v36  ;;  %2521 = vmatpush.bf16.msrb.mxu2 %v3277_v22  ;;  %v4925_v22 = vld [vmem:[#allocation38_spill] sm:$0xff] }
 0x244   :  { %2610 = vmatpush.bf16.msrb.mxu3 %v3341_v63  ;;  %v3478_v63 = vld [vmem:[#allocation10 + $0xc4] sm:$0xf] }
 0x246   :  { %v1270_v46 = vpop.f32.mrf.mxu2  ;;  %v1095_v31 = vpop.f32.mrf.mxu0 }
 0x247   :  { %v1271_v30 = vadd.f32 %v1270_v46, %v1182_v11  ;;  %v1359_v42 = vpop.f32.mrf.mxu3  ;;  %v1096_v56 = vadd.f32 %v1095_v31, %v4395_v15  ;;  %v1184_v57 = vpop.f32.mrf.mxu1  ;;  %v3336_v46 = vld [vmem:[#allocation10 + $0xd0] sm:$0xf] }
 0x249   :  { %v1360_v39 = vadd.f32 %v1359_v42, %v1271_v30  ;;  %v1185_v40 = vadd.f32 %v1184_v57, %v1096_v56  ;;  %1704 = vmatmul.bf16.gmra.mxu0 %v4922_v49  ;;  %v3593_v26 = vpop.eup %3592  ;;  %v3273_v30 = vor.u32 %v3465_v45, %v3272_v41  ;;  %v3481_v42 = vld [vmem:[#allocation10 + $0xd4] sm:$0xf0] }
 0x24a   :  { %1793 = vmatmul.bf16.gmra.mxu1 %v4419_v54  ;;  %v3337_v31 = vor.u32 %v3481_v42, %v3336_v46  ;;  %v3264_v42 = vld [vmem:[#allocation10 + $0x40] sm:$0xf] }
 0x24b   :  { %3594 = vtanh.f32 %v1360_v39  ;;  %1882 = vmatmul.bf16.gmra.mxu2 %v4922_v49  ;;  %2343 = vmatpush.bf16.msrb.mxu0 %v3273_v30 }
 0x24c   :  { %1971 = vmatmul.bf16.gmra.mxu3 %v4419_v54  ;;  %2432 = vmatpush.bf16.msrb.mxu1 %v3337_v31  ;;  %v3463_v31 = vld [vmem:[#allocation10 + $0x44] sm:$0xf0] }
 0x24e   :  { %v1273_v37 = vpop.f32.mrf.mxu2  ;;  %v1097_v55 = vpop.f32.mrf.mxu0 }
 0x24f   :  { %v1274_v50 = vadd.f32 %v1273_v37, %v1185_v40  ;;  %v1362_v25 = vpop.f32.mrf.mxu3  ;;  %v1098_v47 = vadd.f32 %v1097_v55, %v4395_v15  ;;  %v1186_v9 = vpop.f32.mrf.mxu1  ;;  %v4924_v55 = vld [vmem:[#allocation33_spill] sm:$0xff] }
 0x251   :  { %v3595_v51 = vpop.eup %3594  ;;  %v1363_v62 = vadd.f32 %v1362_v25, %v1274_v50  ;;  %v1187_v17 = vadd.f32 %v1186_v9, %v1098_v47 }
 0x252   :  { %v4475_v38 = vpack.c.bf16 %v3595_v51, %v3593_v26 }
 0x253   :  { %3596 = vtanh.f32 %v1363_v62 }
 0x256   :  { %v1275_v6 = vpop.f32.mrf.mxu2  ;;  %v1100_v32 = vpop.f32.mrf.mxu0 }
 0x257   :  { %v1276_v52 = vadd.f32 %v1275_v6, %v1187_v17  ;;  %v1364_v29 = vpop.f32.mrf.mxu3  ;;  %v1101_v58 = vadd.f32 %v1100_v32, %v4395_v15  ;;  %v1189_v54 = vpop.f32.mrf.mxu1 }
 0x259   :  { %v1365_v13 = vadd.f32 %v1364_v29, %v1276_v52  ;;  %v1190_v34 = vadd.f32 %v1189_v54, %v1101_v58  ;;  %1709 = vmatmul.bf16.gmra.mxu0 %v4923_v35  ;;  %v3597_v36 = vpop.eup %3596 }
 0x25a   :  { %1798 = vmatmul.bf16.gmra.mxu1 %v4427_v19 }
 0x25b   :  { %3598 = vtanh.f32 %v1365_v13  ;;  %1887 = vmatmul.bf16.gmra.mxu2 %v4923_v35 }
 0x25c   :  { %1976 = vmatmul.bf16.gmra.mxu3 %v4427_v19 }
 0x25e   :  { %v1278_v23 = vpop.f32.mrf.mxu2  ;;  %v1102_v61 = vpop.f32.mrf.mxu0 }
 0x25f   :  { %v1279_v8 = vadd.f32 %v1278_v23, %v1190_v34  ;;  %v1367_v1 = vpop.f32.mrf.mxu3  ;;  %v1103_v11 = vadd.f32 %v1102_v61, %v4395_v15  ;;  %v1191_v18 = vpop.f32.mrf.mxu1  ;;  %v3266_v23 = vld [vmem:[#allocation10 + $0x48] sm:$0xf0] }
 0x261   :  { %v3599_v5 = vpop.eup %3598  ;;  %v1368_v28 = vadd.f32 %v1367_v1, %v1279_v8  ;;  %v1192_v44 = vadd.f32 %v1191_v18, %v1103_v11  ;;  %v3269_v8 = vor.u32 %v3462_v4, %v3266_v23  ;;  %v3330_v1 = vld [vmem:[#allocation10 + $0xc8] sm:$0xf0] }
 0x262   :  { %v4483_v19 = vpack.c.bf16 %v3599_v5, %v3597_v36  ;;  %v3333_v36 = vor.u32 %v3478_v63, %v3330_v1  ;;  %v3258_v1 = vld [vmem:[#allocation10 + $0x38] sm:$0xf0] }
 0x263   :  { %3600 = vtanh.f32 %v1368_v28  ;;  %2522 = vmatpush.bf16.msrb.mxu2 %v3269_v8  ;;  %v3460_v8 = vld [vmem:[#allocation10 + $0x34] sm:$0xf] }
 0x264   :  { %2611 = vmatpush.bf16.msrb.mxu3 %v3333_v36  ;;  %v3261_v36 = vor.u32 %v3460_v8, %v3258_v1 }
 0x266   :  { %v1280_v56 = vpop.f32.mrf.mxu2  ;;  %v1105_v40 = vpop.f32.mrf.mxu0 }
 0x267   :  { %v1281_v57 = vadd.f32 %v1280_v56, %v1192_v44  ;;  %v1369_v39 = vpop.f32.mrf.mxu3  ;;  %v1106_v49 = vadd.f32 %v1105_v40, %v4395_v15  ;;  %v1194_v37 = vpop.f32.mrf.mxu1  ;;  %v3328_v56 = vld [vmem:[#allocation10 + $0xc0] sm:$0xf]  ;;  %2523 = vmatpush.bf16.msrb.mxu2 %v3261_v36  ;;  %v3250_v36 = vld [vmem:[#allocation10 + $0x28] sm:$0xf0] }
 0x269   :  { %v1370_v50 = vadd.f32 %v1369_v39, %v1281_v57  ;;  %v1195_v25 = vadd.f32 %v1194_v37, %v1106_v49  ;;  %1714 = vmatmul.bf16.gmra.mxu0 %v4924_v55  ;;  %v3601_v62 = vpop.eup %3600  ;;  %v3265_v57 = vor.u32 %v3463_v31, %v3264_v42  ;;  %v3479_v39 = vld [vmem:[#allocation10 + $0xc4] sm:$0xf0] }
 0x26a   :  { %1803 = vmatmul.bf16.gmra.mxu1 %v4435_v33  ;;  %v3329_v40 = vor.u32 %v3479_v39, %v3328_v56 }
 0x26b   :  { %3602 = vtanh.f32 %v1370_v50  ;;  %1892 = vmatmul.bf16.gmra.mxu2 %v4924_v55  ;;  %2344 = vmatpush.bf16.msrb.mxu0 %v3265_v57 }
 0x26c   :  { %1981 = vmatmul.bf16.gmra.mxu3 %v4435_v33  ;;  %2433 = vmatpush.bf16.msrb.mxu1 %v3329_v40 }
 0x26e   :  { %v1283_v26 = vpop.f32.mrf.mxu2  ;;  %v1107_v51 = vpop.f32.mrf.mxu0 }
 0x26f   :  { %v1284_v47 = vadd.f32 %v1283_v26, %v1195_v25  ;;  %v1372_v9 = vpop.f32.mrf.mxu3  ;;  %v1108_v17 = vadd.f32 %v1107_v51, %v4395_v15  ;;  %v1196_v6 = vpop.f32.mrf.mxu1  ;;  %v4926_v51 = vld [vmem:[#allocation43_spill] sm:$0xff] }
 0x271   :  { %v3603_v52 = vpop.eup %3602  ;;  %v1373_v29 = vadd.f32 %v1372_v9, %v1284_v47  ;;  %v1197_v32 = vadd.f32 %v1196_v6, %v1108_v17 }
 0x272   :  { %v4491_v58 = vpack.c.bf16 %v3603_v52, %v3601_v62 }
 0x273   :  { %3604 = vtanh.f32 %v1373_v29 }
 0x276   :  { %v1285_v54 = vpop.f32.mrf.mxu2  ;;  %v1110_v35 = vpop.f32.mrf.mxu0 }
 0x277   :  { %v1286_v13 = vadd.f32 %v1285_v54, %v1197_v32  ;;  %v1374_v34 = vpop.f32.mrf.mxu3  ;;  %v1111_v59 = vadd.f32 %v1110_v35, %v4395_v15  ;;  %v1199_v33 = vpop.f32.mrf.mxu1 }
 0x279   :  { %v1375_v20 = vadd.f32 %v1374_v34, %v1286_v13  ;;  %v1200_v21 = vadd.f32 %v1199_v33, %v1111_v59  ;;  %1719 = vmatmul.bf16.gmra.mxu0 %v4925_v22  ;;  %v3605_v28 = vpop.eup %3604 }
 0x27a   :  { %1808 = vmatmul.bf16.gmra.mxu1 %v4443_v10 }
 0x27b   :  { %3606 = vtanh.f32 %v1375_v20  ;;  %1897 = vmatmul.bf16.gmra.mxu2 %v4925_v22 }
 0x27c   :  { %1986 = vmatmul.bf16.gmra.mxu3 %v4443_v10 }
 0x27e   :  { %v1288_v61 = vpop.f32.mrf.mxu2  ;;  %v1112_v5 = vpop.f32.mrf.mxu0 }
 0x27f   :  { %v1289_v11 = vadd.f32 %v1288_v61, %v1200_v21  ;;  %v1377_v18 = vpop.f32.mrf.mxu3  ;;  %v1113_v44 = vadd.f32 %v1112_v5, %v4395_v15  ;;  %v1201_v41 = vpop.f32.mrf.mxu1  ;;  %v3476_v61 = vld [vmem:[#allocation10 + $0xb4] sm:$0xf] }
 0x281   :  { %v3607_v45 = vpop.eup %3606  ;;  %v1378_v46 = vadd.f32 %v1377_v18, %v1289_v11  ;;  %v1202_v30 = vadd.f32 %v1201_v41, %v1113_v44  ;;  %v3322_v11 = vld [vmem:[#allocation10 + $0xb8] sm:$0xf0] }
 0x282   :  { %v4499_v10 = vpack.c.bf16 %v3607_v45, %v3605_v28  ;;  %v3325_v5 = vor.u32 %v3476_v61, %v3322_v11  ;;  %v3458_v61 = vld [vmem:[#allocation10 + $0x24] sm:$0xf] }
 0x283   :  { %3608 = vtanh.f32 %v1378_v46  ;;  %v3474_v11 = vld [vmem:[#allocation10 + $0xa4] sm:$0xf] }
 0x284   :  { %2612 = vmatpush.bf16.msrb.mxu3 %v3325_v5  ;;  %v3314_v5 = vld [vmem:[#allocation10 + $0xa8] sm:$0xf0] }
 0x286   :  { %v1290_v49 = vpop.f32.mrf.mxu2  ;;  %v1115_v25 = vpop.f32.mrf.mxu0 }
 0x287   :  { %v1291_v37 = vadd.f32 %v1290_v49, %v1202_v30  ;;  %v1379_v50 = vpop.f32.mrf.mxu3  ;;  %v1116_v55 = vadd.f32 %v1115_v25, %v4395_v15  ;;  %v1204_v26 = vpop.f32.mrf.mxu1 }
 0x289   :  { %v1380_v47 = vadd.f32 %v1379_v50, %v1291_v37  ;;  %v1205_v9 = vadd.f32 %v1204_v26, %v1116_v55  ;;  %1724 = vmatmul.bf16.gmra.mxu0 %v4926_v51  ;;  %v3609_v29 = vpop.eup %3608  ;;  %v3256_v55 = vld [vmem:[#allocation10 + $0x30] sm:$0xf]  ;;  %v3461_v26 = vld [vmem:[#allocation10 + $0x34] sm:$0xf0] }
 0x28a   :  { %1813 = vmatmul.bf16.gmra.mxu1 %v4451_v2 }
 0x28b   :  { %3610 = vtanh.f32 %v1380_v47  ;;  %1902 = vmatmul.bf16.gmra.mxu2 %v4926_v51  ;;  %v3320_v47 = vld [vmem:[#allocation10 + $0xb0] sm:$0xf]  ;;  %v3477_v51 = vld [vmem:[#allocation10 + $0xb4] sm:$0xf0] }
 0x28c   :  { %1991 = vmatmul.bf16.gmra.mxu3 %v4451_v2 }
 0x28e   :  { %v1293_v62 = vpop.f32.mrf.mxu2  ;;  %v1117_v52 = vpop.f32.mrf.mxu0 }
 0x28f   :  { %v1294_v17 = vadd.f32 %v1293_v62, %v1205_v9  ;;  %v1382_v6 = vpop.f32.mrf.mxu3  ;;  %v1118_v32 = vadd.f32 %v1117_v52, %v4395_v15  ;;  %v1206_v54 = vpop.f32.mrf.mxu1  ;;  %v3257_v9 = vor.u32 %v3461_v26, %v3256_v55  ;;  %v3321_v62 = vor.u32 %v3477_v51, %v3320_v47 }
 0x291   :  { %v3611_v13 = vpop.eup %3610  ;;  %v1383_v34 = vadd.f32 %v1382_v6, %v1294_v17  ;;  %v1207_v35 = vadd.f32 %v1206_v54, %v1118_v32  ;;  %2345 = vmatpush.bf16.msrb.mxu0 %v3257_v9  ;;  %2434 = vmatpush.bf16.msrb.mxu1 %v3321_v62 }
 0x292   :  { %v4507_v59 = vpack.c.bf16 %v3611_v13, %v3609_v29 }
 0x293   :  { %3612 = vtanh.f32 %v1383_v34 }
 0x296   :  { %v1295_v33 = vpop.f32.mrf.mxu2  ;;  %v1120_v22 = vpop.f32.mrf.mxu0 }
 0x297   :  { %v1296_v20 = vadd.f32 %v1295_v33, %v1207_v35  ;;  %v1384_v21 = vpop.f32.mrf.mxu3  ;;  %v1121_v4 = vadd.f32 %v1120_v22, %v4395_v15  ;;  %v1209_v2 = vpop.f32.mrf.mxu1  ;;  %v1525_v35 = vld [vmem:[%s4839_s4] sm:$0x3] }
 0x298   :  { %v4534_v1 = vperm.slane %v1525_v35, 1 }
 0x299   :  { %v1385_v23 = vadd.f32 %v1384_v21, %v1296_v20  ;;  %v1210_v63 = vadd.f32 %v1209_v2, %v1121_v4  ;;  %1729 = vmatmul.bf16.gmra.mxu0 %v4329_v7  ;;  %v3613_v45 = vpop.eup %3612  ;;  %v4528_v20 = vperm.slane %v1525_v35, 0 }
 0x29a   :  { %1818 = vmatmul.bf16.gmra.mxu1 %v4459_v43 }
 0x29b   :  { %3614 = vtanh.f32 %v1385_v23  ;;  %1907 = vmatmul.bf16.gmra.mxu2 %v4329_v7 }
 0x29c   :  { %1996 = vmatmul.bf16.gmra.mxu3 %v4459_v43 }
 0x29e   :  { %v1298_v18 = vpop.f32.mrf.mxu2  ;;  %v1122_v41 = vpop.f32.mrf.mxu0 }
 0x29f   :  { %v1299_v28 = vadd.f32 %v1298_v18, %v1210_v63  ;;  %v1387_v44 = vpop.f32.mrf.mxu3  ;;  %v1123_v46 = vadd.f32 %v1122_v41, %v4395_v15  ;;  %v1211_v30 = vpop.f32.mrf.mxu1  ;;  %v3253_v18 = vor.u32 %v3458_v61, %v3250_v36 }
 0x2a1   :  { %v3615_v42 = vpop.eup %3614  ;;  %v1388_v7 = vadd.f32 %v1387_v44, %v1299_v28  ;;  %v1212_v31 = vadd.f32 %v1211_v30, %v1123_v46  ;;  %v3317_v44 = vor.u32 %v3474_v11, %v3314_v5  ;;  %2524 = vmatpush.bf16.msrb.mxu2 %v3253_v18 }
 0x2a2   :  { %v4515_v43 = vpack.c.bf16 %v3615_v42, %v3613_v45 }
 0x2a3   :  { %3616 = vtanh.f32 %v1388_v7  ;;  %2613 = vmatpush.bf16.msrb.mxu3 %v3317_v44  ;;  %v3242_v44 = vld [vmem:[#allocation10 + $0x18] sm:$0xf0] }
 0x2a6   :  { %v1300_v56 = vpop.f32.mrf.mxu2  ;;  %v1125_v40 = vpop.f32.mrf.mxu0 }
 0x2a7   :  { %v1301_v57 = vadd.f32 %v1300_v56, %v1212_v31  ;;  %v1389_v39 = vpop.f32.mrf.mxu3  ;;  %v1126_v49 = vadd.f32 %v1125_v40, %v4395_v15  ;;  %v1214_v37 = vpop.f32.mrf.mxu1  ;;  %v3312_v40 = vld [vmem:[#allocation10 + $0xa0] sm:$0xf] }
 0x2a9   :  { %v1390_v50 = vadd.f32 %v1389_v39, %v1301_v57  ;;  %v1215_v25 = vadd.f32 %v1214_v37, %v1126_v49  ;;  %1734 = vmatmul.bf16.gmra.mxu0 %v4337_v53  ;;  %v3617_v32 = vpop.eup %3616  ;;  %v3248_v57 = vld [vmem:[#allocation10 + $0x20] sm:$0xf]  ;;  %v3459_v39 = vld [vmem:[#allocation10 + $0x24] sm:$0xf0] }
 0x2aa   :  { %1823 = vmatmul.bf16.gmra.mxu1 %v4467_v0  ;;  %v3249_v49 = vor.u32 %v3459_v39, %v3248_v57  ;;  %v3475_v37 = vld [vmem:[#allocation10 + $0xa4] sm:$0xf0] }
 0x2ab   :  { %3618 = vtanh.f32 %v1390_v50  ;;  %1912 = vmatmul.bf16.gmra.mxu2 %v4337_v53 }
 0x2ac   :  { %2001 = vmatmul.bf16.gmra.mxu3 %v4467_v0  ;;  %2346 = vmatpush.bf16.msrb.mxu0 %v3249_v49 }
 0x2ae   :  { %v1303_v17 = vpop.f32.mrf.mxu2  ;;  %v1127_v29 = vpop.f32.mrf.mxu0 }
 0x2af   :  { %v1304_v6 = vadd.f32 %v1303_v17, %v1215_v25  ;;  %v1392_v52 = vpop.f32.mrf.mxu3  ;;  %v1128_v54 = vadd.f32 %v1127_v29, %v4395_v15  ;;  %v1216_v13 = vpop.f32.mrf.mxu1  ;;  %v3313_v25 = vor.u32 %v3475_v37, %v3312_v40  ;;  %v3240_v37 = vld [vmem:[#allocation10 + $0x10] sm:$0xf] }
 0x2b1   :  { %v3619_v34 = vpop.eup %3618  ;;  %v1393_v53 = vadd.f32 %v1392_v52, %v1304_v6  ;;  %v1217_v0 = vadd.f32 %v1216_v13, %v1128_v54  ;;  %2435 = vmatpush.bf16.msrb.mxu1 %v3313_v25  ;;  %v3304_v25 = vld [vmem:[#allocation10 + $0x90] sm:$0xf] }
 0x2b2   :  { %v4526_v33 = vpack.c.bf16 %v3619_v34, %v3617_v32 }
 0x2b3   :  { %3620 = vtanh.f32 %v1393_v53 }
 0x2b6   :  { %v1305_v21 = vpop.f32.mrf.mxu2  ;;  %v1700_v2 = vpop.f32.mrf.mxu0 }
 0x2b7   :  { %v1306_v22 = vadd.f32 %v1305_v21, %v1217_v0  ;;  %v1394_v4 = vpop.f32.mrf.mxu3  ;;  %v1701_v23 = vadd.f32 %v1700_v2, %v4528_v20  ;;  %v1789_v63 = vpop.f32.mrf.mxu1 }
 0x2b9   :  { %v1395_v15 = vadd.f32 %v1394_v4, %v1306_v22  ;;  %v1790_v8 = vadd.f32 %v1789_v63, %v1701_v23  ;;  %1739 = vmatmul.bf16.gmra.mxu0 %v4345_v16  ;;  %v3621_v30 = vpop.eup %3620 }
 0x2ba   :  { %1828 = vmatmul.bf16.gmra.mxu1 %v4475_v38 }
 0x2bb   :  { %3622 = vtanh.f32 %v1395_v15  ;;  %1917 = vmatmul.bf16.gmra.mxu2 %v4345_v16 }
 0x2bc   :  { %2006 = vmatmul.bf16.gmra.mxu3 %v4475_v38  ;;  %3624 = vtanh.f32 %v1790_v8 }
 0x2be   :  { %v1878_v28 = vpop.f32.mrf.mxu2  ;;  %v1702_v46 = vpop.f32.mrf.mxu0 }
 0x2bf   :  { %v1879_v41 = vadd.f32 %v1878_v28, %v4534_v1  ;;  %v1967_v45 = vpop.f32.mrf.mxu3  ;;  %v1703_v42 = vadd.f32 %v1702_v46, %v4528_v20  ;;  %v1791_v16 = vpop.f32.mrf.mxu1  ;;  %v3456_v28 = vld [vmem:[#allocation10 + $0x14] sm:$0xf]  ;;  %v3306_v46 = vld [vmem:[#allocation10 + $0x98] sm:$0xf0] }
 0x2c1   :  { %v3623_v7 = vpop.eup %3622  ;;  %v1968_v31 = vadd.f32 %v1967_v45, %v1879_v41  ;;  %v1792_v38 = vadd.f32 %v1791_v16, %v1703_v42  ;;  %v3472_v41 = vld [vmem:[#allocation10 + $0x94] sm:$0xf]  ;;  %v3245_v45 = vor.u32 %v3456_v28, %v3242_v44 }
 0x2c2   :  { %v4539_v56 = vpack.c.bf16 %v3623_v7, %v3621_v30  ;;  %v3625_v62 = vpop.eup %3624  ;;  %v3309_v42 = vor.u32 %v3472_v41, %v3306_v46 }
 0x2c3   :  { %3626 = vtanh.f32 %v1792_v38  ;;  %2525 = vmatpush.bf16.msrb.mxu2 %v3245_v45 }
 0x2c4   :  { %3628 = vtanh.f32 %v1968_v31  ;;  %2614 = vmatpush.bf16.msrb.mxu3 %v3309_v42  ;;  %v3234_v42 = vld [vmem:[#allocation10 + $0x8] sm:$0xf0] }
 0x2c6   :  { %v1880_v50 = vpop.f32.mrf.mxu2  ;;  %v1705_v47 = vpop.f32.mrf.mxu0 }
 0x2c7   :  { %v1881_v55 = vadd.f32 %v1880_v50, %v4534_v1  ;;  %v1969_v26 = vpop.f32.mrf.mxu3  ;;  %v1706_v9 = vadd.f32 %v1705_v47, %v4528_v20  ;;  %v1794_v51 = vpop.f32.mrf.mxu1  ;;  %v3457_v50 = vld [vmem:[#allocation10 + $0x14] sm:$0xf0] }
 0x2c9   :  { %v1970_v17 = vadd.f32 %v1969_v26, %v1881_v55  ;;  %v3627_v6 = vpop.eup %3626  ;;  %v1795_v52 = vadd.f32 %v1794_v51, %v1706_v9  ;;  %1744 = vmatmul.bf16.gmra.mxu0 %v4353_v27  ;;  %v3241_v55 = vor.u32 %v3457_v50, %v3240_v37  ;;  %v3473_v26 = vld [vmem:[#allocation10 + $0x94] sm:$0xf0] }
 0x2ca   :  { %v4544_v29 = vpack.c.bf16 %v3627_v6, %v3625_v62  ;;  %1833 = vmatmul.bf16.gmra.mxu1 %v4483_v19  ;;  %v3629_v53 = vpop.eup %3628  ;;  %v3305_v9 = vor.u32 %v3473_v26, %v3304_v25  ;;  %v3232_v26 = vld [vmem:[#allocation10] sm:$0xf] }
 0x2cb   :  { %3630 = vtanh.f32 %v1970_v17  ;;  %1922 = vmatmul.bf16.gmra.mxu2 %v4353_v27  ;;  %2347 = vmatpush.bf16.msrb.mxu0 %v3241_v55 }
 0x2cc   :  { %2011 = vmatmul.bf16.gmra.mxu3 %v4483_v19  ;;  %3632 = vtanh.f32 %v1795_v52  ;;  %2436 = vmatpush.bf16.msrb.mxu1 %v3305_v9  ;;  %v3296_v9 = vld [vmem:[#allocation10 + $0x80] sm:$0xf] }
 0x2ce   :  { %v1883_v32 = vpop.f32.mrf.mxu2  ;;  %v1707_v34 = vpop.f32.mrf.mxu0 }
 0x2cf   :  { %v1884_v54 = vadd.f32 %v1883_v32, %v4534_v1  ;;  %v1972_v13 = vpop.f32.mrf.mxu3  ;;  %v1708_v35 = vadd.f32 %v1707_v34, %v4528_v20  ;;  %v1796_v0 = vpop.f32.mrf.mxu1 }
 0x2d1   :  { %v3631_v21 = vpop.eup %3630  ;;  %v1973_v22 = vadd.f32 %v1972_v13, %v1884_v54  ;;  %v1797_v2 = vadd.f32 %v1796_v0, %v1708_v35 }
 0x2d2   :  { %v4551_v4 = vpack.c.bf16 %v3631_v21, %v3629_v53  ;;  %v3633_v61 = vpop.eup %3632 }
 0x2d3   :  { %3634 = vtanh.f32 %v1797_v2 }
 0x2d4   :  { %3636 = vtanh.f32 %v1973_v22 }
 0x2d6   :  { %v1885_v23 = vpop.f32.mrf.mxu2  ;;  %v1710_v63 = vpop.f32.mrf.mxu0 }
 0x2d7   :  { %v1886_v27 = vadd.f32 %v1885_v23, %v4534_v1  ;;  %v1974_v19 = vpop.f32.mrf.mxu3  ;;  %v1711_v15 = vadd.f32 %v1710_v63, %v4528_v20  ;;  %v1799_v8 = vpop.f32.mrf.mxu1 }
 0x2d9   :  { %v1975_v36 = vadd.f32 %v1974_v19, %v1886_v27  ;;  %v3635_v11 = vpop.eup %3634  ;;  %v1800_v18 = vadd.f32 %v1799_v8, %v1711_v15  ;;  %1749 = vmatmul.bf16.gmra.mxu0 %v4361_v24 }
 0x2da   :  { %1838 = vmatmul.bf16.gmra.mxu1 %v4491_v58  ;;  %v4558_v5 = vpack.c.bf16 %v3635_v11, %v3633_v61  ;;  %v3637_v38 = vpop.eup %3636 }
 0x2db   :  { %3638 = vtanh.f32 %v1975_v36  ;;  %1927 = vmatmul.bf16.gmra.mxu2 %v4361_v24 }
 0x2dc   :  { %2016 = vmatmul.bf16.gmra.mxu3 %v4491_v58  ;;  %3640 = vtanh.f32 %v1800_v18 }
 0x2de   :  { %v1888_v30 = vpop.f32.mrf.mxu2  ;;  %v1712_v31 = vpop.f32.mrf.mxu0 }
 0x2df   :  { %v1889_v16 = vadd.f32 %v1888_v30, %v4534_v1  ;;  %v1977_v7 = vpop.f32.mrf.mxu3  ;;  %v1713_v57 = vadd.f32 %v1712_v31, %v4528_v20  ;;  %v1801_v24 = vpop.f32.mrf.mxu1  ;;  %v3454_v30 = vld [vmem:[#allocation10 + $0x4] sm:$0xf]  ;;  %v3298_v31 = vld [vmem:[#allocation10 + $0x88] sm:$0xf0] }
 0x2e1   :  { %v3639_v39 = vpop.eup %3638  ;;  %v1978_v40 = vadd.f32 %v1977_v7, %v1889_v16  ;;  %v1802_v58 = vadd.f32 %v1801_v24, %v1713_v57  ;;  %v3470_v16 = vld [vmem:[#allocation10 + $0x84] sm:$0xf]  ;;  %v3237_v7 = vor.u32 %v3454_v30, %v3234_v42 }
 0x2e2   :  { %v4563_v49 = vpack.c.bf16 %v3639_v39, %v3637_v38  ;;  %v3641_v32 = vpop.eup %3640  ;;  %v3301_v57 = vor.u32 %v3470_v16, %v3298_v31 }
 0x2e3   :  { %3642 = vtanh.f32 %v1802_v58  ;;  %2526 = vmatpush.bf16.msrb.mxu2 %v3237_v7 }
 0x2e4   :  { %3644 = vtanh.f32 %v1978_v40  ;;  %2615 = vmatpush.bf16.msrb.mxu3 %v3301_v57 }
 0x2e6   :  { %v1890_v47 = vpop.f32.mrf.mxu2  ;;  %v1715_v17 = vpop.f32.mrf.mxu0 }
 0x2e7   :  { %v1891_v51 = vadd.f32 %v1890_v47, %v4534_v1  ;;  %v1979_v62 = vpop.f32.mrf.mxu3  ;;  %v1716_v6 = vadd.f32 %v1715_v17, %v4528_v20  ;;  %v1804_v52 = vpop.f32.mrf.mxu1  ;;  %v3455_v47 = vld [vmem:[#allocation10 + $0x4] sm:$0xf0] }
 0x2e9   :  { %v1980_v54 = vadd.f32 %v1979_v62, %v1891_v51  ;;  %v3643_v13 = vpop.eup %3642  ;;  %v1805_v34 = vadd.f32 %v1804_v52, %v1716_v6  ;;  %1754 = vmatmul.bf16.gmra.mxu0 %v4369_v3  ;;  %v3233_v51 = vor.u32 %v3455_v47, %v3232_v26  ;;  %v3471_v62 = vld [vmem:[#allocation10 + $0x84] sm:$0xf0] }
 0x2ea   :  { %1843 = vmatmul.bf16.gmra.mxu1 %v4499_v10  ;;  %v4570_v53 = vpack.c.bf16 %v3643_v13, %v3641_v32  ;;  %v3645_v2 = vpop.eup %3644  ;;  %v3297_v6 = vor.u32 %v3471_v62, %v3296_v9 }
 0x2eb   :  { %3646 = vtanh.f32 %v1980_v54  ;;  %1932 = vmatmul.bf16.gmra.mxu2 %v4369_v3  ;;  %2348 = vmatpush.bf16.msrb.mxu0 %v3233_v51 }
 0x2ec   :  { %2021 = vmatmul.bf16.gmra.mxu3 %v4499_v10  ;;  %3648 = vtanh.f32 %v1805_v34  ;;  %2437 = vmatpush.bf16.msrb.mxu1 %v3297_v6 }
 0x2ee   :  { %v1893_v35 = vpop.f32.mrf.mxu2  ;;  %v1717_v22 = vpop.f32.mrf.mxu0 }
 0x2ef   :  { %v1894_v0 = vadd.f32 %v1893_v35, %v4534_v1  ;;  %v1982_v21 = vpop.f32.mrf.mxu3  ;;  %v1718_v23 = vadd.f32 %v1717_v22, %v4528_v20  ;;  %v1806_v27 = vpop.f32.mrf.mxu1 }
 0x2f1   :  { %v3647_v19 = vpop.eup %3646  ;;  %v1983_v63 = vadd.f32 %v1982_v21, %v1894_v0  ;;  %v1807_v15 = vadd.f32 %v1806_v27, %v1718_v23 }
 0x2f2   :  { %v4575_v8 = vpack.c.bf16 %v3647_v19, %v3645_v2  ;;  %v3649_v28 = vpop.eup %3648 }
 0x2f3   :  { %3650 = vtanh.f32 %v1807_v15 }
 0x2f4   :  { %3652 = vtanh.f32 %v1983_v63 }
 0x2f6   :  { %v1895_v3 = vpop.f32.mrf.mxu2  ;;  %v1720_v36 = vpop.f32.mrf.mxu0 }
 0x2f7   :  { %v1896_v61 = vadd.f32 %v1895_v3, %v4534_v1  ;;  %v1984_v10 = vpop.f32.mrf.mxu3  ;;  %v1721_v11 = vadd.f32 %v1720_v36, %v4528_v20  ;;  %v1809_v18 = vpop.f32.mrf.mxu1 }
 0x2f9   :  { %v1985_v44 = vadd.f32 %v1984_v10, %v1896_v61  ;;  %v3651_v41 = vpop.eup %3650  ;;  %v1810_v45 = vadd.f32 %v1809_v18, %v1721_v11  ;;  %1759 = vmatmul.bf16.gmra.mxu0 %v4377_v12 }
 0x2fa   :  { %1848 = vmatmul.bf16.gmra.mxu1 %v4507_v59  ;;  %v4582_v46 = vpack.c.bf16 %v3651_v41, %v3649_v28  ;;  %v3653_v58 = vpop.eup %3652 }
 0x2fb   :  { %3654 = vtanh.f32 %v1985_v44  ;;  %1937 = vmatmul.bf16.gmra.mxu2 %v4377_v12 }
 0x2fc   :  { %2026 = vmatmul.bf16.gmra.mxu3 %v4507_v59  ;;  %3656 = vtanh.f32 %v1810_v45 }
 0x2fe   :  { %v1898_v38 = vpop.f32.mrf.mxu2  ;;  %v1722_v40 = vpop.f32.mrf.mxu0 }
 0x2ff   :  { %v1899_v24 = vadd.f32 %v1898_v38, %v4534_v1  ;;  %v1987_v39 = vpop.f32.mrf.mxu3  ;;  %v1723_v37 = vadd.f32 %v1722_v40, %v4528_v20  ;;  %v1811_v12 = vpop.f32.mrf.mxu1 }
 0x301   :  { %v3655_v50 = vpop.eup %3654  ;;  %v1988_v25 = vadd.f32 %v1987_v39, %v1899_v24  ;;  %v1812_v59 = vadd.f32 %v1811_v12, %v1723_v37 }
 0x302   :  { %v4587_v55 = vpack.c.bf16 %v3655_v50, %v3653_v58  ;;  %v3657_v35 = vpop.eup %3656 }
 0x303   :  { %3658 = vtanh.f32 %v1812_v59 }
 0x304   :  { %3660 = vtanh.f32 %v1988_v25 }
 0x306   :  { %v1900_v17 = vpop.f32.mrf.mxu2  ;;  %v1725_v54 = vpop.f32.mrf.mxu0 }
 0x307   :  { %v1901_v52 = vadd.f32 %v1900_v17, %v4534_v1  ;;  %v1989_v32 = vpop.f32.mrf.mxu3  ;;  %v1726_v13 = vadd.f32 %v1725_v54, %v4528_v20  ;;  %v1814_v34 = vpop.f32.mrf.mxu1 }
 0x309   :  { %v1990_v0 = vadd.f32 %v1989_v32, %v1901_v52  ;;  %v3659_v21 = vpop.eup %3658  ;;  %v1815_v22 = vadd.f32 %v1814_v34, %v1726_v13  ;;  %1764 = vmatmul.bf16.gmra.mxu0 %v4385_v48 }
 0x30a   :  { %1853 = vmatmul.bf16.gmra.mxu1 %v4515_v43  ;;  %v4594_v2 = vpack.c.bf16 %v3659_v21, %v3657_v35  ;;  %v3661_v15 = vpop.eup %3660 }
 0x30b   :  { %3662 = vtanh.f32 %v1990_v0  ;;  %1942 = vmatmul.bf16.gmra.mxu2 %v4385_v48 }
 0x30c   :  { %2031 = vmatmul.bf16.gmra.mxu3 %v4515_v43  ;;  %3664 = vtanh.f32 %v1815_v22 }
 0x30e   :  { %v1903_v23 = vpop.f32.mrf.mxu2  ;;  %v1727_v63 = vpop.f32.mrf.mxu0 }
 0x30f   :  { %v1904_v27 = vadd.f32 %v1903_v23, %v4534_v1  ;;  %v1992_v19 = vpop.f32.mrf.mxu3  ;;  %v1728_v3 = vadd.f32 %v1727_v63, %v4528_v20  ;;  %v1816_v61 = vpop.f32.mrf.mxu1 }
 0x311   :  { %v3663_v10 = vpop.eup %3662  ;;  %v1993_v36 = vadd.f32 %v1992_v19, %v1904_v27  ;;  %v1817_v11 = vadd.f32 %v1816_v61, %v1728_v3 }
 0x312   :  { %v4599_v18 = vpack.c.bf16 %v3663_v10, %v3661_v15  ;;  %v3665_v30 = vpop.eup %3664 }
 0x313   :  { %3666 = vtanh.f32 %v1817_v11 }
 0x314   :  { %3668 = vtanh.f32 %v1993_v36 }
 0x316   :  { %v1905_v48 = vpop.f32.mrf.mxu2  ;;  %v1730_v44 = vpop.f32.mrf.mxu0 }
 0x317   :  { %v1906_v28 = vadd.f32 %v1905_v48, %v4534_v1  ;;  %v1994_v43 = vpop.f32.mrf.mxu3  ;;  %v1731_v41 = vadd.f32 %v1730_v44, %v4528_v20  ;;  %v1819_v45 = vpop.f32.mrf.mxu1 }
 0x319   :  { %v1995_v42 = vadd.f32 %v1994_v43, %v1906_v28  ;;  %v3667_v16 = vpop.eup %3666  ;;  %v1820_v7 = vadd.f32 %v1819_v45, %v1731_v41  ;;  %1769 = vmatmul.bf16.gmra.mxu0 %v4393_v14 }
 0x31a   :  { %1858 = vmatmul.bf16.gmra.mxu1 %v4526_v33  ;;  %v4606_v31 = vpack.c.bf16 %v3667_v16, %v3665_v30  ;;  %v3669_v40 = vpop.eup %3668 }
 0x31b   :  { %3670 = vtanh.f32 %v1995_v42  ;;  %1947 = vmatmul.bf16.gmra.mxu2 %v4393_v14 }
 0x31c   :  { %2036 = vmatmul.bf16.gmra.mxu3 %v4526_v33  ;;  %3672 = vtanh.f32 %v1820_v7 }
 0x31e   :  { %v1908_v38 = vpop.f32.mrf.mxu2  ;;  %v1732_v39 = vpop.f32.mrf.mxu0 }
 0x31f   :  { %v1909_v57 = vadd.f32 %v1908_v38, %v4534_v1  ;;  %v1997_v24 = vpop.f32.mrf.mxu3  ;;  %v1733_v58 = vadd.f32 %v1732_v39, %v4528_v20  ;;  %v1821_v37 = vpop.f32.mrf.mxu1 }
 0x321   :  { %v3671_v12 = vpop.eup %3670  ;;  %v1998_v50 = vadd.f32 %v1997_v24, %v1909_v57  ;;  %v1822_v25 = vadd.f32 %v1821_v37, %v1733_v58 }
 0x322   :  { %v4611_v59 = vpack.c.bf16 %v3671_v12, %v3669_v40  ;;  %v3673_v62 = vpop.eup %3672 }
 0x323   :  { %3674 = vtanh.f32 %v1822_v25 }
 0x324   :  { %3676 = vtanh.f32 %v1998_v50 }
 0x326   :  { %v1910_v14 = vpop.f32.mrf.mxu2  ;;  %v1735_v47 = vpop.f32.mrf.mxu0 }
 0x327   :  { %v1911_v26 = vadd.f32 %v1910_v14, %v4534_v1  ;;  %v1999_v33 = vpop.f32.mrf.mxu3  ;;  %v1736_v9 = vadd.f32 %v1735_v47, %v4528_v20  ;;  %v1824_v51 = vpop.f32.mrf.mxu1 }
 0x329   :  { %v2000_v17 = vadd.f32 %v1999_v33, %v1911_v26  ;;  %v3675_v6 = vpop.eup %3674  ;;  %v1825_v52 = vadd.f32 %v1824_v51, %v1736_v9  ;;  %1774 = vmatmul.bf16.gmra.mxu0 %v4403_v60 }
 0x32a   :  { %1863 = vmatmul.bf16.gmra.mxu1 %v4539_v56  ;;  %v4618_v32 = vpack.c.bf16 %v3675_v6, %v3673_v62  ;;  %v3677_v0 = vpop.eup %3676 }
 0x32b   :  { %3678 = vtanh.f32 %v2000_v17  ;;  %1952 = vmatmul.bf16.gmra.mxu2 %v4403_v60 }
 0x32c   :  { %2041 = vmatmul.bf16.gmra.mxu3 %v4539_v56  ;;  %3680 = vtanh.f32 %v1825_v52 }
 0x32e   :  { %v1913_v54 = vpop.f32.mrf.mxu2  ;;  %v1737_v35 = vpop.f32.mrf.mxu0 }
 0x32f   :  { %v1914_v13 = vadd.f32 %v1913_v54, %v4534_v1  ;;  %v2002_v34 = vpop.f32.mrf.mxu3  ;;  %v1738_v21 = vadd.f32 %v1737_v35, %v4528_v20  ;;  %v1826_v22 = vpop.f32.mrf.mxu1 }
 0x331   :  { %v3679_v23 = vpop.eup %3678  ;;  %v2003_v27 = vadd.f32 %v2002_v34, %v1914_v13  ;;  %v1827_v19 = vadd.f32 %v1826_v22, %v1738_v21 }
 0x332   :  { %v4623_v63 = vpack.c.bf16 %v3679_v23, %v3677_v0  ;;  %v3681_v36 = vpop.eup %3680 }
 0x333   :  { %3682 = vtanh.f32 %v1827_v19 }
 0x334   :  { %3684 = vtanh.f32 %v2003_v27 }
 0x336   :  { %v1915_v60 = vpop.f32.mrf.mxu2  ;;  %v1740_v3 = vpop.f32.mrf.mxu0 }
 0x337   :  { %v1916_v15 = vadd.f32 %v1915_v60, %v4534_v1  ;;  %v2004_v56 = vpop.f32.mrf.mxu3  ;;  %v1741_v61 = vadd.f32 %v1740_v3, %v4528_v20  ;;  %v1829_v10 = vpop.f32.mrf.mxu1 }
 0x339   :  { %v2005_v11 = vadd.f32 %v2004_v56, %v1916_v15  ;;  %v3683_v48 = vpop.eup %3682  ;;  %v1830_v28 = vadd.f32 %v1829_v10, %v1741_v61  ;;  %2349 = vmatmul.bf16.vlgmr.msrb.gmra.mxu0 %v4544_v29 }
 0x33a   :  { %2438 = vmatmul.bf16.vlgmr.msrb.gmra.mxu1 %v4551_v4  ;;  %v4630_v43 = vpack.c.bf16 %v3683_v48, %v3681_v36  ;;  %v3685_v42 = vpop.eup %3684 }
 0x33b   :  { %3686 = vtanh.f32 %v2005_v11  ;;  %2527 = vmatmul.bf16.vlgmr.msrb.gmra.mxu2 %v4544_v29 }
 0x33c   :  { %2616 = vmatmul.bf16.vlgmr.msrb.gmra.mxu3 %v4551_v4  ;;  %3688 = vtanh.f32 %v1830_v28 }
 0x33e   :  { %v1918_v44 = vpop.f32.mrf.mxu2  ;;  %v1742_v30 = vpop.f32.mrf.mxu0 }
 0x33f   :  { %v1919_v41 = vadd.f32 %v1918_v44, %v4534_v1  ;;  %v2007_v45 = vpop.f32.mrf.mxu3  ;;  %v1743_v16 = vadd.f32 %v1742_v30, %v4528_v20  ;;  %v1831_v7 = vpop.f32.mrf.mxu1 }
 0x341   :  { %v3687_v38 = vpop.eup %3686  ;;  %v2008_v57 = vadd.f32 %v2007_v45, %v1919_v41  ;;  %v1832_v24 = vadd.f32 %v1831_v7, %v1743_v16 }
 0x342   :  { %v4635_v39 = vpack.c.bf16 %v3687_v38, %v3685_v42  ;;  %v3689_v50 = vpop.eup %3688 }
 0x343   :  { %3690 = vtanh.f32 %v1832_v24 }
 0x344   :  { %3692 = vtanh.f32 %v2008_v57 }
 0x346   :  { %v1920_v29 = vpop.f32.mrf.mxu2  ;;  %v1745_v58 = vpop.f32.mrf.mxu0 }
 0x347   :  { %v1921_v40 = vadd.f32 %v1920_v29, %v4534_v1  ;;  %v2009_v4 = vpop.f32.mrf.mxu3  ;;  %v1746_v37 = vadd.f32 %v1745_v58, %v4528_v20  ;;  %v1834_v12 = vpop.f32.mrf.mxu1 }
 0x349   :  { %v2010_v25 = vadd.f32 %v2009_v4, %v1921_v40  ;;  %v3691_v14 = vpop.eup %3690  ;;  %v1835_v26 = vadd.f32 %v1834_v12, %v1746_v37  ;;  %2354 = vmatmul.bf16.gmra.mxu0 %v4558_v5 }
 0x34a   :  { %2443 = vmatmul.bf16.gmra.mxu1 %v4563_v49  ;;  %v4642_v33 = vpack.c.bf16 %v3691_v14, %v3689_v50  ;;  %v3693_v17 = vpop.eup %3692 }
 0x34b   :  { %3694 = vtanh.f32 %v2010_v25  ;;  %2532 = vmatmul.bf16.gmra.mxu2 %v4558_v5 }
 0x34c   :  { %2621 = vmatmul.bf16.gmra.mxu3 %v4563_v49  ;;  %3696 = vtanh.f32 %v1835_v26 }
 0x34e   :  { %v1923_v47 = vpop.f32.mrf.mxu2  ;;  %v1747_v62 = vpop.f32.mrf.mxu0 }
 0x34f   :  { %v1924_v9 = vadd.f32 %v1923_v47, %v4534_v1  ;;  %v2012_v51 = vpop.f32.mrf.mxu3  ;;  %v1748_v6 = vadd.f32 %v1747_v62, %v4528_v20  ;;  %v1836_v52 = vpop.f32.mrf.mxu1 }
 0x351   :  { %v3695_v54 = vpop.eup %3694  ;;  %v2013_v13 = vadd.f32 %v2012_v51, %v1924_v9  ;;  %v1837_v34 = vadd.f32 %v1836_v52, %v1748_v6 }
 0x352   :  { %v4647_v35 = vpack.c.bf16 %v3695_v54, %v3693_v17  ;;  %v3697_v27 = vpop.eup %3696 }
 0x353   :  { %3698 = vtanh.f32 %v1837_v34 }
 0x354   :  { %3700 = vtanh.f32 %v2013_v13 }
 0x356   :  { %v1925_v5 = vpop.f32.mrf.mxu2  ;;  %v1750_v21 = vpop.f32.mrf.mxu0 }
 0x357   :  { %v1926_v0 = vadd.f32 %v1925_v5, %v4534_v1  ;;  %v2014_v49 = vpop.f32.mrf.mxu3  ;;  %v1751_v22 = vadd.f32 %v1750_v21, %v4528_v20  ;;  %v1839_v23 = vpop.f32.mrf.mxu1 }
 0x359   :  { %v2015_v19 = vadd.f32 %v2014_v49, %v1926_v0  ;;  %v3699_v60 = vpop.eup %3698  ;;  %v1840_v15 = vadd.f32 %v1839_v23, %v1751_v22  ;;  %2359 = vmatmul.bf16.gmra.mxu0 %v4570_v53 }
 0x35a   :  { %2448 = vmatmul.bf16.gmra.mxu1 %v4575_v8  ;;  %v4654_v56 = vpack.c.bf16 %v3699_v60, %v3697_v27  ;;  %v3701_v11 = vpop.eup %3700 }
 0x35b   :  { %3702 = vtanh.f32 %v2015_v19  ;;  %2537 = vmatmul.bf16.gmra.mxu2 %v4570_v53 }
 0x35c   :  { %2626 = vmatmul.bf16.gmra.mxu3 %v4575_v8  ;;  %3704 = vtanh.f32 %v1840_v15 }
 0x35e   :  { %v1928_v3 = vpop.f32.mrf.mxu2  ;;  %v1752_v36 = vpop.f32.mrf.mxu0 }
 0x35f   :  { %v1929_v61 = vadd.f32 %v1928_v3, %v4534_v1  ;;  %v2017_v10 = vpop.f32.mrf.mxu3  ;;  %v1753_v48 = vadd.f32 %v1752_v36, %v4528_v20  ;;  %v1841_v28 = vpop.f32.mrf.mxu1 }
 0x361   :  { %v3703_v44 = vpop.eup %3702  ;;  %v2018_v41 = vadd.f32 %v2017_v10, %v1929_v61  ;;  %v1842_v45 = vadd.f32 %v1841_v28, %v1753_v48 }
 0x362   :  { %v4659_v30 = vpack.c.bf16 %v3703_v44, %v3701_v11  ;;  %v3705_v57 = vpop.eup %3704 }
 0x363   :  { %3706 = vtanh.f32 %v1842_v45 }
 0x364   :  { %3708 = vtanh.f32 %v2018_v41 }
 0x366   :  { %v1930_v53 = vpop.f32.mrf.mxu2  ;;  %v1755_v16 = vpop.f32.mrf.mxu0 }
 0x367   :  { %v1931_v42 = vadd.f32 %v1930_v53, %v4534_v1  ;;  %v2019_v8 = vpop.f32.mrf.mxu3  ;;  %v1756_v7 = vadd.f32 %v1755_v16, %v4528_v20  ;;  %v1844_v38 = vpop.f32.mrf.mxu1 }
 0x369   :  { %v2020_v24 = vadd.f32 %v2019_v8, %v1931_v42  ;;  %v3707_v29 = vpop.eup %3706  ;;  %v1845_v40 = vadd.f32 %v1844_v38, %v1756_v7  ;;  %2364 = vmatmul.bf16.gmra.mxu0 %v4582_v46 }
 0x36a   :  { %2453 = vmatmul.bf16.gmra.mxu1 %v4587_v55  ;;  %v4666_v4 = vpack.c.bf16 %v3707_v29, %v3705_v57  ;;  %v3709_v25 = vpop.eup %3708 }
 0x36b   :  { %3710 = vtanh.f32 %v2020_v24  ;;  %2542 = vmatmul.bf16.gmra.mxu2 %v4582_v46 }
 0x36c   :  { %2631 = vmatmul.bf16.gmra.mxu3 %v4587_v55  ;;  %3712 = vtanh.f32 %v1845_v40 }
 0x36e   :  { %v1933_v58 = vpop.f32.mrf.mxu2  ;;  %v1757_v50 = vpop.f32.mrf.mxu0 }
 0x36f   :  { %v1934_v37 = vadd.f32 %v1933_v58, %v4534_v1  ;;  %v2022_v12 = vpop.f32.mrf.mxu3  ;;  %v1758_v14 = vadd.f32 %v1757_v50, %v4528_v20  ;;  %v1846_v26 = vpop.f32.mrf.mxu1 }
 0x371   :  { %v3711_v47 = vpop.eup %3710  ;;  %v2023_v9 = vadd.f32 %v2022_v12, %v1934_v37  ;;  %v1847_v51 = vadd.f32 %v1846_v26, %v1758_v14 }
 0x372   :  { %v4671_v62 = vpack.c.bf16 %v3711_v47, %v3709_v25  ;;  %v3713_v13 = vpop.eup %3712 }
 0x373   :  { %3714 = vtanh.f32 %v1847_v51 }
 0x374   :  { %3716 = vtanh.f32 %v2023_v9 }
 0x376   :  { %v1935_v46 = vpop.f32.mrf.mxu2  ;;  %v1760_v6 = vpop.f32.mrf.mxu0 }
 0x377   :  { %v1936_v17 = vadd.f32 %v1935_v46, %v4534_v1  ;;  %v2024_v55 = vpop.f32.mrf.mxu3  ;;  %v1761_v52 = vadd.f32 %v1760_v6, %v4528_v20  ;;  %v1849_v54 = vpop.f32.mrf.mxu1 }
 0x379   :  { %v2025_v34 = vadd.f32 %v2024_v55, %v1936_v17  ;;  %v3715_v5 = vpop.eup %3714  ;;  %v1850_v0 = vadd.f32 %v1849_v54, %v1761_v52  ;;  %2369 = vmatmul.bf16.gmra.mxu0 %v4594_v2 }
 0x37a   :  { %2458 = vmatmul.bf16.gmra.mxu1 %v4599_v18  ;;  %v4678_v49 = vpack.c.bf16 %v3715_v5, %v3713_v13  ;;  %v3717_v19 = vpop.eup %3716 }
 0x37b   :  { %3718 = vtanh.f32 %v2025_v34  ;;  %2547 = vmatmul.bf16.gmra.mxu2 %v4594_v2 }
 0x37c   :  { %2636 = vmatmul.bf16.gmra.mxu3 %v4599_v18  ;;  %3720 = vtanh.f32 %v1850_v0 }
 0x37e   :  { %v1938_v21 = vpop.f32.mrf.mxu2  ;;  %v1762_v27 = vpop.f32.mrf.mxu0 }
 0x37f   :  { %v1939_v22 = vadd.f32 %v1938_v21, %v4534_v1  ;;  %v2027_v23 = vpop.f32.mrf.mxu3  ;;  %v1763_v60 = vadd.f32 %v1762_v27, %v4528_v20  ;;  %v1851_v15 = vpop.f32.mrf.mxu1 }
 0x381   :  { %v3719_v3 = vpop.eup %3718  ;;  %v2028_v61 = vadd.f32 %v2027_v23, %v1939_v22  ;;  %v1852_v10 = vadd.f32 %v1851_v15, %v1763_v60 }
 0x382   :  { %v4683_v36 = vpack.c.bf16 %v3719_v3, %v3717_v19  ;;  %v3721_v41 = vpop.eup %3720 }
 0x383   :  { %3722 = vtanh.f32 %v1852_v10 }
 0x384   :  { %3724 = vtanh.f32 %v2028_v61 }
 0x386   :  { %v1940_v2 = vpop.f32.mrf.mxu2  ;;  %v1765_v48 = vpop.f32.mrf.mxu0 }
 0x387   :  { %v1941_v11 = vadd.f32 %v1940_v2, %v4534_v1  ;;  %v2029_v18 = vpop.f32.mrf.mxu3  ;;  %v1766_v28 = vadd.f32 %v1765_v48, %v4528_v20  ;;  %v1854_v44 = vpop.f32.mrf.mxu1 }
 0x389   :  { %v2030_v45 = vadd.f32 %v2029_v18, %v1941_v11  ;;  %v3723_v53 = vpop.eup %3722  ;;  %v1855_v42 = vadd.f32 %v1854_v44, %v1766_v28  ;;  %2374 = vmatmul.bf16.gmra.mxu0 %v4606_v31 }
 0x38a   :  { %2463 = vmatmul.bf16.gmra.mxu1 %v4611_v59  ;;  %v4690_v8 = vpack.c.bf16 %v3723_v53, %v3721_v41  ;;  %v3725_v24 = vpop.eup %3724 }
 0x38b   :  { %3726 = vtanh.f32 %v2030_v45  ;;  %2552 = vmatmul.bf16.gmra.mxu2 %v4606_v31 }
 0x38c   :  { %2641 = vmatmul.bf16.gmra.mxu3 %v4611_v59  ;;  %3728 = vtanh.f32 %v1855_v42 }
 0x38e   :  { %v1943_v16 = vpop.f32.mrf.mxu2  ;;  %v1767_v57 = vpop.f32.mrf.mxu0 }
 0x38f   :  { %v1944_v7 = vadd.f32 %v1943_v16, %v4534_v1  ;;  %v2032_v38 = vpop.f32.mrf.mxu3  ;;  %v1768_v29 = vadd.f32 %v1767_v57, %v4528_v20  ;;  %v1856_v40 = vpop.f32.mrf.mxu1 }
 0x391   :  { %v3727_v58 = vpop.eup %3726  ;;  %v2033_v37 = vadd.f32 %v2032_v38, %v1944_v7  ;;  %v1857_v12 = vadd.f32 %v1856_v40, %v1768_v29 }
 0x392   :  { %v4695_v50 = vpack.c.bf16 %v3727_v58, %v3725_v24  ;;  %v3729_v9 = vpop.eup %3728 }
 0x393   :  { %3730 = vtanh.f32 %v1857_v12 }
 0x394   :  { %3732 = vtanh.f32 %v2033_v37 }
 0x396   :  { %v1945_v31 = vpop.f32.mrf.mxu2  ;;  %v1770_v14 = vpop.f32.mrf.mxu0 }
 0x397   :  { %v1946_v25 = vadd.f32 %v1945_v31, %v4534_v1  ;;  %v2034_v59 = vpop.f32.mrf.mxu3  ;;  %v1771_v26 = vadd.f32 %v1770_v14, %v4528_v20  ;;  %v1859_v47 = vpop.f32.mrf.mxu1 }
 0x399   :  { %v2035_v51 = vadd.f32 %v2034_v59, %v1946_v25  ;;  %v3731_v46 = vpop.eup %3730  ;;  %v1860_v17 = vadd.f32 %v1859_v47, %v1771_v26  ;;  %2379 = vmatmul.bf16.gmra.mxu0 %v4618_v32 }
 0x39a   :  { %2468 = vmatmul.bf16.gmra.mxu1 %v4623_v63  ;;  %v4702_v55 = vpack.c.bf16 %v3731_v46, %v3729_v9  ;;  %v3733_v34 = vpop.eup %3732 }
 0x39b   :  { %3734 = vtanh.f32 %v2035_v51  ;;  %2557 = vmatmul.bf16.gmra.mxu2 %v4618_v32 }
 0x39c   :  { %2646 = vmatmul.bf16.gmra.mxu3 %v4623_v63  ;;  %3736 = vtanh.f32 %v1860_v17 }
 0x39e   :  { %v1948_v6 = vpop.f32.mrf.mxu2  ;;  %v1772_v13 = vpop.f32.mrf.mxu0 }
 0x39f   :  { %v1949_v52 = vadd.f32 %v1948_v6, %v4534_v1  ;;  %v2037_v54 = vpop.f32.mrf.mxu3  ;;  %v1773_v5 = vadd.f32 %v1772_v13, %v4528_v20  ;;  %v1861_v0 = vpop.f32.mrf.mxu1 }
 0x3a1   :  { %v3735_v21 = vpop.eup %3734  ;;  %v2038_v22 = vadd.f32 %v2037_v54, %v1949_v52  ;;  %v1862_v23 = vadd.f32 %v1861_v0, %v1773_v5 }
 0x3a2   :  { %v4707_v27 = vpack.c.bf16 %v3735_v21, %v3733_v34  ;;  %v3737_v61 = vpop.eup %3736 }
 0x3a3   :  { %3738 = vtanh.f32 %v1862_v23 }
 0x3a4   :  { %3740 = vtanh.f32 %v2038_v22 }
 0x3a6   :  { %v1950_v32 = vpop.f32.mrf.mxu2  ;;  %v1775_v60 = vpop.f32.mrf.mxu0 }
 0x3a7   :  { %v1951_v19 = vadd.f32 %v1950_v32, %v4534_v1  ;;  %v2039_v63 = vpop.f32.mrf.mxu3  ;;  %v1776_v15 = vadd.f32 %v1775_v60, %v4528_v20  ;;  %v1864_v3 = vpop.f32.mrf.mxu1 }
 0x3a9   :  { %v2040_v10 = vadd.f32 %v2039_v63, %v1951_v19  ;;  %v3739_v2 = vpop.eup %3738  ;;  %v1865_v11 = vadd.f32 %v1864_v3, %v1776_v15  ;;  %2384 = vmatmul.bf16.gmra.mxu0 %v4630_v43 }
 0x3aa   :  { %2473 = vmatmul.bf16.gmra.mxu1 %v4635_v39  ;;  %v4714_v18 = vpack.c.bf16 %v3739_v2, %v3737_v61  ;;  %v3741_v45 = vpop.eup %3740 }
 0x3ab   :  { %3742 = vtanh.f32 %v2040_v10  ;;  %2562 = vmatmul.bf16.gmra.mxu2 %v4630_v43  ;;  %v2175_v43 = vld [vmem:[%s4841_s6] sm:$0x3]  ;;  %s4042_s6 = smov [#allocation11]  }
 0x3ac   :  { %2651 = vmatmul.bf16.gmra.mxu3 %v4635_v39  ;;  %3744 = vtanh.f32 %v1865_v11  ;;  %v4724_v24 = vperm.slane %v2175_v43, 0  ;;  %v4731_v59 = vperm.slane %v2175_v43, 1  ;;  %s2829_s28 = sshll.u32 %s4042_s6, 4  ;;  %s2830_s28 = int_to_ptr.vmem [resolvable:$true] %s2829_s28 }
 0x3ae   :  { %v1953_v48 = vpop.f32.mrf.mxu2  ;;  %v1777_v41 = vpop.f32.mrf.mxu0 }
 0x3af   :  { %v1954_v28 = vadd.f32 %v1953_v48, %v4534_v1  ;;  %v2042_v44 = vpop.f32.mrf.mxu3  ;;  %v1778_v53 = vadd.f32 %v1777_v41, %v4528_v20  ;;  %v1866_v42 = vpop.f32.mrf.mxu1 }
 0x3b1   :  { %v3743_v16 = vpop.eup %3742  ;;  %v2043_v7 = vadd.f32 %v2042_v44, %v1954_v28  ;;  %v1867_v38 = vadd.f32 %v1866_v42, %v1778_v53 }
 0x3b2   :  { %v4719_v57 = vpack.c.bf16 %v3743_v16, %v3741_v45  ;;  %v3745_v37 = vpop.eup %3744 }
 0x3b3   :  { %3746 = vtanh.f32 %v1867_v38 }
 0x3b4   :  { %3748 = vtanh.f32 %v2043_v7 }
 0x3b6   :  { %v1955_v39 = vpop.f32.mrf.mxu2  ;;  %v2350_v58 = vpop.f32.mrf.mxu0 }
 0x3b7   :  { %v1956_v29 = vadd.f32 %v1955_v39, %v4534_v1  ;;  %v2044_v40 = vpop.f32.mrf.mxu3  ;;  %v2439_v20 = vpop.f32.mrf.mxu1  ;;  %v2351_v25 = vadd.f32 %v2350_v58, %v4724_v24 }
 0x3b9   :  { %v2045_v12 = vadd.f32 %v2044_v40, %v1956_v29  ;;  %v3747_v31 = vpop.eup %3746  ;;  %2389 = vmatmul.bf16.gmra.mxu0 %v4642_v33  ;;  %v2440_v1 = vadd.f32 %v2439_v20, %v2351_v25 }
 0x3ba   :  { %2478 = vmatmul.bf16.gmra.mxu1 %v4647_v35  ;;  %v4733_v14 = vpack.c.bf16 %v3747_v31, %v3745_v37  ;;  %v3749_v46 = vpop.eup %3748 }
 0x3bb   :  { %3750 = vtanh.f32 %v2045_v12  ;;  %2567 = vmatmul.bf16.gmra.mxu2 %v4642_v33 }
 0x3bc   :  { %2656 = vmatmul.bf16.gmra.mxu3 %v4647_v35  ;;  %3752 = vtanh.f32 %v2440_v1 }
 0x3be   :  { %v2528_v26 = vpop.f32.mrf.mxu2  ;;  %v2352_v51 = vpop.f32.mrf.mxu0 }
 0x3bf   :  { %v2529_v47 = vadd.f32 %v2528_v26, %v4731_v59  ;;  %v2617_v9 = vpop.f32.mrf.mxu3  ;;  %v2441_v17 = vpop.f32.mrf.mxu1  ;;  %v2353_v54 = vadd.f32 %v2352_v51, %v4724_v24 }
 0x3c1   :  { %v3751_v6 = vpop.eup %3750  ;;  %v2618_v52 = vadd.f32 %v2617_v9, %v2529_v47  ;;  %v2442_v13 = vadd.f32 %v2441_v17, %v2353_v54 }
 0x3c2   :  { %v4738_v33 = vpack.c.bf16 %v3751_v6, %v3749_v46  ;;  %v3753_v21 = vpop.eup %3752 }
 0x3c3   :  { %3754 = vtanh.f32 %v2618_v52 }
 0x3c4   :  { %3756 = vtanh.f32 %v2442_v13 }
 0x3c6   :  { %v2530_v34 = vpop.f32.mrf.mxu2  ;;  %v2355_v0 = vpop.f32.mrf.mxu0 }
 0x3c7   :  { %v2531_v35 = vadd.f32 %v2530_v34, %v4731_v59  ;;  %v2619_v5 = vpop.f32.mrf.mxu3  ;;  %v2444_v22 = vpop.f32.mrf.mxu1  ;;  %v2356_v63 = vadd.f32 %v2355_v0, %v4724_v24 }
 0x3c9   :  { %v3755_v23 = vpop.eup %3754  ;;  %v2620_v32 = vadd.f32 %v2619_v5, %v2531_v35  ;;  %2394 = vmatmul.bf16.gmra.mxu0 %v4654_v56  ;;  %v2445_v60 = vadd.f32 %v2444_v22, %v2356_v63 }
 0x3ca   :  { %v2761_v19 = vpack.c.bf16 %v3755_v23, %v3753_v21  ;;  %2483 = vmatmul.bf16.gmra.mxu1 %v4659_v30  ;;  %v3757_v2 = vpop.eup %3756 }
 0x3cb   :  { %3758 = vtanh.f32 %v2620_v32  ;;  %2572 = vmatmul.bf16.gmra.mxu2 %v4654_v56 }
 0x3cc   :  { %2793 = vst [vmem:[#allocation11] sm:$0xff] %v2761_v19  ;;  %2661 = vmatmul.bf16.gmra.mxu3 %v4659_v30  ;;  %3760 = vtanh.f32 %v2445_v60 }
 0x3ce   :  { %v2533_v15 = vpop.f32.mrf.mxu2  ;;  %v2357_v10 = vpop.f32.mrf.mxu0 }
 0x3cf   :  { %v2534_v3 = vadd.f32 %v2533_v15, %v4731_v59  ;;  %v2622_v61 = vpop.f32.mrf.mxu3  ;;  %v2446_v11 = vpop.f32.mrf.mxu1  ;;  %v2358_v41 = vadd.f32 %v2357_v10, %v4724_v24 }
 0x3d1   :  { %v3759_v48 = vpop.eup %3758  ;;  %v2623_v28 = vadd.f32 %v2622_v61, %v2534_v3  ;;  %v2447_v56 = vadd.f32 %v2446_v11, %v2358_v41 }
 0x3d2   :  { %v2762_v44 = vpack.c.bf16 %v3759_v48, %v3757_v2  ;;  %v3761_v16 = vpop.eup %3760 }
 0x3d3   :  { %3762 = vtanh.f32 %v2623_v28 }
 0x3d4   :  { %2794 = vst [vmem:[#allocation11 + $0x8] sm:$0xff] %v2762_v44  ;;  %3764 = vtanh.f32 %v2447_v56 }
 0x3d6   :  { %v2535_v45 = vpop.f32.mrf.mxu2  ;;  %v2360_v42 = vpop.f32.mrf.mxu0 }
 0x3d7   :  { %v2536_v30 = vadd.f32 %v2535_v45, %v4731_v59  ;;  %v2624_v53 = vpop.f32.mrf.mxu3  ;;  %v2449_v7 = vpop.f32.mrf.mxu1  ;;  %v2361_v29 = vadd.f32 %v2360_v42, %v4724_v24 }
 0x3d9   :  { %v3763_v38 = vpop.eup %3762  ;;  %v2625_v43 = vadd.f32 %v2624_v53, %v2536_v30  ;;  %2399 = vmatmul.bf16.gmra.mxu0 %v4666_v4  ;;  %v2450_v40 = vadd.f32 %v2449_v7, %v2361_v29 }
 0x3da   :  { %v2763_v39 = vpack.c.bf16 %v3763_v38, %v3761_v16  ;;  %2488 = vmatmul.bf16.gmra.mxu1 %v4671_v62  ;;  %v3765_v31 = vpop.eup %3764 }
 0x3db   :  { %3766 = vtanh.f32 %v2625_v43  ;;  %2577 = vmatmul.bf16.gmra.mxu2 %v4666_v4 }
 0x3dc   :  { %2795 = vst [vmem:[#allocation11 + $0x10] sm:$0xff] %v2763_v39  ;;  %2666 = vmatmul.bf16.gmra.mxu3 %v4671_v62  ;;  %3768 = vtanh.f32 %v2450_v40 }
 0x3de   :  { %v2538_v58 = vpop.f32.mrf.mxu2  ;;  %v2362_v12 = vpop.f32.mrf.mxu0 }
 0x3df   :  { %v2539_v20 = vadd.f32 %v2538_v58, %v4731_v59  ;;  %v2627_v37 = vpop.f32.mrf.mxu3  ;;  %v2451_v25 = vpop.f32.mrf.mxu1  ;;  %v2363_v9 = vadd.f32 %v2362_v12, %v4724_v24 }
 0x3e1   :  { %v3767_v1 = vpop.eup %3766  ;;  %v2628_v26 = vadd.f32 %v2627_v37, %v2539_v20  ;;  %v2452_v4 = vadd.f32 %v2451_v25, %v2363_v9 }
 0x3e2   :  { %v2764_v47 = vpack.c.bf16 %v3767_v1, %v3765_v31  ;;  %v3769_v6 = vpop.eup %3768 }
 0x3e3   :  { %3770 = vtanh.f32 %v2628_v26 }
 0x3e4   :  { %2796 = vst [vmem:[#allocation11 + $0x18] sm:$0xff] %v2764_v47  ;;  %3772 = vtanh.f32 %v2452_v4 }
 0x3e6   :  { %v2540_v51 = vpop.f32.mrf.mxu2  ;;  %v2365_v17 = vpop.f32.mrf.mxu0 }
 0x3e7   :  { %v2541_v62 = vadd.f32 %v2540_v51, %v4731_v59  ;;  %v2629_v46 = vpop.f32.mrf.mxu3  ;;  %v2454_v52 = vpop.f32.mrf.mxu1  ;;  %v2366_v35 = vadd.f32 %v2365_v17, %v4724_v24 }
 0x3e9   :  { %v3771_v54 = vpop.eup %3770  ;;  %v2630_v13 = vadd.f32 %v2629_v46, %v2541_v62  ;;  %2404 = vmatmul.bf16.gmra.mxu0 %v4678_v49  ;;  %v2455_v5 = vadd.f32 %v2454_v52, %v2366_v35 }
 0x3ea   :  { %v2765_v34 = vpack.c.bf16 %v3771_v54, %v3769_v6  ;;  %2493 = vmatmul.bf16.gmra.mxu1 %v4683_v36  ;;  %v3773_v32 = vpop.eup %3772 }
 0x3eb   :  { %3774 = vtanh.f32 %v2630_v13  ;;  %2582 = vmatmul.bf16.gmra.mxu2 %v4678_v49 }
 0x3ec   :  { %2797 = vst [vmem:[#allocation11 + $0x20] sm:$0xff] %v2765_v34  ;;  %2671 = vmatmul.bf16.gmra.mxu3 %v4683_v36  ;;  %3776 = vtanh.f32 %v2455_v5 }
 0x3ee   :  { %v2543_v0 = vpop.f32.mrf.mxu2  ;;  %v2367_v23 = vpop.f32.mrf.mxu0 }
 0x3ef   :  { %v2544_v21 = vadd.f32 %v2543_v0, %v4731_v59  ;;  %v2632_v22 = vpop.f32.mrf.mxu3  ;;  %v2456_v19 = vpop.f32.mrf.mxu1  ;;  %v2368_v3 = vadd.f32 %v2367_v23, %v4724_v24 }
 0x3f1   :  { %v3775_v63 = vpop.eup %3774  ;;  %v2633_v60 = vadd.f32 %v2632_v22, %v2544_v21  ;;  %v2457_v49 = vadd.f32 %v2456_v19, %v2368_v3 }
 0x3f2   :  { %v2766_v15 = vpack.c.bf16 %v3775_v63, %v3773_v32  ;;  %v3777_v11 = vpop.eup %3776 }
 0x3f3   :  { %3778 = vtanh.f32 %v2633_v60 }
 0x3f4   :  { %2798 = vst [vmem:[#allocation11 + $0x28] sm:$0xff] %v2766_v15  ;;  %3780 = vtanh.f32 %v2457_v49 }
 0x3f6   :  { %v2545_v61 = vpop.f32.mrf.mxu2  ;;  %v2370_v2 = vpop.f32.mrf.mxu0 }
 0x3f7   :  { %v2546_v36 = vadd.f32 %v2545_v61, %v4731_v59  ;;  %v2634_v10 = vpop.f32.mrf.mxu3  ;;  %v2459_v48 = vpop.f32.mrf.mxu1  ;;  %v2371_v56 = vadd.f32 %v2370_v2, %v4724_v24 }
 0x3f9   :  { %v3779_v28 = vpop.eup %3778  ;;  %v2635_v44 = vadd.f32 %v2634_v10, %v2546_v36  ;;  %2409 = vmatmul.bf16.gmra.mxu0 %v4690_v8  ;;  %v2460_v45 = vadd.f32 %v2459_v48, %v2371_v56 }
 0x3fa   :  { %v2767_v41 = vpack.c.bf16 %v3779_v28, %v3777_v11  ;;  %2498 = vmatmul.bf16.gmra.mxu1 %v4695_v50  ;;  %v3781_v7 = vpop.eup %3780 }
 0x3fb   :  { %3782 = vtanh.f32 %v2635_v44  ;;  %2587 = vmatmul.bf16.gmra.mxu2 %v4690_v8 }
 0x3fc   :  { %2799 = vst [vmem:[#allocation11 + $0x30] sm:$0xff] %v2767_v41  ;;  %2676 = vmatmul.bf16.gmra.mxu3 %v4695_v50  ;;  %3784 = vtanh.f32 %v2460_v45 }
 0x3fe   :  { %v2548_v30 = vpop.f32.mrf.mxu2  ;;  %v2372_v16 = vpop.f32.mrf.mxu0 }
 0x3ff   :  { %v2549_v53 = vadd.f32 %v2548_v30, %v4731_v59  ;;  %v2637_v42 = vpop.f32.mrf.mxu3  ;;  %v2461_v38 = vpop.f32.mrf.mxu1  ;;  %v2373_v40 = vadd.f32 %v2372_v16, %v4724_v24 }
 0x401   :  { %v3783_v43 = vpop.eup %3782  ;;  %v2638_v39 = vadd.f32 %v2637_v42, %v2549_v53  ;;  %v2462_v8 = vadd.f32 %v2461_v38, %v2373_v40 }
 0x402   :  { %v2768_v29 = vpack.c.bf16 %v3783_v43, %v3781_v7  ;;  %v3785_v12 = vpop.eup %3784 }
 0x403   :  { %3786 = vtanh.f32 %v2638_v39 }
 0x404   :  { %2800 = vst [vmem:[#allocation11 + $0x38] sm:$0xff] %v2768_v29  ;;  %3788 = vtanh.f32 %v2462_v8 }
 0x406   :  { %v2550_v58 = vpop.f32.mrf.mxu2  ;;  %v2375_v37 = vpop.f32.mrf.mxu0 }
 0x407   :  { %v2551_v50 = vadd.f32 %v2550_v58, %v4731_v59  ;;  %v2639_v20 = vpop.f32.mrf.mxu3  ;;  %v2464_v31 = vpop.f32.mrf.mxu1  ;;  %v2376_v47 = vadd.f32 %v2375_v37, %v4724_v24 }
 0x409   :  { %v3787_v25 = vpop.eup %3786  ;;  %v2640_v1 = vadd.f32 %v2639_v20, %v2551_v50  ;;  %2414 = vmatmul.bf16.gmra.mxu0 %v4702_v55  ;;  %v2465_v9 = vadd.f32 %v2464_v31, %v2376_v47 }
 0x40a   :  { %v2769_v26 = vpack.c.bf16 %v3787_v25, %v3785_v12  ;;  %2503 = vmatmul.bf16.gmra.mxu1 %v4707_v27  ;;  %v3789_v17 = vpop.eup %3788 }
 0x40b   :  { %3790 = vtanh.f32 %v2640_v1  ;;  %2592 = vmatmul.bf16.gmra.mxu2 %v4702_v55 }
 0x40c   :  { %2801 = vst [vmem:[#allocation11 + $0x40] sm:$0xff] %v2769_v26  ;;  %2681 = vmatmul.bf16.gmra.mxu3 %v4707_v27  ;;  %3792 = vtanh.f32 %v2465_v9 }
 0x40e   :  { %v2553_v4 = vpop.f32.mrf.mxu2  ;;  %v2377_v46 = vpop.f32.mrf.mxu0 }
 0x40f   :  { %v2554_v51 = vadd.f32 %v2553_v4, %v4731_v59  ;;  %v2642_v62 = vpop.f32.mrf.mxu3  ;;  %v2466_v6 = vpop.f32.mrf.mxu1  ;;  %v2378_v34 = vadd.f32 %v2377_v46, %v4724_v24 }
 0x411   :  { %v3791_v52 = vpop.eup %3790  ;;  %v2643_v54 = vadd.f32 %v2642_v62, %v2554_v51  ;;  %v2467_v55 = vadd.f32 %v2466_v6, %v2378_v34 }
 0x412   :  { %v2770_v13 = vpack.c.bf16 %v3791_v52, %v3789_v17  ;;  %v3793_v21 = vpop.eup %3792 }
 0x413   :  { %3794 = vtanh.f32 %v2643_v54 }
 0x414   :  { %2802 = vst [vmem:[#allocation11 + $0x48] sm:$0xff] %v2770_v13  ;;  %3796 = vtanh.f32 %v2467_v55 }
 0x416   :  { %v2555_v35 = vpop.f32.mrf.mxu2  ;;  %v2380_v0 = vpop.f32.mrf.mxu0 }
 0x417   :  { %v2556_v27 = vadd.f32 %v2555_v35, %v4731_v59  ;;  %v2644_v5 = vpop.f32.mrf.mxu3  ;;  %v2469_v22 = vpop.f32.mrf.mxu1  ;;  %v2381_v63 = vadd.f32 %v2380_v0, %v4724_v24 }
 0x419   :  { %v3795_v23 = vpop.eup %3794  ;;  %v2645_v32 = vadd.f32 %v2644_v5, %v2556_v27  ;;  %2419 = vmatmul.bf16.gmra.mxu0 %v4714_v18  ;;  %v2470_v60 = vadd.f32 %v2469_v22, %v2381_v63 }
 0x41a   :  { %v2771_v19 = vpack.c.bf16 %v3795_v23, %v3793_v21  ;;  %2508 = vmatmul.bf16.gmra.mxu1 %v4719_v57  ;;  %v3797_v36 = vpop.eup %3796 }
 0x41b   :  { %3798 = vtanh.f32 %v2645_v32  ;;  %2597 = vmatmul.bf16.gmra.mxu2 %v4714_v18 }
 0x41c   :  { %2803 = vst [vmem:[#allocation11 + $0x50] sm:$0xff] %v2771_v19  ;;  %2686 = vmatmul.bf16.gmra.mxu3 %v4719_v57  ;;  %3800 = vtanh.f32 %v2470_v60 }
 0x41e   :  { %v2558_v15 = vpop.f32.mrf.mxu2  ;;  %v2382_v61 = vpop.f32.mrf.mxu0 }
 0x41f   :  { %v2559_v3 = vadd.f32 %v2558_v15, %v4731_v59  ;;  %v2647_v49 = vpop.f32.mrf.mxu3  ;;  %v2471_v10 = vpop.f32.mrf.mxu1  ;;  %v2383_v28 = vadd.f32 %v2382_v61, %v4724_v24 }
 0x421   :  { %v3799_v2 = vpop.eup %3798  ;;  %v2648_v11 = vadd.f32 %v2647_v49, %v2559_v3  ;;  %v2472_v18 = vadd.f32 %v2471_v10, %v2383_v28 }
 0x422   :  { %v2772_v48 = vpack.c.bf16 %v3799_v2, %v3797_v36  ;;  %v3801_v45 = vpop.eup %3800 }
 0x423   :  { %3802 = vtanh.f32 %v2648_v11 }
 0x424   :  { %2804 = vst [vmem:[#allocation11 + $0x58] sm:$0xff] %v2772_v48  ;;  %3804 = vtanh.f32 %v2472_v18 }
 0x426   :  { %v2560_v44 = vpop.f32.mrf.mxu2  ;;  %v2385_v56 = vpop.f32.mrf.mxu0 }
 0x427   :  { %v2561_v57 = vadd.f32 %v2560_v44, %v4731_v59  ;;  %v2649_v41 = vpop.f32.mrf.mxu3  ;;  %v2474_v30 = vpop.f32.mrf.mxu1  ;;  %v2386_v7 = vadd.f32 %v2385_v56, %v4724_v24 }
 0x429   :  { %v3803_v53 = vpop.eup %3802  ;;  %v2650_v42 = vadd.f32 %v2649_v41, %v2561_v57  ;;  %2424 = vmatmul.bf16.gmra.mxu0 %v4733_v14  ;;  %v2475_v38 = vadd.f32 %v2474_v30, %v2386_v7 }
 0x42a   :  { %v2773_v16 = vpack.c.bf16 %v3803_v53, %v3801_v45  ;;  %2513 = vmatmul.bf16.gmra.mxu1 %v4738_v33  ;;  %v3805_v8 = vpop.eup %3804 }
 0x42b   :  { %3806 = vtanh.f32 %v2650_v42  ;;  %2602 = vmatmul.bf16.gmra.mxu2 %v4733_v14 }
 0x42c   :  { %2805 = vst [vmem:[#allocation11 + $0x60] sm:$0xff] %v2773_v16  ;;  %2691 = vmatmul.bf16.gmra.mxu3 %v4738_v33  ;;  %3808 = vtanh.f32 %v2475_v38 }
 0x42e   :  { %v2563_v43 = vpop.f32.mrf.mxu2  ;;  %v2387_v40 = vpop.f32.mrf.mxu0 }
 0x42f   :  { %v2564_v39 = vadd.f32 %v2563_v43, %v4731_v59  ;;  %v2652_v29 = vpop.f32.mrf.mxu3  ;;  %v2476_v58 = vpop.f32.mrf.mxu1  ;;  %v2388_v12 = vadd.f32 %v2387_v40, %v4724_v24 }
 0x431   :  { %v3807_v50 = vpop.eup %3806  ;;  %v2653_v20 = vadd.f32 %v2652_v29, %v2564_v39  ;;  %v2477_v14 = vadd.f32 %v2476_v58, %v2388_v12 }
 0x432   :  { %v2774_v37 = vpack.c.bf16 %v3807_v50, %v3805_v8  ;;  %v3809_v26 = vpop.eup %3808 }
 0x433   :  { %3810 = vtanh.f32 %v2653_v20 }
 0x434   :  { %2806 = vst [vmem:[#allocation11 + $0x68] sm:$0xff] %v2774_v37  ;;  %3812 = vtanh.f32 %v2477_v14 }
 0x436   :  { %v2565_v31 = vpop.f32.mrf.mxu2  ;;  %v2390_v1 = vpop.f32.mrf.mxu0 }
 0x437   :  { %v2566_v33 = vadd.f32 %v2565_v31, %v4731_v59  ;;  %v2654_v25 = vpop.f32.mrf.mxu3  ;;  %v2479_v47 = vpop.f32.mrf.mxu1  ;;  %v2391_v62 = vadd.f32 %v2390_v1, %v4724_v24 }
 0x439   :  { %v3811_v9 = vpop.eup %3810  ;;  %v2655_v4 = vadd.f32 %v2654_v25, %v2566_v33  ;;  %v2480_v46 = vadd.f32 %v2479_v47, %v2391_v62 }
 0x43a   :  { %v2775_v51 = vpack.c.bf16 %v3811_v9, %v3809_v26  ;;  %v3813_v13 = vpop.eup %3812 }
 0x43b   :  { %3814 = vtanh.f32 %v2655_v4 }
 0x43c   :  { %2807 = vst [vmem:[#allocation11 + $0x70] sm:$0xff] %v2775_v51  ;;  %3816 = vtanh.f32 %v2480_v46 }
 0x43e   :  { %v2568_v17 = vpop.f32.mrf.mxu2  ;;  %v2392_v54 = vpop.f32.mrf.mxu0 }
 0x43f   :  { %v2569_v6 = vadd.f32 %v2568_v17, %v4731_v59  ;;  %v2657_v52 = vpop.f32.mrf.mxu3  ;;  %v2481_v34 = vpop.f32.mrf.mxu1  ;;  %v2393_v5 = vadd.f32 %v2392_v54, %v4724_v24 }
 0x441   :  { %v3815_v55 = vpop.eup %3814  ;;  %v2658_v35 = vadd.f32 %v2657_v52, %v2569_v6  ;;  %v2482_v0 = vadd.f32 %v2481_v34, %v2393_v5 }
 0x442   :  { %v2776_v27 = vpack.c.bf16 %v3815_v55, %v3813_v13  ;;  %v3817_v19 = vpop.eup %3816 }
 0x443   :  { %3818 = vtanh.f32 %v2658_v35 }
 0x444   :  { %2808 = vst [vmem:[#allocation11 + $0x78] sm:$0xff] %v2776_v27  ;;  %3820 = vtanh.f32 %v2482_v0 }
 0x446   :  { %v2570_v21 = vpop.f32.mrf.mxu2  ;;  %v2395_v32 = vpop.f32.mrf.mxu0 }
 0x447   :  { %v2571_v22 = vadd.f32 %v2570_v21, %v4731_v59  ;;  %v2659_v23 = vpop.f32.mrf.mxu3  ;;  %v2484_v63 = vpop.f32.mrf.mxu1  ;;  %v2396_v49 = vadd.f32 %v2395_v32, %v4724_v24 }
 0x449   :  { %v3819_v60 = vpop.eup %3818  ;;  %v2660_v15 = vadd.f32 %v2659_v23, %v2571_v22  ;;  %v2485_v61 = vadd.f32 %v2484_v63, %v2396_v49 }
 0x44a   :  { %v2777_v3 = vpack.c.bf16 %v3819_v60, %v3817_v19  ;;  %v3821_v48 = vpop.eup %3820 }
 0x44b   :  { %3822 = vtanh.f32 %v2660_v15 }
 0x44c   :  { %2809 = vst [vmem:[#allocation11 + $0x80] sm:$0xff] %v2777_v3  ;;  %3824 = vtanh.f32 %v2485_v61 }
 0x44e   :  { %v2573_v36 = vpop.f32.mrf.mxu2  ;;  %v2397_v11 = vpop.f32.mrf.mxu0 }
 0x44f   :  { %v2574_v10 = vadd.f32 %v2573_v36, %v4731_v59  ;;  %v2662_v2 = vpop.f32.mrf.mxu3  ;;  %v2486_v28 = vpop.f32.mrf.mxu1  ;;  %v2398_v41 = vadd.f32 %v2397_v11, %v4724_v24 }
 0x451   :  { %v3823_v18 = vpop.eup %3822  ;;  %v2663_v44 = vadd.f32 %v2662_v2, %v2574_v10  ;;  %v2487_v56 = vadd.f32 %v2486_v28, %v2398_v41 }
 0x452   :  { %v2778_v57 = vpack.c.bf16 %v3823_v18, %v3821_v48  ;;  %v3825_v16 = vpop.eup %3824 }
 0x453   :  { %3826 = vtanh.f32 %v2663_v44 }
 0x454   :  { %2810 = vst [vmem:[#allocation11 + $0x88] sm:$0xff] %v2778_v57  ;;  %3828 = vtanh.f32 %v2487_v56 }
 0x456   :  { %v2575_v45 = vpop.f32.mrf.mxu2  ;;  %v2400_v42 = vpop.f32.mrf.mxu0 }
 0x457   :  { %v2576_v30 = vadd.f32 %v2575_v45, %v4731_v59  ;;  %v2664_v53 = vpop.f32.mrf.mxu3  ;;  %v2489_v7 = vpop.f32.mrf.mxu1  ;;  %v2401_v29 = vadd.f32 %v2400_v42, %v4724_v24 }
 0x459   :  { %v3827_v38 = vpop.eup %3826  ;;  %v2665_v43 = vadd.f32 %v2664_v53, %v2576_v30  ;;  %v2490_v40 = vadd.f32 %v2489_v7, %v2401_v29 }
 0x45a   :  { %v2779_v39 = vpack.c.bf16 %v3827_v38, %v3825_v16  ;;  %v3829_v37 = vpop.eup %3828 }
 0x45b   :  { %3830 = vtanh.f32 %v2665_v43 }
 0x45c   :  { %2811 = vst [vmem:[#allocation11 + $0x90] sm:$0xff] %v2779_v39  ;;  %3832 = vtanh.f32 %v2490_v40 }
 0x45e   :  { %v2578_v8 = vpop.f32.mrf.mxu2  ;;  %v2402_v20 = vpop.f32.mrf.mxu0 }
 0x45f   :  { %v2579_v58 = vadd.f32 %v2578_v8, %v4731_v59  ;;  %v2667_v50 = vpop.f32.mrf.mxu3  ;;  %v2491_v12 = vpop.f32.mrf.mxu1  ;;  %v2403_v25 = vadd.f32 %v2402_v20, %v4724_v24 }
 0x461   :  { %v3831_v14 = vpop.eup %3830  ;;  %v2668_v31 = vadd.f32 %v2667_v50, %v2579_v58  ;;  %v2492_v1 = vadd.f32 %v2491_v12, %v2403_v25 }
 0x462   :  { %v2780_v33 = vpack.c.bf16 %v3831_v14, %v3829_v37  ;;  %v3833_v51 = vpop.eup %3832 }
 0x463   :  { %3834 = vtanh.f32 %v2668_v31 }
 0x464   :  { %2812 = vst [vmem:[#allocation11 + $0x98] sm:$0xff] %v2780_v33  ;;  %3836 = vtanh.f32 %v2492_v1 }
 0x466   :  { %v2580_v26 = vpop.f32.mrf.mxu2  ;;  %v2405_v4 = vpop.f32.mrf.mxu0 }
 0x467   :  { %v2581_v47 = vadd.f32 %v2580_v26, %v4731_v59  ;;  %v2669_v9 = vpop.f32.mrf.mxu3  ;;  %v2494_v62 = vpop.f32.mrf.mxu1  ;;  %v2406_v52 = vadd.f32 %v2405_v4, %v4724_v24 }
 0x469   :  { %v3835_v46 = vpop.eup %3834  ;;  %v2670_v17 = vadd.f32 %v2669_v9, %v2581_v47  ;;  %v2495_v54 = vadd.f32 %v2494_v62, %v2406_v52 }
 0x46a   :  { %v2781_v6 = vpack.c.bf16 %v3835_v46, %v3833_v51  ;;  %v3837_v27 = vpop.eup %3836 }
 0x46b   :  { %3838 = vtanh.f32 %v2670_v17 }
 0x46c   :  { %2813 = vst [vmem:[#allocation11 + $0xa0] sm:$0xff] %v2781_v6  ;;  %3840 = vtanh.f32 %v2495_v54 }
 0x46e   :  { %v2583_v13 = vpop.f32.mrf.mxu2  ;;  %v2407_v35 = vpop.f32.mrf.mxu0 }
 0x46f   :  { %v2584_v34 = vadd.f32 %v2583_v13, %v4731_v59  ;;  %v2672_v55 = vpop.f32.mrf.mxu3  ;;  %v2496_v5 = vpop.f32.mrf.mxu1  ;;  %v2408_v23 = vadd.f32 %v2407_v35, %v4724_v24 }
 0x471   :  { %v3839_v0 = vpop.eup %3838  ;;  %v2673_v21 = vadd.f32 %v2672_v55, %v2584_v34  ;;  %v2497_v32 = vadd.f32 %v2496_v5, %v2408_v23 }
 0x472   :  { %v2782_v22 = vpack.c.bf16 %v3839_v0, %v3837_v27  ;;  %v3841_v3 = vpop.eup %3840 }
 0x473   :  { %3842 = vtanh.f32 %v2673_v21 }
 0x474   :  { %2814 = vst [vmem:[#allocation11 + $0xa8] sm:$0xff] %v2782_v22  ;;  %3844 = vtanh.f32 %v2497_v32 }
 0x476   :  { %v2585_v19 = vpop.f32.mrf.mxu2  ;;  %v2410_v15 = vpop.f32.mrf.mxu0 }
 0x477   :  { %v2586_v63 = vadd.f32 %v2585_v19, %v4731_v59  ;;  %v2674_v60 = vpop.f32.mrf.mxu3  ;;  %v2499_v49 = vpop.f32.mrf.mxu1  ;;  %v2411_v2 = vadd.f32 %v2410_v15, %v4724_v24 }
 0x479   :  { %v3843_v61 = vpop.eup %3842  ;;  %v2675_v36 = vadd.f32 %v2674_v60, %v2586_v63  ;;  %v2500_v11 = vadd.f32 %v2499_v49, %v2411_v2 }
 0x47a   :  { %v2783_v10 = vpack.c.bf16 %v3843_v61, %v3841_v3  ;;  %v3845_v57 = vpop.eup %3844 }
 0x47b   :  { %3846 = vtanh.f32 %v2675_v36 }
 0x47c   :  { %2815 = vst [vmem:[#allocation11 + $0xb0] sm:$0xff] %v2783_v10  ;;  %3848 = vtanh.f32 %v2500_v11 }
 0x47e   :  { %v2588_v48 = vpop.f32.mrf.mxu2  ;;  %v2412_v44 = vpop.f32.mrf.mxu0 }
 0x47f   :  { %v2589_v28 = vadd.f32 %v2588_v48, %v4731_v59  ;;  %v2677_v18 = vpop.f32.mrf.mxu3  ;;  %v2501_v41 = vpop.f32.mrf.mxu1  ;;  %v2413_v53 = vadd.f32 %v2412_v44, %v4724_v24 }
 0x481   :  { %v3847_v56 = vpop.eup %3846  ;;  %v2678_v45 = vadd.f32 %v2677_v18, %v2589_v28  ;;  %v2502_v42 = vadd.f32 %v2501_v41, %v2413_v53 }
 0x482   :  { %v2784_v30 = vpack.c.bf16 %v3847_v56, %v3845_v57  ;;  %v3849_v39 = vpop.eup %3848 }
 0x483   :  { %3850 = vtanh.f32 %v2678_v45 }
 0x484   :  { %2816 = vst [vmem:[#allocation11 + $0xb8] sm:$0xff] %v2784_v30  ;;  %3852 = vtanh.f32 %v2502_v42 }
 0x486   :  { %v2590_v16 = vpop.f32.mrf.mxu2  ;;  %v2415_v43 = vpop.f32.mrf.mxu0 }
 0x487   :  { %v2591_v7 = vadd.f32 %v2590_v16, %v4731_v59  ;;  %v2679_v38 = vpop.f32.mrf.mxu3  ;;  %v2504_v29 = vpop.f32.mrf.mxu1  ;;  %v2416_v50 = vadd.f32 %v2415_v43, %v4724_v24 }
 0x489   :  { %v3851_v40 = vpop.eup %3850  ;;  %v2680_v8 = vadd.f32 %v2679_v38, %v2591_v7  ;;  %v2505_v20 = vadd.f32 %v2504_v29, %v2416_v50 }
 0x48a   :  { %v2785_v58 = vpack.c.bf16 %v3851_v40, %v3849_v39  ;;  %v3853_v33 = vpop.eup %3852 }
 0x48b   :  { %3854 = vtanh.f32 %v2680_v8 }
 0x48c   :  { %2817 = vst [vmem:[#allocation11 + $0xc0] sm:$0xff] %v2785_v58  ;;  %3856 = vtanh.f32 %v2505_v20 }
 0x48e   :  { %v2593_v37 = vpop.f32.mrf.mxu2  ;;  %v2417_v31 = vpop.f32.mrf.mxu0 }
 0x48f   :  { %v2594_v12 = vadd.f32 %v2593_v37, %v4731_v59  ;;  %v2682_v14 = vpop.f32.mrf.mxu3  ;;  %v2506_v25 = vpop.f32.mrf.mxu1  ;;  %v2418_v9 = vadd.f32 %v2417_v31, %v4724_v24 }
 0x491   :  { %v3855_v1 = vpop.eup %3854  ;;  %v2683_v26 = vadd.f32 %v2682_v14, %v2594_v12  ;;  %v2507_v4 = vadd.f32 %v2506_v25, %v2418_v9 }
 0x492   :  { %v2786_v47 = vpack.c.bf16 %v3855_v1, %v3853_v33  ;;  %v3857_v6 = vpop.eup %3856 }
 0x493   :  { %3858 = vtanh.f32 %v2683_v26 }
 0x494   :  { %2818 = vst [vmem:[#allocation11 + $0xc8] sm:$0xff] %v2786_v47  ;;  %3860 = vtanh.f32 %v2507_v4 }
 0x496   :  { %v2595_v51 = vpop.f32.mrf.mxu2  ;;  %v2420_v17 = vpop.f32.mrf.mxu0 }
 0x497   :  { %v2596_v62 = vadd.f32 %v2595_v51, %v4731_v59  ;;  %v2684_v46 = vpop.f32.mrf.mxu3  ;;  %v2509_v52 = vpop.f32.mrf.mxu1  ;;  %v2421_v55 = vadd.f32 %v2420_v17, %v4724_v24 }
 0x499   :  { %v3859_v54 = vpop.eup %3858  ;;  %v2685_v13 = vadd.f32 %v2684_v46, %v2596_v62  ;;  %v2510_v35 = vadd.f32 %v2509_v52, %v2421_v55 }
 0x49a   :  { %v2787_v34 = vpack.c.bf16 %v3859_v54, %v3857_v6  ;;  %v3861_v22 = vpop.eup %3860 }
 0x49b   :  { %3862 = vtanh.f32 %v2685_v13 }
 0x49c   :  { %2819 = vst [vmem:[#allocation11 + $0xd0] sm:$0xff] %v2787_v34  ;;  %3864 = vtanh.f32 %v2510_v35 }
 0x49e   :  { %v2598_v27 = vpop.f32.mrf.mxu2  ;;  %v2422_v21 = vpop.f32.mrf.mxu0 }
 0x49f   :  { %v2599_v5 = vadd.f32 %v2598_v27, %v4731_v59  ;;  %v2687_v0 = vpop.f32.mrf.mxu3  ;;  %v2511_v19 = vpop.f32.mrf.mxu1  ;;  %v2423_v60 = vadd.f32 %v2422_v21, %v4724_v24 }
 0x4a1   :  { %v3863_v23 = vpop.eup %3862  ;;  %v2688_v32 = vadd.f32 %v2687_v0, %v2599_v5  ;;  %v2512_v15 = vadd.f32 %v2511_v19, %v2423_v60 }
 0x4a2   :  { %v2788_v63 = vpack.c.bf16 %v3863_v23, %v3861_v22  ;;  %v3865_v10 = vpop.eup %3864 }
 0x4a3   :  { %3866 = vtanh.f32 %v2688_v32 }
 0x4a4   :  { %2820 = vst [vmem:[#allocation11 + $0xd8] sm:$0xff] %v2788_v63  ;;  %3868 = vtanh.f32 %v2512_v15 }
 0x4a6   :  { %v2600_v3 = vpop.f32.mrf.mxu2  ;;  %v2425_v36 = vpop.f32.mrf.mxu0 }
 0x4a7   :  { %v2601_v49 = vadd.f32 %v2600_v3, %v4731_v59  ;;  %v2689_v61 = vpop.f32.mrf.mxu3  ;;  %v2426_v28 = vadd.f32 %v2425_v36, %v4724_v24  ;;  %v2514_v18 = vpop.f32.mrf.mxu1 }
 0x4a9   :  { %v3867_v2 = vpop.eup %3866  ;;  %v2690_v11 = vadd.f32 %v2689_v61, %v2601_v49  ;;  %v2515_v44 = vadd.f32 %v2514_v18, %v2426_v28 }
 0x4aa   :  { %v2789_v48 = vpack.c.bf16 %v3867_v2, %v3865_v10  ;;  %v3869_v30 = vpop.eup %3868 }
 0x4ab   :  { %3870 = vtanh.f32 %v2690_v11 }
 0x4ac   :  { %2821 = vst [vmem:[#allocation11 + $0xe0] sm:$0xff] %v2789_v48  ;;  %3872 = vtanh.f32 %v2515_v44 }
 0x4ae   :  { %v2603_v57 = vpop.f32.mrf.mxu2  ;;  %v2427_v45 = vpop.f32.mrf.mxu0 }
 0x4af   :  { %v2604_v41 = vadd.f32 %v2603_v57, %v4731_v59  ;;  %v2692_v56 = vpop.f32.mrf.mxu3  ;;  %v2428_v7 = vadd.f32 %v2427_v45, %v4724_v24  ;;  %v2516_v38 = vpop.f32.mrf.mxu1 }
 0x4b1   :  { %v3871_v53 = vpop.eup %3870  ;;  %v2693_v42 = vadd.f32 %v2692_v56, %v2604_v41  ;;  %v2517_v43 = vadd.f32 %v2516_v38, %v2428_v7 }
 0x4b2   :  { %v2790_v16 = vpack.c.bf16 %v3871_v53, %v3869_v30  ;;  %v3873_v40 = vpop.eup %3872 }
 0x4b3   :  { %3874 = vtanh.f32 %v2693_v42 }
 0x4b4   :  { %2822 = vst [vmem:[#allocation11 + $0xe8] sm:$0xff] %v2790_v16  ;;  %3876 = vtanh.f32 %v2517_v43 }
 0x4b6   :  { %v2605_v39 = vpop.f32.mrf.mxu2 }
 0x4b7   :  { %v2606_v29 = vadd.f32 %v2605_v39, %v4731_v59  ;;  %v2694_v8 = vpop.f32.mrf.mxu3 }
 0x4b9   :  { %v3875_v58 = vpop.eup %3874  ;;  %v2695_v50 = vadd.f32 %v2694_v8, %v2606_v29 }
 0x4ba   :  { %v2791_v20 = vpack.c.bf16 %v3875_v58, %v3873_v40  ;;  %v3877_v24 = vpop.eup %3876 }
 0x4bb   :  { %3878 = vtanh.f32 %v2695_v50 }
 0x4bc   :  { %2823 = vst [vmem:[#allocation11 + $0xf0] sm:$0xff] %v2791_v20 }
 0x4c1   :  { %v3879_v37 = vpop.eup %3878 }
 0x4c2   :  { %v2792_v12 = vpack.c.bf16 %v3879_v37, %v3877_v24 }
 0x4c4   :  { %2824 = vst [vmem:[#allocation11 + $0xf8] sm:$0xff] %v2792_v12 }
 0x4c5   :  { %2837 = dma.vmem_to_hbm [thread:$0]  %s2830_s28, 4096, %s2832_s8, [#allocation4], %s4034_s9, %s4034_s9, %s4035_s10  }
 0x4c6   :  { %4031 = dma.done.wait [#allocation4], 4096  }
 0x4c7   :  { %4032 = vsyncadd [#allocation4], 4294963200 }
 0x4c8   :  { %2842 = vsyncpa [#allocation3], 1 }
 0x4c9   :  { %2843 = vsyncpa [#allocation6], 1 }
 0x4ca   :  { %2844 = vsyncpa [#allocation9], 1 }
 0x4cb   :  { %2845 = vsyncpa [#allocation4], 1 }

</bundles_post_ra>
